<compile_context>
chip_gen: v7x
topology: tpu7x:2x2x1
jax: 0.10.0
libtpu: 0.0.40
codegen_flags: <defaults>
</compile_context>

<pallas_src>
import math

import jax
import jax.numpy as jnp
from jax import lax
from jax.experimental import pallas as pl
from jax.experimental.pallas import tpu as pltpu

DTYPE = jnp.float32

# ----------------------------- static config --------------------------------
B0, C0, IMG, P0 = 2, 3, 16, 4            # batch / channels / image / patch
D, H = 32, 4                             # hidden dim, attention heads
DH = D // H                              # head dim
MLPD = 4 * D                             # MLP hidden dim (128)
L = 2                                    # encoder layers
NC = 10                                  # classes
A = D // 4                               # adapter bottleneck
A2 = 2 * A                               # fused (invariant|aware) bottleneck
NP = (IMG // P0) ** 2                    # 16 patch tokens
S = NP + 1                               # 17 tokens (+CLS)
S_PAD = 24                               # token axis padded to multiple of 8
PATCH = C0 * P0 * P0                     # 48 pixels per patch
PAUG = PATCH + S_PAD                     # 72 (identity block folds cls/pos/bias)
LANES = 128

# packed weight-slab row offsets (per layer), all matrices stored lane-major
O_WQKV = 0                               # (D, 3D)
O_WO = D                                 # (D, D)
O_W1 = 2 * D                             # (D, MLP)
O_W2 = 3 * D                             # (MLP, D)
O_AWD = 3 * D + MLPD                     # (D, 2A)
O_AWU = 4 * D + MLPD                     # (2A, D), 0.5 folded
W_STRIDE = 4 * D + MLPD + A2             # 272 rows / layer

# packed vector-slab row indices (per layer), one vector per 128-lane row
(V_LN1G, V_LN1B, V_BQKV, V_BO, V_LN2G, V_LN2B,
 V_B1, V_B2, V_ABD, V_ABU, V_ALNG, V_ALNB) = range(12)
V_STRIDE = 12


# ------------------------------ in-kernel math -------------------------------
def _gelu(x):
    # tanh-approx GELU (transcendental rides the EUP slot); ~1e-3 vs exact erf.
    c = 0.7978845608028654
    return 0.5 * x * (1.0 + jnp.tanh(c * (x + 0.044715 * x * x * x)))


def _layernorm(x, g, b, eps):
    m = jnp.mean(x, axis=-1, keepdims=True)
    xc = x - m
    v = jnp.mean(xc * xc, axis=-1, keepdims=True)
    return xc * lax.rsqrt(v + eps) * g + b


# ------------------------------ fused kernel ---------------------------------
def _vit_kernel(patches_ref, conv_ref, wslab_ref, vec_ref, fcw_ref, out_ref):
    f32 = jnp.float32

    # patch embedding; cls/pos/conv-bias ride the identity block appended to
    # the patch matrix, so one matmul does conv_proj + cls/pos add.
    x = jnp.dot(patches_ref[0], conv_ref[...], preferred_element_type=f32)  # (S_PAD, D)

    # key-padding mask over the lane (key) axis of every score matrix (hoisted)
    col = lax.broadcasted_iota(jnp.int32, (1, S_PAD), 1)
    neg_mask = jnp.where(col < S, 0.0, -1e30).astype(f32)

    for l in range(L):                                   # static, unrolled (L=2)
        wr = l * W_STRIDE
        vr = l * V_STRIDE

        def vrow(idx, width):
            r = vr + idx
            return vec_ref[r:r + 1, 0:width]             # (1, width) ref load

        # -------- MHSA: pre-LN, fused QKV, per-head, register-accumulated ----
        y = _layernorm(x, vrow(V_LN1G, D), vrow(V_LN1B, D), 1e-6)
        qkv = (jnp.dot(y, wslab_ref[wr + O_WQKV:wr + O_WQKV + D, 0:3 * D],
                       preferred_element_type=f32) + vrow(V_BQKV, 3 * D))
        attn = None
        for h in range(H):                               # static, unrolled (H=4)
            q = qkv[:, h * DH:(h + 1) * DH]
            k = qkv[:, D + h * DH:D + (h + 1) * DH]
            v = qkv[:, 2 * D + h * DH:2 * D + (h + 1) * DH]
            # q @ k^T without materializing a transpose (contract last dims);
            # 1/sqrt(Dh) is folded into the Q weights/bias at pack time.
            s = lax.dot_general(q, k, (((1,), (1,)), ((), ())),
                                preferred_element_type=f32) + neg_mask
            s = s - jnp.max(s, axis=-1, keepdims=True)
            p = jnp.exp(s)
            p = p * pl.reciprocal(jnp.sum(p, axis=-1, keepdims=True), approx=True)
            pv = jnp.dot(p, v, preferred_element_type=f32)           # (S_PAD, DH)
            # reassociated out-projection: accumulate (p v) @ Wo_h in registers
            t = jnp.dot(pv,
                        wslab_ref[wr + O_WO + h * DH:wr + O_WO + (h + 1) * DH, 0:D],
                        preferred_element_type=f32)
            attn = t if attn is None else attn + t
        x = x + attn + vrow(V_BO, D)                     # residual (+ proj bias)

        # -------- MLP: pre-LN, GELU, residual (all VMEM/register resident) ---
        z = _layernorm(x, vrow(V_LN2G, D), vrow(V_LN2B, D), 1e-6)
        z = (jnp.dot(z, wslab_ref[wr + O_W1:wr + O_W1 + D, 0:MLPD],
                     preferred_element_type=f32) + vrow(V_B1, MLPD))
        z = _gelu(z)
        z = (jnp.dot(z, wslab_ref[wr + O_W2:wr + O_W2 + MLPD, 0:D],
                     preferred_element_type=f32) + vrow(V_B2, D))
        x = x + z

        # -------- dual adapters (invariant+aware fused, 0.5 folded) + LN -----
        a = (jnp.dot(x, wslab_ref[wr + O_AWD:wr + O_AWD + D, 0:A2],
                     preferred_element_type=f32) + vrow(V_ABD, A2))
        a = _gelu(a)
        a = (jnp.dot(a, wslab_ref[wr + O_AWU:wr + O_AWU + A2, 0:D],
                     preferred_element_type=f32) + vrow(V_ABU, D))
        x = _layernorm(x + a, vrow(V_ALNG, D), vrow(V_ALNB, D), 1e-5)
        # padding rows (>= S) are garbage-but-finite here and never read.

    # classifier: only the first sublane tile (row 0 = CLS) is multiplied;
    # fc is padded to 128 output lanes -> one dense, unmasked (8,128) store.
    logits = (jnp.dot(x[0:8, :], fcw_ref[...], preferred_element_type=f32)
              + vec_ref[L * V_STRIDE:L * V_STRIDE + 1, :])
    out_ref[0] = logits.astype(out_ref.dtype)


# ------------------------------- forward -------------------------------------
def forward(pp, x_img):
    B = x_img.shape[0]
    HP, WP = IMG // P0, IMG // P0

    # im2col glue: conv_proj with kernel==stride==P  ==  linear over patches
    patches = (x_img.reshape(B, C0, HP, P0, WP, P0)
               .transpose(0, 2, 4, 1, 3, 5)
               .reshape(B, NP, PATCH))
    pa = jnp.zeros((B, S_PAD, PAUG), DTYPE)
    pa = pa.at[:, 1:1 + NP, 0:PATCH].set(patches)
    eye = jnp.eye(S_PAD, dtype=DTYPE)            # folds cls/pos/conv-bias add
    pa = pa.at[:, :, PATCH:].set(jnp.broadcast_to(eye, (B, S_PAD, S_PAD)))

    out = pl.pallas_call(
        _vit_kernel,
        out_shape=jax.ShapeDtypeStruct((B, 8, LANES), DTYPE),
        grid=(B,),
        in_specs=[
            pl.BlockSpec((1, S_PAD, PAUG), lambda b: (b, 0, 0)),
            pl.BlockSpec((PAUG, D), lambda b: (0, 0)),
            pl.BlockSpec((L * W_STRIDE, LANES), lambda b: (0, 0)),
            pl.BlockSpec((L * V_STRIDE + 1, LANES), lambda b: (0, 0)),
            pl.BlockSpec((D, LANES), lambda b: (0, 0)),
        ],
        out_specs=pl.BlockSpec((1, 8, LANES), lambda b: (b, 0, 0)),
        compiler_params=pltpu.CompilerParams(
            dimension_semantics=("parallel",)),
    )(pa, pp["conv_aug"], pp["wslab"], pp["vecs"], pp["fc_w"])

    return out[:, 0, :NC]                        # CLS-token logits


# ------------------------------ parameter init --------------------------------
def init_params(key):
    keys = list(jax.random.split(key, 512))
    it = iter(keys)

    def lin(din, dout, scale=0.02):
        w = jax.random.normal(next(it), (din, dout), DTYPE) * scale
        b = jax.random.normal(next(it), (1, dout), DTYPE) * scale
        return w, b

    params = {}
    params["conv_w"], params["conv_b"] = lin(PATCH, D)
    params["cls_token"] = jax.random.normal(next(it), (1, 1, D), DTYPE) * 0.02
    params["pos_embed"] = jax.random.normal(next(it), (1, S, D), DTYPE) * 0.02

    layers = []
    for _ in range(L):
        p = {}
        p["ln1_g"] = jnp.ones((1, D), DTYPE)
        p["ln1_b"] = jnp.zeros((1, D), DTYPE)
        p["wq"], p["bq"] = lin(D, D)
        p["wk"], p["bk"] = lin(D, D)
        p["wv"], p["bv"] = lin(D, D)
        p["wo"], p["bo"] = lin(D, D)
        p["ln2_g"] = jnp.ones((1, D), DTYPE)
        p["ln2_b"] = jnp.zeros((1, D), DTYPE)
        p["w1"], p["b1"] = lin(D, MLPD)
        p["w2"], p["b2"] = lin(MLPD, D)
        p["adp_inv_wd"], p["adp_inv_bd"] = lin(D, A)
        p["adp_inv_wu"], p["adp_inv_bu"] = lin(A, D)
        p["adp_aw_wd"], p["adp_aw_bd"] = lin(D, A)
        p["adp_aw_wu"], p["adp_aw_bu"] = lin(A, D)
        p["adp_ln_g"] = jnp.ones((1, D), DTYPE)
        p["adp_ln_b"] = jnp.zeros((1, D), DTYPE)
        layers.append(p)
    params["layers"] = layers

    params["fc_w"], params["fc_b"] = lin(D, NC)
    return params


def pack_params(params):
    """Host-side one-time packing: QKV fusion (Q pre-scaled by 1/sqrt(Dh)),
    dual-adapter fusion (0.5 folded), cls/pos/conv-bias folded into the conv
    matmul via an identity block, and everything stacked into 5 slabs."""
    scale = 1.0 / math.sqrt(DH)
    layers = params["layers"]
    pp = {}

    # conv_proj weight with the additive base appended: x0 = [P | I] @ [[W],[base]]
    base = jnp.zeros((S_PAD, D), DTYPE)
    base = base.at[0].set(params["cls_token"][0, 0] + params["pos_embed"][0, 0])
    base = base.at[1:S].set(params["pos_embed"][0, 1:] + params["conv_b"][0])
    pp["conv_aug"] = jnp.concatenate([params["conv_w"], base], axis=0)  # (72, D)

    wslab = jnp.zeros((L * W_STRIDE, LANES), DTYPE)
    vecs = jnp.zeros((L * V_STRIDE + 1, LANES), DTYPE)
    for l, lp in enumerate(layers):
        r = l * W_STRIDE
        wqkv = jnp.concatenate([lp["wq"] * scale, lp["wk"], lp["wv"]], axis=1)
        wslab = wslab.at[r + O_WQKV:r + O_WQKV + D, 0:3 * D].set(wqkv)
        wslab = wslab.at[r + O_WO:r + O_WO + D, 0:D].set(lp["wo"])
        wslab = wslab.at[r + O_W1:r + O_W1 + D, 0:MLPD].set(lp["w1"])
        wslab = wslab.at[r + O_W2:r + O_W2 + MLPD, 0:D].set(lp["w2"])
        adp_wd = jnp.concatenate([lp["adp_inv_wd"], lp["adp_aw_wd"]], axis=1)
        adp_wu = 0.5 * jnp.concatenate([lp["adp_inv_wu"], lp["adp_aw_wu"]], axis=0)
        wslab = wslab.at[r + O_AWD:r + O_AWD + D, 0:A2].set(adp_wd)
        wslab = wslab.at[r + O_AWU:r + O_AWU + A2, 0:D].set(adp_wu)

        v = l * V_STRIDE
        bqkv = jnp.concatenate([lp["bq"] * scale, lp["bk"], lp["bv"]], axis=1)
        adp_bd = jnp.concatenate([lp["adp_inv_bd"], lp["adp_aw_bd"]], axis=1)
        adp_bu = 0.5 * (lp["adp_inv_bu"] + lp["adp_aw_bu"])
        vecs = vecs.at[v + V_LN1G, 0:D].set(lp["ln1_g"][0])
        vecs = vecs.at[v + V_LN1B, 0:D].set(lp["ln1_b"][0])
        vecs = vecs.at[v + V_BQKV, 0:3 * D].set(bqkv[0])
        vecs = vecs.at[v + V_BO, 0:D].set(lp["bo"][0])
        vecs = vecs.at[v + V_LN2G, 0:D].set(lp["ln2_g"][0])
        vecs = vecs.at[v + V_LN2B, 0:D].set(lp["ln2_b"][0])
        vecs = vecs.at[v + V_B1, 0:MLPD].set(lp["b1"][0])
        vecs = vecs.at[v + V_B2, 0:D].set(lp["b2"][0])
        vecs = vecs.at[v + V_ABD, 0:A2].set(adp_bd[0])
        vecs = vecs.at[v + V_ABU, 0:D].set(adp_bu[0])
        vecs = vecs.at[v + V_ALNG, 0:D].set(lp["adp_ln_g"][0])
        vecs = vecs.at[v + V_ALNB, 0:D].set(lp["adp_ln_b"][0])
    vecs = vecs.at[L * V_STRIDE, 0:NC].set(params["fc_b"][0])
    pp["wslab"] = wslab
    pp["vecs"] = vecs

    fc_w = jnp.zeros((D, LANES), DTYPE)
    pp["fc_w"] = fc_w.at[:, 0:NC].set(params["fc_w"])
    return pp


# --------------------- pure-JAX reference (unpacked params) -------------------
def _ref_forward(params, x_img):
    B = x_img.shape[0]
    HP = IMG // P0
    patches = (x_img.reshape(B, C0, HP, P0, HP, P0)
               .transpose(0, 2, 4, 1, 3, 5).reshape(B, NP, PATCH))
    x = patches @ params["conv_w"] + params["conv_b"]
    cls = jnp.broadcast_to(params["cls_token"], (B, 1, D))
    x = jnp.concatenate([cls, x], axis=1) + params["pos_embed"]
    scale = 1.0 / math.sqrt(DH)

    def ln(t, g, b, eps):
        m = t.mean(-1, keepdims=True)
        v = ((t - m) ** 2).mean(-1, keepdims=True)
        return (t - m) * lax.rsqrt(v + eps) * g + b

    for lp in params["layers"]:
        y = ln(x, lp["ln1_g"], lp["ln1_b"], 1e-6)
        q = (y @ lp["wq"] + lp["bq"]).reshape(B, S, H, DH)
        k = (y @ lp["wk"] + lp["bk"]).reshape(B, S, H, DH)
        v = (y @ lp["wv"] + lp["bv"]).reshape(B, S, H, DH)
        s = jnp.einsum("bqhd,bkhd->bhqk", q, k) * scale
        p = jax.nn.softmax(s, axis=-1)
        o = jnp.einsum("bhqk,bkhd->bqhd", p, v).reshape(B, S, D)
        x = x + o @ lp["wo"] + lp["bo"]
        z = ln(x, lp["ln2_g"], lp["ln2_b"], 1e-6)
        z = _gelu(z @ lp["w1"] + lp["b1"]) @ lp["w2"] + lp["b2"]
        x = x + z
        inv = _gelu(x @ lp["adp_inv_wd"] + lp["adp_inv_bd"]) @ lp["adp_inv_wu"] + lp["adp_inv_bu"]
        aw = _gelu(x @ lp["adp_aw_wd"] + lp["adp_aw_bd"]) @ lp["adp_aw_wu"] + lp["adp_aw_bu"]
        x = ln(x + 0.5 * inv + 0.5 * aw, lp["adp_ln_g"], lp["adp_ln_b"], 1e-5)
    return x[:, 0] @ params["fc_w"] + params["fc_b"]


# ---------------------------------- main --------------------------------------
if __name__ == "__main__":
    key = jax.random.PRNGKey(0)
    kx, kp = jax.random.split(key)
    x = jax.random.normal(kx, (B0, C0, IMG, IMG), DTYPE)
    params = init_params(kp)
    packed = pack_params(params)

    logits = jax.block_until_ready(jax.jit(forward)(packed, x))

    assert logits.shape == (B0, NC), logits.shape
    assert bool(jnp.all(jnp.isfinite(logits)))

    ref = _ref_forward(params, x)
    max_err = float(jnp.max(jnp.abs(logits - ref)))
    assert bool(jnp.allclose(logits, ref, rtol=5e-2, atol=1e-2)), max_err

    print("KERNEL_OK")
</pallas_src>

<mosaic_0001>
module attributes {stable_mosaic.version = 11 : i64} {
  func.func @_vit_kernel(%arg0: i32, %arg1: memref<1x24x72xf32, #tpu.memory_space<vmem>>, %arg2: memref<72x32xf32, #tpu.memory_space<vmem>>, %arg3: memref<544x128xf32, #tpu.memory_space<vmem>>, %arg4: memref<25x128xf32, #tpu.memory_space<vmem>>, %arg5: memref<32x128xf32, #tpu.memory_space<vmem>>, %arg6: memref<1x8x128xf32, #tpu.memory_space<vmem>>) attributes {dimension_semantics = [#tpu.dimension_semantics<parallel>], iteration_bounds = array<i64: 2>, scalar_prefetch = 0 : i64, scratch_operands = 0 : i64, tpu.core_type = #tpu.core_type<tc>, window_params = [{transform_indices = @transform_0, window_bounds = array<i64: 1, 24, 72>}, {pipeline_mode = #tpu.pipeline_mode<synchronous>, transform_indices = @transform_1, window_bounds = array<i64: 72, 32>}, {pipeline_mode = #tpu.pipeline_mode<synchronous>, transform_indices = @transform_2, window_bounds = array<i64: 544, 128>}, {pipeline_mode = #tpu.pipeline_mode<synchronous>, transform_indices = @transform_3, window_bounds = array<i64: 25, 128>}, {pipeline_mode = #tpu.pipeline_mode<synchronous>, transform_indices = @transform_4, window_bounds = array<i64: 32, 128>}, {transform_indices = @transform_5, window_bounds = array<i64: 1, 8, 128>}]} {
    %c0 = arith.constant 0 : index
    %c0_0 = arith.constant 0 : index
    %c0_1 = arith.constant 0 : index
    %0 = vector.load %arg1[%c0, %c0_0, %c0_1] : memref<1x24x72xf32, #tpu.memory_space<vmem>>, vector<1x24x72xf32>
    %1 = vector.shape_cast %0 : vector<1x24x72xf32> to vector<24x72xf32>
    %c0_2 = arith.constant 0 : index
    %c0_3 = arith.constant 0 : index
    %2 = vector.load %arg2[%c0_2, %c0_3] : memref<72x32xf32, #tpu.memory_space<vmem>>, vector<72x32xf32>
    %cst = arith.constant dense<0.000000e+00> : vector<24x32xf32>
    %3 = tpu.matmul %1, %2, %cst {dimension_numbers = #tpu.dot_dimension_numbers<[1], [0], [0], [1], [0, 0, 1, 1], [], []>} : vector<24x72xf32>, vector<72x32xf32>, vector<24x32xf32> -> vector<24x32xf32>
    %4 = tpu.iota {dimensions = array<i32: 1>} : vector<1x24xi32>
    %c17_i32 = arith.constant 17 : i32
    %5 = vector.broadcast %c17_i32 : i32 to vector<1x24xi32>
    %6 = arith.cmpi slt, %4, %5 : vector<1x24xi32>
    %cst_4 = arith.constant 0.000000e+00 : f32
    %cst_5 = arith.constant -1.000000e+30 : f32
    %7 = vector.broadcast %cst_4 : f32 to vector<1x24xf32>
    %8 = vector.broadcast %cst_5 : f32 to vector<1x24xf32>
    %9 = arith.select %6, %7, %8 : vector<1x24xi1>, vector<1x24xf32>
    %c0_6 = arith.constant 0 : index
    %c0_7 = arith.constant 0 : index
    %10 = vector.load %arg4[%c0_6, %c0_7] : memref<25x128xf32, #tpu.memory_space<vmem>>, vector<1x32xf32>
    %c1 = arith.constant 1 : index
    %c0_8 = arith.constant 0 : index
    %11 = vector.load %arg4[%c1, %c0_8] : memref<25x128xf32, #tpu.memory_space<vmem>>, vector<1x32xf32>
    %cst_9 = arith.constant dense<0.000000e+00> : vector<24xf32>
    %12 = vector.multi_reduction <add>, %3, %cst_9 [1] : vector<24x32xf32> to vector<24xf32>
    %13 = vector.shape_cast %12 : vector<24xf32> to vector<24x1xf32>
    %cst_10 = arith.constant 3.200000e+01 : f32
    %14 = vector.broadcast %cst_10 : f32 to vector<24x1xf32>
    %15 = arith.divf %13, %14 : vector<24x1xf32>
    %16 = vector.broadcast %15 : vector<24x1xf32> to vector<24x32xf32>
    %17 = arith.subf %3, %16 : vector<24x32xf32>
    %18 = arith.mulf %17, %17 : vector<24x32xf32>
    %cst_11 = arith.constant dense<0.000000e+00> : vector<24xf32>
    %19 = vector.multi_reduction <add>, %18, %cst_11 [1] : vector<24x32xf32> to vector<24xf32>
    %20 = vector.shape_cast %19 : vector<24xf32> to vector<24x1xf32>
    %cst_12 = arith.constant 3.200000e+01 : f32
    %21 = vector.broadcast %cst_12 : f32 to vector<24x1xf32>
    %22 = arith.divf %20, %21 : vector<24x1xf32>
    %cst_13 = arith.constant 9.99999997E-7 : f32
    %23 = vector.broadcast %cst_13 : f32 to vector<24x1xf32>
    %24 = arith.addf %22, %23 : vector<24x1xf32>
    %25 = math.rsqrt %24 : vector<24x1xf32>
    %26 = vector.broadcast %25 : vector<24x1xf32> to vector<24x32xf32>
    %27 = arith.mulf %17, %26 : vector<24x32xf32>
    %28 = vector.broadcast %10 : vector<1x32xf32> to vector<24x32xf32>
    %29 = arith.mulf %27, %28 : vector<24x32xf32>
    %30 = vector.broadcast %11 : vector<1x32xf32> to vector<24x32xf32>
    %31 = arith.addf %29, %30 : vector<24x32xf32>
    %c0_14 = arith.constant 0 : index
    %c0_15 = arith.constant 0 : index
    %32 = vector.load %arg3[%c0_14, %c0_15] : memref<544x128xf32, #tpu.memory_space<vmem>>, vector<32x96xf32>
    %cst_16 = arith.constant dense<0.000000e+00> : vector<24x96xf32>
    %33 = tpu.matmul %31, %32, %cst_16 {dimension_numbers = #tpu.dot_dimension_numbers<[1], [0], [0], [1], [0, 0, 1, 1], [], []>} : vector<24x32xf32>, vector<32x96xf32>, vector<24x96xf32> -> vector<24x96xf32>
    %c2 = arith.constant 2 : index
    %c0_17 = arith.constant 0 : index
    %34 = vector.load %arg4[%c2, %c0_17] : memref<25x128xf32, #tpu.memory_space<vmem>>, vector<1x96xf32>
    %35 = vector.broadcast %34 : vector<1x96xf32> to vector<24x96xf32>
    %36 = arith.addf %33, %35 : vector<24x96xf32>
    %37 = vector.extract_strided_slice %36 {offsets = [0, 0], sizes = [24, 8], strides = [1, 1]} : vector<24x96xf32> to vector<24x8xf32>
    %38 = vector.extract_strided_slice %36 {offsets = [0, 32], sizes = [24, 8], strides = [1, 1]} : vector<24x96xf32> to vector<24x8xf32>
    %39 = vector.extract_strided_slice %36 {offsets = [0, 64], sizes = [24, 8], strides = [1, 1]} : vector<24x96xf32> to vector<24x8xf32>
    %cst_18 = arith.constant dense<0.000000e+00> : vector<24x24xf32>
    %40 = tpu.matmul %37, %38, %cst_18 {dimension_numbers = #tpu.dot_dimension_numbers<[1], [1], [0], [0], [0, 0, 1, 0], [], []>} : vector<24x8xf32>, vector<24x8xf32>, vector<24x24xf32> -> vector<24x24xf32>
    %41 = vector.broadcast %9 : vector<1x24xf32> to vector<24x24xf32>
    %42 = arith.addf %40, %41 : vector<24x24xf32>
    %cst_19 = arith.constant dense<0xFF800000> : vector<24xf32>
    %43 = vector.multi_reduction <maximumf>, %42, %cst_19 [1] : vector<24x24xf32> to vector<24xf32>
    %44 = vector.shape_cast %43 : vector<24xf32> to vector<24x1xf32>
    %45 = vector.broadcast %44 : vector<24x1xf32> to vector<24x24xf32>
    %46 = arith.subf %42, %45 : vector<24x24xf32>
    %47 = math.exp %46 : vector<24x24xf32>
    %cst_20 = arith.constant dense<0.000000e+00> : vector<24xf32>
    %48 = vector.multi_reduction <add>, %47, %cst_20 [1] : vector<24x24xf32> to vector<24xf32>
    %49 = vector.shape_cast %48 : vector<24xf32> to vector<24x1xf32>
    %50 = tpu.reciprocal %49 {approx = true} : vector<24x1xf32> -> vector<24x1xf32>
    %51 = vector.broadcast %50 : vector<24x1xf32> to vector<24x24xf32>
    %52 = arith.mulf %47, %51 : vector<24x24xf32>
    %cst_21 = arith.constant dense<0.000000e+00> : vector<24x8xf32>
    %53 = tpu.matmul %52, %39, %cst_21 {dimension_numbers = #tpu.dot_dimension_numbers<[1], [0], [0], [1], [0, 0, 1, 1], [], []>} : vector<24x24xf32>, vector<24x8xf32>, vector<24x8xf32> -> vector<24x8xf32>
    %c32 = arith.constant 32 : index
    %c0_22 = arith.constant 0 : index
    %54 = vector.load %arg3[%c32, %c0_22] : memref<544x128xf32, #tpu.memory_space<vmem>>, vector<8x32xf32>
    %cst_23 = arith.constant dense<0.000000e+00> : vector<24x32xf32>
    %55 = tpu.matmul %53, %54, %cst_23 {dimension_numbers = #tpu.dot_dimension_numbers<[1], [0], [0], [1], [0, 0, 1, 1], [], []>} : vector<24x8xf32>, vector<8x32xf32>, vector<24x32xf32> -> vector<24x32xf32>
    %56 = vector.extract_strided_slice %36 {offsets = [0, 8], sizes = [24, 8], strides = [1, 1]} : vector<24x96xf32> to vector<24x8xf32>
    %57 = vector.extract_strided_slice %36 {offsets = [0, 40], sizes = [24, 8], strides = [1, 1]} : vector<24x96xf32> to vector<24x8xf32>
    %58 = vector.extract_strided_slice %36 {offsets = [0, 72], sizes = [24, 8], strides = [1, 1]} : vector<24x96xf32> to vector<24x8xf32>
    %cst_24 = arith.constant dense<0.000000e+00> : vector<24x24xf32>
    %59 = tpu.matmul %56, %57, %cst_24 {dimension_numbers = #tpu.dot_dimension_numbers<[1], [1], [0], [0], [0, 0, 1, 0], [], []>} : vector<24x8xf32>, vector<24x8xf32>, vector<24x24xf32> -> vector<24x24xf32>
    %60 = vector.broadcast %9 : vector<1x24xf32> to vector<24x24xf32>
    %61 = arith.addf %59, %60 : vector<24x24xf32>
    %cst_25 = arith.constant dense<0xFF800000> : vector<24xf32>
    %62 = vector.multi_reduction <maximumf>, %61, %cst_25 [1] : vector<24x24xf32> to vector<24xf32>
    %63 = vector.shape_cast %62 : vector<24xf32> to vector<24x1xf32>
    %64 = vector.broadcast %63 : vector<24x1xf32> to vector<24x24xf32>
    %65 = arith.subf %61, %64 : vector<24x24xf32>
    %66 = math.exp %65 : vector<24x24xf32>
    %cst_26 = arith.constant dense<0.000000e+00> : vector<24xf32>
    %67 = vector.multi_reduction <add>, %66, %cst_26 [1] : vector<24x24xf32> to vector<24xf32>
    %68 = vector.shape_cast %67 : vector<24xf32> to vector<24x1xf32>
    %69 = tpu.reciprocal %68 {approx = true} : vector<24x1xf32> -> vector<24x1xf32>
    %70 = vector.broadcast %69 : vector<24x1xf32> to vector<24x24xf32>
    %71 = arith.mulf %66, %70 : vector<24x24xf32>
    %cst_27 = arith.constant dense<0.000000e+00> : vector<24x8xf32>
    %72 = tpu.matmul %71, %58, %cst_27 {dimension_numbers = #tpu.dot_dimension_numbers<[1], [0], [0], [1], [0, 0, 1, 1], [], []>} : vector<24x24xf32>, vector<24x8xf32>, vector<24x8xf32> -> vector<24x8xf32>
    %c40 = arith.constant 40 : index
    %c0_28 = arith.constant 0 : index
    %73 = vector.load %arg3[%c40, %c0_28] : memref<544x128xf32, #tpu.memory_space<vmem>>, vector<8x32xf32>
    %cst_29 = arith.constant dense<0.000000e+00> : vector<24x32xf32>
    %74 = tpu.matmul %72, %73, %cst_29 {dimension_numbers = #tpu.dot_dimension_numbers<[1], [0], [0], [1], [0, 0, 1, 1], [], []>} : vector<24x8xf32>, vector<8x32xf32>, vector<24x32xf32> -> vector<24x32xf32>
    %75 = arith.addf %55, %74 : vector<24x32xf32>
    %76 = vector.extract_strided_slice %36 {offsets = [0, 16], sizes = [24, 8], strides = [1, 1]} : vector<24x96xf32> to vector<24x8xf32>
    %77 = vector.extract_strided_slice %36 {offsets = [0, 48], sizes = [24, 8], strides = [1, 1]} : vector<24x96xf32> to vector<24x8xf32>
    %78 = vector.extract_strided_slice %36 {offsets = [0, 80], sizes = [24, 8], strides = [1, 1]} : vector<24x96xf32> to vector<24x8xf32>
    %cst_30 = arith.constant dense<0.000000e+00> : vector<24x24xf32>
    %79 = tpu.matmul %76, %77, %cst_30 {dimension_numbers = #tpu.dot_dimension_numbers<[1], [1], [0], [0], [0, 0, 1, 0], [], []>} : vector<24x8xf32>, vector<24x8xf32>, vector<24x24xf32> -> vector<24x24xf32>
    %80 = vector.broadcast %9 : vector<1x24xf32> to vector<24x24xf32>
    %81 = arith.addf %79, %80 : vector<24x24xf32>
    %cst_31 = arith.constant dense<0xFF800000> : vector<24xf32>
    %82 = vector.multi_reduction <maximumf>, %81, %cst_31 [1] : vector<24x24xf32> to vector<24xf32>
    %83 = vector.shape_cast %82 : vector<24xf32> to vector<24x1xf32>
    %84 = vector.broadcast %83 : vector<24x1xf32> to vector<24x24xf32>
    %85 = arith.subf %81, %84 : vector<24x24xf32>
    %86 = math.exp %85 : vector<24x24xf32>
    %cst_32 = arith.constant dense<0.000000e+00> : vector<24xf32>
    %87 = vector.multi_reduction <add>, %86, %cst_32 [1] : vector<24x24xf32> to vector<24xf32>
    %88 = vector.shape_cast %87 : vector<24xf32> to vector<24x1xf32>
    %89 = tpu.reciprocal %88 {approx = true} : vector<24x1xf32> -> vector<24x1xf32>
    %90 = vector.broadcast %89 : vector<24x1xf32> to vector<24x24xf32>
    %91 = arith.mulf %86, %90 : vector<24x24xf32>
    %cst_33 = arith.constant dense<0.000000e+00> : vector<24x8xf32>
    %92 = tpu.matmul %91, %78, %cst_33 {dimension_numbers = #tpu.dot_dimension_numbers<[1], [0], [0], [1], [0, 0, 1, 1], [], []>} : vector<24x24xf32>, vector<24x8xf32>, vector<24x8xf32> -> vector<24x8xf32>
    %c48 = arith.constant 48 : index
    %c0_34 = arith.constant 0 : index
    %93 = vector.load %arg3[%c48, %c0_34] : memref<544x128xf32, #tpu.memory_space<vmem>>, vector<8x32xf32>
    %cst_35 = arith.constant dense<0.000000e+00> : vector<24x32xf32>
    %94 = tpu.matmul %92, %93, %cst_35 {dimension_numbers = #tpu.dot_dimension_numbers<[1], [0], [0], [1], [0, 0, 1, 1], [], []>} : vector<24x8xf32>, vector<8x32xf32>, vector<24x32xf32> -> vector<24x32xf32>
    %95 = arith.addf %75, %94 : vector<24x32xf32>
    %96 = vector.extract_strided_slice %36 {offsets = [0, 24], sizes = [24, 8], strides = [1, 1]} : vector<24x96xf32> to vector<24x8xf32>
    %97 = vector.extract_strided_slice %36 {offsets = [0, 56], sizes = [24, 8], strides = [1, 1]} : vector<24x96xf32> to vector<24x8xf32>
    %98 = vector.extract_strided_slice %36 {offsets = [0, 88], sizes = [24, 8], strides = [1, 1]} : vector<24x96xf32> to vector<24x8xf32>
    %cst_36 = arith.constant dense<0.000000e+00> : vector<24x24xf32>
    %99 = tpu.matmul %96, %97, %cst_36 {dimension_numbers = #tpu.dot_dimension_numbers<[1], [1], [0], [0], [0, 0, 1, 0], [], []>} : vector<24x8xf32>, vector<24x8xf32>, vector<24x24xf32> -> vector<24x24xf32>
    %100 = vector.broadcast %9 : vector<1x24xf32> to vector<24x24xf32>
    %101 = arith.addf %99, %100 : vector<24x24xf32>
    %cst_37 = arith.constant dense<0xFF800000> : vector<24xf32>
    %102 = vector.multi_reduction <maximumf>, %101, %cst_37 [1] : vector<24x24xf32> to vector<24xf32>
    %103 = vector.shape_cast %102 : vector<24xf32> to vector<24x1xf32>
    %104 = vector.broadcast %103 : vector<24x1xf32> to vector<24x24xf32>
    %105 = arith.subf %101, %104 : vector<24x24xf32>
    %106 = math.exp %105 : vector<24x24xf32>
    %cst_38 = arith.constant dense<0.000000e+00> : vector<24xf32>
    %107 = vector.multi_reduction <add>, %106, %cst_38 [1] : vector<24x24xf32> to vector<24xf32>
    %108 = vector.shape_cast %107 : vector<24xf32> to vector<24x1xf32>
    %109 = tpu.reciprocal %108 {approx = true} : vector<24x1xf32> -> vector<24x1xf32>
    %110 = vector.broadcast %109 : vector<24x1xf32> to vector<24x24xf32>
    %111 = arith.mulf %106, %110 : vector<24x24xf32>
    %cst_39 = arith.constant dense<0.000000e+00> : vector<24x8xf32>
    %112 = tpu.matmul %111, %98, %cst_39 {dimension_numbers = #tpu.dot_dimension_numbers<[1], [0], [0], [1], [0, 0, 1, 1], [], []>} : vector<24x24xf32>, vector<24x8xf32>, vector<24x8xf32> -> vector<24x8xf32>
    %c56 = arith.constant 56 : index
    %c0_40 = arith.constant 0 : index
    %113 = vector.load %arg3[%c56, %c0_40] : memref<544x128xf32, #tpu.memory_space<vmem>>, vector<8x32xf32>
    %cst_41 = arith.constant dense<0.000000e+00> : vector<24x32xf32>
    %114 = tpu.matmul %112, %113, %cst_41 {dimension_numbers = #tpu.dot_dimension_numbers<[1], [0], [0], [1], [0, 0, 1, 1], [], []>} : vector<24x8xf32>, vector<8x32xf32>, vector<24x32xf32> -> vector<24x32xf32>
    %115 = arith.addf %95, %114 : vector<24x32xf32>
    %116 = arith.addf %3, %115 : vector<24x32xf32>
    %c3 = arith.constant 3 : index
    %c0_42 = arith.constant 0 : index
    %117 = vector.load %arg4[%c3, %c0_42] : memref<25x128xf32, #tpu.memory_space<vmem>>, vector<1x32xf32>
    %118 = vector.broadcast %117 : vector<1x32xf32> to vector<24x32xf32>
    %119 = arith.addf %116, %118 : vector<24x32xf32>
    %c4 = arith.constant 4 : index
    %c0_43 = arith.constant 0 : index
    %120 = vector.load %arg4[%c4, %c0_43] : memref<25x128xf32, #tpu.memory_space<vmem>>, vector<1x32xf32>
    %c5 = arith.constant 5 : index
    %c0_44 = arith.constant 0 : index
    %121 = vector.load %arg4[%c5, %c0_44] : memref<25x128xf32, #tpu.memory_space<vmem>>, vector<1x32xf32>
    %cst_45 = arith.constant dense<0.000000e+00> : vector<24xf32>
    %122 = vector.multi_reduction <add>, %119, %cst_45 [1] : vector<24x32xf32> to vector<24xf32>
    %123 = vector.shape_cast %122 : vector<24xf32> to vector<24x1xf32>
    %cst_46 = arith.constant 3.200000e+01 : f32
    %124 = vector.broadcast %cst_46 : f32 to vector<24x1xf32>
    %125 = arith.divf %123, %124 : vector<24x1xf32>
    %126 = vector.broadcast %125 : vector<24x1xf32> to vector<24x32xf32>
    %127 = arith.subf %119, %126 : vector<24x32xf32>
    %128 = arith.mulf %127, %127 : vector<24x32xf32>
    %cst_47 = arith.constant dense<0.000000e+00> : vector<24xf32>
    %129 = vector.multi_reduction <add>, %128, %cst_47 [1] : vector<24x32xf32> to vector<24xf32>
    %130 = vector.shape_cast %129 : vector<24xf32> to vector<24x1xf32>
    %cst_48 = arith.constant 3.200000e+01 : f32
    %131 = vector.broadcast %cst_48 : f32 to vector<24x1xf32>
    %132 = arith.divf %130, %131 : vector<24x1xf32>
    %cst_49 = arith.constant 9.99999997E-7 : f32
    %133 = vector.broadcast %cst_49 : f32 to vector<24x1xf32>
    %134 = arith.addf %132, %133 : vector<24x1xf32>
    %135 = math.rsqrt %134 : vector<24x1xf32>
    %136 = vector.broadcast %135 : vector<24x1xf32> to vector<24x32xf32>
    %137 = arith.mulf %127, %136 : vector<24x32xf32>
    %138 = vector.broadcast %120 : vector<1x32xf32> to vector<24x32xf32>
    %139 = arith.mulf %137, %138 : vector<24x32xf32>
    %140 = vector.broadcast %121 : vector<1x32xf32> to vector<24x32xf32>
    %141 = arith.addf %139, %140 : vector<24x32xf32>
    %c64 = arith.constant 64 : index
    %c0_50 = arith.constant 0 : index
    %142 = vector.load %arg3[%c64, %c0_50] : memref<544x128xf32, #tpu.memory_space<vmem>>, vector<32x128xf32>
    %cst_51 = arith.constant dense<0.000000e+00> : vector<24x128xf32>
    %143 = tpu.matmul %141, %142, %cst_51 {dimension_numbers = #tpu.dot_dimension_numbers<[1], [0], [0], [1], [0, 0, 1, 1], [], []>} : vector<24x32xf32>, vector<32x128xf32>, vector<24x128xf32> -> vector<24x128xf32>
    %c6 = arith.constant 6 : index
    %c0_52 = arith.constant 0 : index
    %144 = vector.load %arg4[%c6, %c0_52] : memref<25x128xf32, #tpu.memory_space<vmem>>, vector<1x128xf32>
    %145 = vector.broadcast %144 : vector<1x128xf32> to vector<24x128xf32>
    %146 = arith.addf %143, %145 : vector<24x128xf32>
    %cst_53 = arith.constant 5.000000e-01 : f32
    %147 = vector.broadcast %cst_53 : f32 to vector<24x128xf32>
    %148 = arith.mulf %147, %146 : vector<24x128xf32>
    %cst_54 = arith.constant 4.471500e-02 : f32
    %149 = vector.broadcast %cst_54 : f32 to vector<24x128xf32>
    %150 = arith.mulf %149, %146 : vector<24x128xf32>
    %151 = arith.mulf %150, %146 : vector<24x128xf32>
    %152 = arith.mulf %151, %146 : vector<24x128xf32>
    %153 = arith.addf %146, %152 : vector<24x128xf32>
    %cst_55 = arith.constant 0.797884583 : f32
    %154 = vector.broadcast %cst_55 : f32 to vector<24x128xf32>
    %155 = arith.mulf %154, %153 : vector<24x128xf32>
    %156 = math.tanh %155 : vector<24x128xf32>
    %cst_56 = arith.constant 1.000000e+00 : f32
    %157 = vector.broadcast %cst_56 : f32 to vector<24x128xf32>
    %158 = arith.addf %157, %156 : vector<24x128xf32>
    %159 = arith.mulf %148, %158 : vector<24x128xf32>
    %c96 = arith.constant 96 : index
    %c0_57 = arith.constant 0 : index
    %160 = vector.load %arg3[%c96, %c0_57] : memref<544x128xf32, #tpu.memory_space<vmem>>, vector<128x32xf32>
    %cst_58 = arith.constant dense<0.000000e+00> : vector<24x32xf32>
    %161 = tpu.matmul %159, %160, %cst_58 {dimension_numbers = #tpu.dot_dimension_numbers<[1], [0], [0], [1], [0, 0, 1, 1], [], []>} : vector<24x128xf32>, vector<128x32xf32>, vector<24x32xf32> -> vector<24x32xf32>
    %c7 = arith.constant 7 : index
    %c0_59 = arith.constant 0 : index
    %162 = vector.load %arg4[%c7, %c0_59] : memref<25x128xf32, #tpu.memory_space<vmem>>, vector<1x32xf32>
    %163 = vector.broadcast %162 : vector<1x32xf32> to vector<24x32xf32>
    %164 = arith.addf %161, %163 : vector<24x32xf32>
    %165 = arith.addf %119, %164 : vector<24x32xf32>
    %c224 = arith.constant 224 : index
    %c0_60 = arith.constant 0 : index
    %166 = vector.load %arg3[%c224, %c0_60] : memref<544x128xf32, #tpu.memory_space<vmem>>, vector<32x16xf32>
    %cst_61 = arith.constant dense<0.000000e+00> : vector<24x16xf32>
    %167 = tpu.matmul %165, %166, %cst_61 {dimension_numbers = #tpu.dot_dimension_numbers<[1], [0], [0], [1], [0, 0, 1, 1], [], []>} : vector<24x32xf32>, vector<32x16xf32>, vector<24x16xf32> -> vector<24x16xf32>
    %c8 = arith.constant 8 : index
    %c0_62 = arith.constant 0 : index
    %168 = vector.load %arg4[%c8, %c0_62] : memref<25x128xf32, #tpu.memory_space<vmem>>, vector<1x16xf32>
    %169 = vector.broadcast %168 : vector<1x16xf32> to vector<24x16xf32>
    %170 = arith.addf %167, %169 : vector<24x16xf32>
    %cst_63 = arith.constant 5.000000e-01 : f32
    %171 = vector.broadcast %cst_63 : f32 to vector<24x16xf32>
    %172 = arith.mulf %171, %170 : vector<24x16xf32>
    %cst_64 = arith.constant 4.471500e-02 : f32
    %173 = vector.broadcast %cst_64 : f32 to vector<24x16xf32>
    %174 = arith.mulf %173, %170 : vector<24x16xf32>
    %175 = arith.mulf %174, %170 : vector<24x16xf32>
    %176 = arith.mulf %175, %170 : vector<24x16xf32>
    %177 = arith.addf %170, %176 : vector<24x16xf32>
    %cst_65 = arith.constant 0.797884583 : f32
    %178 = vector.broadcast %cst_65 : f32 to vector<24x16xf32>
    %179 = arith.mulf %178, %177 : vector<24x16xf32>
    %180 = math.tanh %179 : vector<24x16xf32>
    %cst_66 = arith.constant 1.000000e+00 : f32
    %181 = vector.broadcast %cst_66 : f32 to vector<24x16xf32>
    %182 = arith.addf %181, %180 : vector<24x16xf32>
    %183 = arith.mulf %172, %182 : vector<24x16xf32>
    %c256 = arith.constant 256 : index
    %c0_67 = arith.constant 0 : index
    %184 = vector.load %arg3[%c256, %c0_67] : memref<544x128xf32, #tpu.memory_space<vmem>>, vector<16x32xf32>
    %cst_68 = arith.constant dense<0.000000e+00> : vector<24x32xf32>
    %185 = tpu.matmul %183, %184, %cst_68 {dimension_numbers = #tpu.dot_dimension_numbers<[1], [0], [0], [1], [0, 0, 1, 1], [], []>} : vector<24x16xf32>, vector<16x32xf32>, vector<24x32xf32> -> vector<24x32xf32>
    %c9 = arith.constant 9 : index
    %c0_69 = arith.constant 0 : index
    %186 = vector.load %arg4[%c9, %c0_69] : memref<25x128xf32, #tpu.memory_space<vmem>>, vector<1x32xf32>
    %187 = vector.broadcast %186 : vector<1x32xf32> to vector<24x32xf32>
    %188 = arith.addf %185, %187 : vector<24x32xf32>
    %189 = arith.addf %165, %188 : vector<24x32xf32>
    %c10 = arith.constant 10 : index
    %c0_70 = arith.constant 0 : index
    %190 = vector.load %arg4[%c10, %c0_70] : memref<25x128xf32, #tpu.memory_space<vmem>>, vector<1x32xf32>
    %c11 = arith.constant 11 : index
    %c0_71 = arith.constant 0 : index
    %191 = vector.load %arg4[%c11, %c0_71] : memref<25x128xf32, #tpu.memory_space<vmem>>, vector<1x32xf32>
    %cst_72 = arith.constant dense<0.000000e+00> : vector<24xf32>
    %192 = vector.multi_reduction <add>, %189, %cst_72 [1] : vector<24x32xf32> to vector<24xf32>
    %193 = vector.shape_cast %192 : vector<24xf32> to vector<24x1xf32>
    %cst_73 = arith.constant 3.200000e+01 : f32
    %194 = vector.broadcast %cst_73 : f32 to vector<24x1xf32>
    %195 = arith.divf %193, %194 : vector<24x1xf32>
    %196 = vector.broadcast %195 : vector<24x1xf32> to vector<24x32xf32>
    %197 = arith.subf %189, %196 : vector<24x32xf32>
    %198 = arith.mulf %197, %197 : vector<24x32xf32>
    %cst_74 = arith.constant dense<0.000000e+00> : vector<24xf32>
    %199 = vector.multi_reduction <add>, %198, %cst_74 [1] : vector<24x32xf32> to vector<24xf32>
    %200 = vector.shape_cast %199 : vector<24xf32> to vector<24x1xf32>
    %cst_75 = arith.constant 3.200000e+01 : f32
    %201 = vector.broadcast %cst_75 : f32 to vector<24x1xf32>
    %202 = arith.divf %200, %201 : vector<24x1xf32>
    %cst_76 = arith.constant 9.99999974E-6 : f32
    %203 = vector.broadcast %cst_76 : f32 to vector<24x1xf32>
    %204 = arith.addf %202, %203 : vector<24x1xf32>
    %205 = math.rsqrt %204 : vector<24x1xf32>
    %206 = vector.broadcast %205 : vector<24x1xf32> to vector<24x32xf32>
    %207 = arith.mulf %197, %206 : vector<24x32xf32>
    %208 = vector.broadcast %190 : vector<1x32xf32> to vector<24x32xf32>
    %209 = arith.mulf %207, %208 : vector<24x32xf32>
    %210 = vector.broadcast %191 : vector<1x32xf32> to vector<24x32xf32>
    %211 = arith.addf %209, %210 : vector<24x32xf32>
    %c12 = arith.constant 12 : index
    %c0_77 = arith.constant 0 : index
    %212 = vector.load %arg4[%c12, %c0_77] : memref<25x128xf32, #tpu.memory_space<vmem>>, vector<1x32xf32>
    %c13 = arith.constant 13 : index
    %c0_78 = arith.constant 0 : index
    %213 = vector.load %arg4[%c13, %c0_78] : memref<25x128xf32, #tpu.memory_space<vmem>>, vector<1x32xf32>
    %cst_79 = arith.constant dense<0.000000e+00> : vector<24xf32>
    %214 = vector.multi_reduction <add>, %211, %cst_79 [1] : vector<24x32xf32> to vector<24xf32>
    %215 = vector.shape_cast %214 : vector<24xf32> to vector<24x1xf32>
    %cst_80 = arith.constant 3.200000e+01 : f32
    %216 = vector.broadcast %cst_80 : f32 to vector<24x1xf32>
    %217 = arith.divf %215, %216 : vector<24x1xf32>
    %218 = vector.broadcast %217 : vector<24x1xf32> to vector<24x32xf32>
    %219 = arith.subf %211, %218 : vector<24x32xf32>
    %220 = arith.mulf %219, %219 : vector<24x32xf32>
    %cst_81 = arith.constant dense<0.000000e+00> : vector<24xf32>
    %221 = vector.multi_reduction <add>, %220, %cst_81 [1] : vector<24x32xf32> to vector<24xf32>
    %222 = vector.shape_cast %221 : vector<24xf32> to vector<24x1xf32>
    %cst_82 = arith.constant 3.200000e+01 : f32
    %223 = vector.broadcast %cst_82 : f32 to vector<24x1xf32>
    %224 = arith.divf %222, %223 : vector<24x1xf32>
    %cst_83 = arith.constant 9.99999997E-7 : f32
    %225 = vector.broadcast %cst_83 : f32 to vector<24x1xf32>
    %226 = arith.addf %224, %225 : vector<24x1xf32>
    %227 = math.rsqrt %226 : vector<24x1xf32>
    %228 = vector.broadcast %227 : vector<24x1xf32> to vector<24x32xf32>
    %229 = arith.mulf %219, %228 : vector<24x32xf32>
    %230 = vector.broadcast %212 : vector<1x32xf32> to vector<24x32xf32>
    %231 = arith.mulf %229, %230 : vector<24x32xf32>
    %232 = vector.broadcast %213 : vector<1x32xf32> to vector<24x32xf32>
    %233 = arith.addf %231, %232 : vector<24x32xf32>
    %c272 = arith.constant 272 : index
    %c0_84 = arith.constant 0 : index
    %234 = vector.load %arg3[%c272, %c0_84] : memref<544x128xf32, #tpu.memory_space<vmem>>, vector<32x96xf32>
    %cst_85 = arith.constant dense<0.000000e+00> : vector<24x96xf32>
    %235 = tpu.matmul %233, %234, %cst_85 {dimension_numbers = #tpu.dot_dimension_numbers<[1], [0], [0], [1], [0, 0, 1, 1], [], []>} : vector<24x32xf32>, vector<32x96xf32>, vector<24x96xf32> -> vector<24x96xf32>
    %c14 = arith.constant 14 : index
    %c0_86 = arith.constant 0 : index
    %236 = vector.load %arg4[%c14, %c0_86] : memref<25x128xf32, #tpu.memory_space<vmem>>, vector<1x96xf32>
    %237 = vector.broadcast %236 : vector<1x96xf32> to vector<24x96xf32>
    %238 = arith.addf %235, %237 : vector<24x96xf32>
    %239 = vector.extract_strided_slice %238 {offsets = [0, 0], sizes = [24, 8], strides = [1, 1]} : vector<24x96xf32> to vector<24x8xf32>
    %240 = vector.extract_strided_slice %238 {offsets = [0, 32], sizes = [24, 8], strides = [1, 1]} : vector<24x96xf32> to vector<24x8xf32>
    %241 = vector.extract_strided_slice %238 {offsets = [0, 64], sizes = [24, 8], strides = [1, 1]} : vector<24x96xf32> to vector<24x8xf32>
    %cst_87 = arith.constant dense<0.000000e+00> : vector<24x24xf32>
    %242 = tpu.matmul %239, %240, %cst_87 {dimension_numbers = #tpu.dot_dimension_numbers<[1], [1], [0], [0], [0, 0, 1, 0], [], []>} : vector<24x8xf32>, vector<24x8xf32>, vector<24x24xf32> -> vector<24x24xf32>
    %243 = vector.broadcast %9 : vector<1x24xf32> to vector<24x24xf32>
    %244 = arith.addf %242, %243 : vector<24x24xf32>
    %cst_88 = arith.constant dense<0xFF800000> : vector<24xf32>
    %245 = vector.multi_reduction <maximumf>, %244, %cst_88 [1] : vector<24x24xf32> to vector<24xf32>
    %246 = vector.shape_cast %245 : vector<24xf32> to vector<24x1xf32>
    %247 = vector.broadcast %246 : vector<24x1xf32> to vector<24x24xf32>
    %248 = arith.subf %244, %247 : vector<24x24xf32>
    %249 = math.exp %248 : vector<24x24xf32>
    %cst_89 = arith.constant dense<0.000000e+00> : vector<24xf32>
    %250 = vector.multi_reduction <add>, %249, %cst_89 [1] : vector<24x24xf32> to vector<24xf32>
    %251 = vector.shape_cast %250 : vector<24xf32> to vector<24x1xf32>
    %252 = tpu.reciprocal %251 {approx = true} : vector<24x1xf32> -> vector<24x1xf32>
    %253 = vector.broadcast %252 : vector<24x1xf32> to vector<24x24xf32>
    %254 = arith.mulf %249, %253 : vector<24x24xf32>
    %cst_90 = arith.constant dense<0.000000e+00> : vector<24x8xf32>
    %255 = tpu.matmul %254, %241, %cst_90 {dimension_numbers = #tpu.dot_dimension_numbers<[1], [0], [0], [1], [0, 0, 1, 1], [], []>} : vector<24x24xf32>, vector<24x8xf32>, vector<24x8xf32> -> vector<24x8xf32>
    %c304 = arith.constant 304 : index
    %c0_91 = arith.constant 0 : index
    %256 = vector.load %arg3[%c304, %c0_91] : memref<544x128xf32, #tpu.memory_space<vmem>>, vector<8x32xf32>
    %cst_92 = arith.constant dense<0.000000e+00> : vector<24x32xf32>
    %257 = tpu.matmul %255, %256, %cst_92 {dimension_numbers = #tpu.dot_dimension_numbers<[1], [0], [0], [1], [0, 0, 1, 1], [], []>} : vector<24x8xf32>, vector<8x32xf32>, vector<24x32xf32> -> vector<24x32xf32>
    %258 = vector.extract_strided_slice %238 {offsets = [0, 8], sizes = [24, 8], strides = [1, 1]} : vector<24x96xf32> to vector<24x8xf32>
    %259 = vector.extract_strided_slice %238 {offsets = [0, 40], sizes = [24, 8], strides = [1, 1]} : vector<24x96xf32> to vector<24x8xf32>
    %260 = vector.extract_strided_slice %238 {offsets = [0, 72], sizes = [24, 8], strides = [1, 1]} : vector<24x96xf32> to vector<24x8xf32>
    %cst_93 = arith.constant dense<0.000000e+00> : vector<24x24xf32>
    %261 = tpu.matmul %258, %259, %cst_93 {dimension_numbers = #tpu.dot_dimension_numbers<[1], [1], [0], [0], [0, 0, 1, 0], [], []>} : vector<24x8xf32>, vector<24x8xf32>, vector<24x24xf32> -> vector<24x24xf32>
    %262 = vector.broadcast %9 : vector<1x24xf32> to vector<24x24xf32>
    %263 = arith.addf %261, %262 : vector<24x24xf32>
    %cst_94 = arith.constant dense<0xFF800000> : vector<24xf32>
    %264 = vector.multi_reduction <maximumf>, %263, %cst_94 [1] : vector<24x24xf32> to vector<24xf32>
    %265 = vector.shape_cast %264 : vector<24xf32> to vector<24x1xf32>
    %266 = vector.broadcast %265 : vector<24x1xf32> to vector<24x24xf32>
    %267 = arith.subf %263, %266 : vector<24x24xf32>
    %268 = math.exp %267 : vector<24x24xf32>
    %cst_95 = arith.constant dense<0.000000e+00> : vector<24xf32>
    %269 = vector.multi_reduction <add>, %268, %cst_95 [1] : vector<24x24xf32> to vector<24xf32>
    %270 = vector.shape_cast %269 : vector<24xf32> to vector<24x1xf32>
    %271 = tpu.reciprocal %270 {approx = true} : vector<24x1xf32> -> vector<24x1xf32>
    %272 = vector.broadcast %271 : vector<24x1xf32> to vector<24x24xf32>
    %273 = arith.mulf %268, %272 : vector<24x24xf32>
    %cst_96 = arith.constant dense<0.000000e+00> : vector<24x8xf32>
    %274 = tpu.matmul %273, %260, %cst_96 {dimension_numbers = #tpu.dot_dimension_numbers<[1], [0], [0], [1], [0, 0, 1, 1], [], []>} : vector<24x24xf32>, vector<24x8xf32>, vector<24x8xf32> -> vector<24x8xf32>
    %c312 = arith.constant 312 : index
    %c0_97 = arith.constant 0 : index
    %275 = vector.load %arg3[%c312, %c0_97] : memref<544x128xf32, #tpu.memory_space<vmem>>, vector<8x32xf32>
    %cst_98 = arith.constant dense<0.000000e+00> : vector<24x32xf32>
    %276 = tpu.matmul %274, %275, %cst_98 {dimension_numbers = #tpu.dot_dimension_numbers<[1], [0], [0], [1], [0, 0, 1, 1], [], []>} : vector<24x8xf32>, vector<8x32xf32>, vector<24x32xf32> -> vector<24x32xf32>
    %277 = arith.addf %257, %276 : vector<24x32xf32>
    %278 = vector.extract_strided_slice %238 {offsets = [0, 16], sizes = [24, 8], strides = [1, 1]} : vector<24x96xf32> to vector<24x8xf32>
    %279 = vector.extract_strided_slice %238 {offsets = [0, 48], sizes = [24, 8], strides = [1, 1]} : vector<24x96xf32> to vector<24x8xf32>
    %280 = vector.extract_strided_slice %238 {offsets = [0, 80], sizes = [24, 8], strides = [1, 1]} : vector<24x96xf32> to vector<24x8xf32>
    %cst_99 = arith.constant dense<0.000000e+00> : vector<24x24xf32>
    %281 = tpu.matmul %278, %279, %cst_99 {dimension_numbers = #tpu.dot_dimension_numbers<[1], [1], [0], [0], [0, 0, 1, 0], [], []>} : vector<24x8xf32>, vector<24x8xf32>, vector<24x24xf32> -> vector<24x24xf32>
    %282 = vector.broadcast %9 : vector<1x24xf32> to vector<24x24xf32>
    %283 = arith.addf %281, %282 : vector<24x24xf32>
    %cst_100 = arith.constant dense<0xFF800000> : vector<24xf32>
    %284 = vector.multi_reduction <maximumf>, %283, %cst_100 [1] : vector<24x24xf32> to vector<24xf32>
    %285 = vector.shape_cast %284 : vector<24xf32> to vector<24x1xf32>
    %286 = vector.broadcast %285 : vector<24x1xf32> to vector<24x24xf32>
    %287 = arith.subf %283, %286 : vector<24x24xf32>
    %288 = math.exp %287 : vector<24x24xf32>
    %cst_101 = arith.constant dense<0.000000e+00> : vector<24xf32>
    %289 = vector.multi_reduction <add>, %288, %cst_101 [1] : vector<24x24xf32> to vector<24xf32>
    %290 = vector.shape_cast %289 : vector<24xf32> to vector<24x1xf32>
    %291 = tpu.reciprocal %290 {approx = true} : vector<24x1xf32> -> vector<24x1xf32>
    %292 = vector.broadcast %291 : vector<24x1xf32> to vector<24x24xf32>
    %293 = arith.mulf %288, %292 : vector<24x24xf32>
    %cst_102 = arith.constant dense<0.000000e+00> : vector<24x8xf32>
    %294 = tpu.matmul %293, %280, %cst_102 {dimension_numbers = #tpu.dot_dimension_numbers<[1], [0], [0], [1], [0, 0, 1, 1], [], []>} : vector<24x24xf32>, vector<24x8xf32>, vector<24x8xf32> -> vector<24x8xf32>
    %c320 = arith.constant 320 : index
    %c0_103 = arith.constant 0 : index
    %295 = vector.load %arg3[%c320, %c0_103] : memref<544x128xf32, #tpu.memory_space<vmem>>, vector<8x32xf32>
    %cst_104 = arith.constant dense<0.000000e+00> : vector<24x32xf32>
    %296 = tpu.matmul %294, %295, %cst_104 {dimension_numbers = #tpu.dot_dimension_numbers<[1], [0], [0], [1], [0, 0, 1, 1], [], []>} : vector<24x8xf32>, vector<8x32xf32>, vector<24x32xf32> -> vector<24x32xf32>
    %297 = arith.addf %277, %296 : vector<24x32xf32>
    %298 = vector.extract_strided_slice %238 {offsets = [0, 24], sizes = [24, 8], strides = [1, 1]} : vector<24x96xf32> to vector<24x8xf32>
    %299 = vector.extract_strided_slice %238 {offsets = [0, 56], sizes = [24, 8], strides = [1, 1]} : vector<24x96xf32> to vector<24x8xf32>
    %300 = vector.extract_strided_slice %238 {offsets = [0, 88], sizes = [24, 8], strides = [1, 1]} : vector<24x96xf32> to vector<24x8xf32>
    %cst_105 = arith.constant dense<0.000000e+00> : vector<24x24xf32>
    %301 = tpu.matmul %298, %299, %cst_105 {dimension_numbers = #tpu.dot_dimension_numbers<[1], [1], [0], [0], [0, 0, 1, 0], [], []>} : vector<24x8xf32>, vector<24x8xf32>, vector<24x24xf32> -> vector<24x24xf32>
    %302 = vector.broadcast %9 : vector<1x24xf32> to vector<24x24xf32>
    %303 = arith.addf %301, %302 : vector<24x24xf32>
    %cst_106 = arith.constant dense<0xFF800000> : vector<24xf32>
    %304 = vector.multi_reduction <maximumf>, %303, %cst_106 [1] : vector<24x24xf32> to vector<24xf32>
    %305 = vector.shape_cast %304 : vector<24xf32> to vector<24x1xf32>
    %306 = vector.broadcast %305 : vector<24x1xf32> to vector<24x24xf32>
    %307 = arith.subf %303, %306 : vector<24x24xf32>
    %308 = math.exp %307 : vector<24x24xf32>
    %cst_107 = arith.constant dense<0.000000e+00> : vector<24xf32>
    %309 = vector.multi_reduction <add>, %308, %cst_107 [1] : vector<24x24xf32> to vector<24xf32>
    %310 = vector.shape_cast %309 : vector<24xf32> to vector<24x1xf32>
    %311 = tpu.reciprocal %310 {approx = true} : vector<24x1xf32> -> vector<24x1xf32>
    %312 = vector.broadcast %311 : vector<24x1xf32> to vector<24x24xf32>
    %313 = arith.mulf %308, %312 : vector<24x24xf32>
    %cst_108 = arith.constant dense<0.000000e+00> : vector<24x8xf32>
    %314 = tpu.matmul %313, %300, %cst_108 {dimension_numbers = #tpu.dot_dimension_numbers<[1], [0], [0], [1], [0, 0, 1, 1], [], []>} : vector<24x24xf32>, vector<24x8xf32>, vector<24x8xf32> -> vector<24x8xf32>
    %c328 = arith.constant 328 : index
    %c0_109 = arith.constant 0 : index
    %315 = vector.load %arg3[%c328, %c0_109] : memref<544x128xf32, #tpu.memory_space<vmem>>, vector<8x32xf32>
    %cst_110 = arith.constant dense<0.000000e+00> : vector<24x32xf32>
    %316 = tpu.matmul %314, %315, %cst_110 {dimension_numbers = #tpu.dot_dimension_numbers<[1], [0], [0], [1], [0, 0, 1, 1], [], []>} : vector<24x8xf32>, vector<8x32xf32>, vector<24x32xf32> -> vector<24x32xf32>
    %317 = arith.addf %297, %316 : vector<24x32xf32>
    %318 = arith.addf %211, %317 : vector<24x32xf32>
    %c15 = arith.constant 15 : index
    %c0_111 = arith.constant 0 : index
    %319 = vector.load %arg4[%c15, %c0_111] : memref<25x128xf32, #tpu.memory_space<vmem>>, vector<1x32xf32>
    %320 = vector.broadcast %319 : vector<1x32xf32> to vector<24x32xf32>
    %321 = arith.addf %318, %320 : vector<24x32xf32>
    %c16 = arith.constant 16 : index
    %c0_112 = arith.constant 0 : index
    %322 = vector.load %arg4[%c16, %c0_112] : memref<25x128xf32, #tpu.memory_space<vmem>>, vector<1x32xf32>
    %c17 = arith.constant 17 : index
    %c0_113 = arith.constant 0 : index
    %323 = vector.load %arg4[%c17, %c0_113] : memref<25x128xf32, #tpu.memory_space<vmem>>, vector<1x32xf32>
    %cst_114 = arith.constant dense<0.000000e+00> : vector<24xf32>
    %324 = vector.multi_reduction <add>, %321, %cst_114 [1] : vector<24x32xf32> to vector<24xf32>
    %325 = vector.shape_cast %324 : vector<24xf32> to vector<24x1xf32>
    %cst_115 = arith.constant 3.200000e+01 : f32
    %326 = vector.broadcast %cst_115 : f32 to vector<24x1xf32>
    %327 = arith.divf %325, %326 : vector<24x1xf32>
    %328 = vector.broadcast %327 : vector<24x1xf32> to vector<24x32xf32>
    %329 = arith.subf %321, %328 : vector<24x32xf32>
    %330 = arith.mulf %329, %329 : vector<24x32xf32>
    %cst_116 = arith.constant dense<0.000000e+00> : vector<24xf32>
    %331 = vector.multi_reduction <add>, %330, %cst_116 [1] : vector<24x32xf32> to vector<24xf32>
    %332 = vector.shape_cast %331 : vector<24xf32> to vector<24x1xf32>
    %cst_117 = arith.constant 3.200000e+01 : f32
    %333 = vector.broadcast %cst_117 : f32 to vector<24x1xf32>
    %334 = arith.divf %332, %333 : vector<24x1xf32>
    %cst_118 = arith.constant 9.99999997E-7 : f32
    %335 = vector.broadcast %cst_118 : f32 to vector<24x1xf32>
    %336 = arith.addf %334, %335 : vector<24x1xf32>
    %337 = math.rsqrt %336 : vector<24x1xf32>
    %338 = vector.broadcast %337 : vector<24x1xf32> to vector<24x32xf32>
    %339 = arith.mulf %329, %338 : vector<24x32xf32>
    %340 = vector.broadcast %322 : vector<1x32xf32> to vector<24x32xf32>
    %341 = arith.mulf %339, %340 : vector<24x32xf32>
    %342 = vector.broadcast %323 : vector<1x32xf32> to vector<24x32xf32>
    %343 = arith.addf %341, %342 : vector<24x32xf32>
    %c336 = arith.constant 336 : index
    %c0_119 = arith.constant 0 : index
    %344 = vector.load %arg3[%c336, %c0_119] : memref<544x128xf32, #tpu.memory_space<vmem>>, vector<32x128xf32>
    %cst_120 = arith.constant dense<0.000000e+00> : vector<24x128xf32>
    %345 = tpu.matmul %343, %344, %cst_120 {dimension_numbers = #tpu.dot_dimension_numbers<[1], [0], [0], [1], [0, 0, 1, 1], [], []>} : vector<24x32xf32>, vector<32x128xf32>, vector<24x128xf32> -> vector<24x128xf32>
    %c18 = arith.constant 18 : index
    %c0_121 = arith.constant 0 : index
    %346 = vector.load %arg4[%c18, %c0_121] : memref<25x128xf32, #tpu.memory_space<vmem>>, vector<1x128xf32>
    %347 = vector.broadcast %346 : vector<1x128xf32> to vector<24x128xf32>
    %348 = arith.addf %345, %347 : vector<24x128xf32>
    %cst_122 = arith.constant 5.000000e-01 : f32
    %349 = vector.broadcast %cst_122 : f32 to vector<24x128xf32>
    %350 = arith.mulf %349, %348 : vector<24x128xf32>
    %cst_123 = arith.constant 4.471500e-02 : f32
    %351 = vector.broadcast %cst_123 : f32 to vector<24x128xf32>
    %352 = arith.mulf %351, %348 : vector<24x128xf32>
    %353 = arith.mulf %352, %348 : vector<24x128xf32>
    %354 = arith.mulf %353, %348 : vector<24x128xf32>
    %355 = arith.addf %348, %354 : vector<24x128xf32>
    %cst_124 = arith.constant 0.797884583 : f32
    %356 = vector.broadcast %cst_124 : f32 to vector<24x128xf32>
    %357 = arith.mulf %356, %355 : vector<24x128xf32>
    %358 = math.tanh %357 : vector<24x128xf32>
    %cst_125 = arith.constant 1.000000e+00 : f32
    %359 = vector.broadcast %cst_125 : f32 to vector<24x128xf32>
    %360 = arith.addf %359, %358 : vector<24x128xf32>
    %361 = arith.mulf %350, %360 : vector<24x128xf32>
    %c368 = arith.constant 368 : index
    %c0_126 = arith.constant 0 : index
    %362 = vector.load %arg3[%c368, %c0_126] : memref<544x128xf32, #tpu.memory_space<vmem>>, vector<128x32xf32>
    %cst_127 = arith.constant dense<0.000000e+00> : vector<24x32xf32>
    %363 = tpu.matmul %361, %362, %cst_127 {dimension_numbers = #tpu.dot_dimension_numbers<[1], [0], [0], [1], [0, 0, 1, 1], [], []>} : vector<24x128xf32>, vector<128x32xf32>, vector<24x32xf32> -> vector<24x32xf32>
    %c19 = arith.constant 19 : index
    %c0_128 = arith.constant 0 : index
    %364 = vector.load %arg4[%c19, %c0_128] : memref<25x128xf32, #tpu.memory_space<vmem>>, vector<1x32xf32>
    %365 = vector.broadcast %364 : vector<1x32xf32> to vector<24x32xf32>
    %366 = arith.addf %363, %365 : vector<24x32xf32>
    %367 = arith.addf %321, %366 : vector<24x32xf32>
    %c496 = arith.constant 496 : index
    %c0_129 = arith.constant 0 : index
    %368 = vector.load %arg3[%c496, %c0_129] : memref<544x128xf32, #tpu.memory_space<vmem>>, vector<32x16xf32>
    %cst_130 = arith.constant dense<0.000000e+00> : vector<24x16xf32>
    %369 = tpu.matmul %367, %368, %cst_130 {dimension_numbers = #tpu.dot_dimension_numbers<[1], [0], [0], [1], [0, 0, 1, 1], [], []>} : vector<24x32xf32>, vector<32x16xf32>, vector<24x16xf32> -> vector<24x16xf32>
    %c20 = arith.constant 20 : index
    %c0_131 = arith.constant 0 : index
    %370 = vector.load %arg4[%c20, %c0_131] : memref<25x128xf32, #tpu.memory_space<vmem>>, vector<1x16xf32>
    %371 = vector.broadcast %370 : vector<1x16xf32> to vector<24x16xf32>
    %372 = arith.addf %369, %371 : vector<24x16xf32>
    %cst_132 = arith.constant 5.000000e-01 : f32
    %373 = vector.broadcast %cst_132 : f32 to vector<24x16xf32>
    %374 = arith.mulf %373, %372 : vector<24x16xf32>
    %cst_133 = arith.constant 4.471500e-02 : f32
    %375 = vector.broadcast %cst_133 : f32 to vector<24x16xf32>
    %376 = arith.mulf %375, %372 : vector<24x16xf32>
    %377 = arith.mulf %376, %372 : vector<24x16xf32>
    %378 = arith.mulf %377, %372 : vector<24x16xf32>
    %379 = arith.addf %372, %378 : vector<24x16xf32>
    %cst_134 = arith.constant 0.797884583 : f32
    %380 = vector.broadcast %cst_134 : f32 to vector<24x16xf32>
    %381 = arith.mulf %380, %379 : vector<24x16xf32>
    %382 = math.tanh %381 : vector<24x16xf32>
    %cst_135 = arith.constant 1.000000e+00 : f32
    %383 = vector.broadcast %cst_135 : f32 to vector<24x16xf32>
    %384 = arith.addf %383, %382 : vector<24x16xf32>
    %385 = arith.mulf %374, %384 : vector<24x16xf32>
    %c528 = arith.constant 528 : index
    %c0_136 = arith.constant 0 : index
    %386 = vector.load %arg3[%c528, %c0_136] : memref<544x128xf32, #tpu.memory_space<vmem>>, vector<16x32xf32>
    %cst_137 = arith.constant dense<0.000000e+00> : vector<24x32xf32>
    %387 = tpu.matmul %385, %386, %cst_137 {dimension_numbers = #tpu.dot_dimension_numbers<[1], [0], [0], [1], [0, 0, 1, 1], [], []>} : vector<24x16xf32>, vector<16x32xf32>, vector<24x32xf32> -> vector<24x32xf32>
    %c21 = arith.constant 21 : index
    %c0_138 = arith.constant 0 : index
    %388 = vector.load %arg4[%c21, %c0_138] : memref<25x128xf32, #tpu.memory_space<vmem>>, vector<1x32xf32>
    %389 = vector.broadcast %388 : vector<1x32xf32> to vector<24x32xf32>
    %390 = arith.addf %387, %389 : vector<24x32xf32>
    %391 = arith.addf %367, %390 : vector<24x32xf32>
    %c22 = arith.constant 22 : index
    %c0_139 = arith.constant 0 : index
    %392 = vector.load %arg4[%c22, %c0_139] : memref<25x128xf32, #tpu.memory_space<vmem>>, vector<1x32xf32>
    %c23 = arith.constant 23 : index
    %c0_140 = arith.constant 0 : index
    %393 = vector.load %arg4[%c23, %c0_140] : memref<25x128xf32, #tpu.memory_space<vmem>>, vector<1x32xf32>
    %cst_141 = arith.constant dense<0.000000e+00> : vector<24xf32>
    %394 = vector.multi_reduction <add>, %391, %cst_141 [1] : vector<24x32xf32> to vector<24xf32>
    %395 = vector.shape_cast %394 : vector<24xf32> to vector<24x1xf32>
    %cst_142 = arith.constant 3.200000e+01 : f32
    %396 = vector.broadcast %cst_142 : f32 to vector<24x1xf32>
    %397 = arith.divf %395, %396 : vector<24x1xf32>
    %398 = vector.broadcast %397 : vector<24x1xf32> to vector<24x32xf32>
    %399 = arith.subf %391, %398 : vector<24x32xf32>
    %400 = arith.mulf %399, %399 : vector<24x32xf32>
    %cst_143 = arith.constant dense<0.000000e+00> : vector<24xf32>
    %401 = vector.multi_reduction <add>, %400, %cst_143 [1] : vector<24x32xf32> to vector<24xf32>
    %402 = vector.shape_cast %401 : vector<24xf32> to vector<24x1xf32>
    %cst_144 = arith.constant 3.200000e+01 : f32
    %403 = vector.broadcast %cst_144 : f32 to vector<24x1xf32>
    %404 = arith.divf %402, %403 : vector<24x1xf32>
    %cst_145 = arith.constant 9.99999974E-6 : f32
    %405 = vector.broadcast %cst_145 : f32 to vector<24x1xf32>
    %406 = arith.addf %404, %405 : vector<24x1xf32>
    %407 = math.rsqrt %406 : vector<24x1xf32>
    %408 = vector.broadcast %407 : vector<24x1xf32> to vector<24x32xf32>
    %409 = arith.mulf %399, %408 : vector<24x32xf32>
    %410 = vector.broadcast %392 : vector<1x32xf32> to vector<24x32xf32>
    %411 = arith.mulf %409, %410 : vector<24x32xf32>
    %412 = vector.broadcast %393 : vector<1x32xf32> to vector<24x32xf32>
    %413 = arith.addf %411, %412 : vector<24x32xf32>
    %414 = vector.extract_strided_slice %413 {offsets = [0, 0], sizes = [8, 32], strides = [1, 1]} : vector<24x32xf32> to vector<8x32xf32>
    %c0_146 = arith.constant 0 : index
    %c0_147 = arith.constant 0 : index
    %415 = vector.load %arg5[%c0_146, %c0_147] : memref<32x128xf32, #tpu.memory_space<vmem>>, vector<32x128xf32>
    %cst_148 = arith.constant dense<0.000000e+00> : vector<8x128xf32>
    %416 = tpu.matmul %414, %415, %cst_148 {dimension_numbers = #tpu.dot_dimension_numbers<[1], [0], [0], [1], [0, 0, 1, 1], [], []>} : vector<8x32xf32>, vector<32x128xf32>, vector<8x128xf32> -> vector<8x128xf32>
    %c24 = arith.constant 24 : index
    %c0_149 = arith.constant 0 : index
    %417 = vector.load %arg4[%c24, %c0_149] : memref<25x128xf32, #tpu.memory_space<vmem>>, vector<1x128xf32>
    %418 = vector.broadcast %417 : vector<1x128xf32> to vector<8x128xf32>
    %419 = arith.addf %416, %418 : vector<8x128xf32>
    %c0_150 = arith.constant 0 : index
    %c0_151 = arith.constant 0 : index
    %c0_152 = arith.constant 0 : index
    %420 = vector.load %arg6[%c0_150, %c0_151, %c0_152] : memref<1x8x128xf32, #tpu.memory_space<vmem>>, vector<1x8x128xf32>
    %421 = vector.shape_cast %420 : vector<1x8x128xf32> to vector<8x128xf32>
    %422 = vector.shape_cast %419 : vector<8x128xf32> to vector<1x8x128xf32>
    tpu.vector_store %arg6[%c0_150, %c0_151, %c0_152], %422 {strides = array<i32>} : memref<1x8x128xf32, #tpu.memory_space<vmem>>, vector<1x8x128xf32>,
    return
  }
  func.func @transform_0(%arg0: i32) -> (i32, i32, i32) {
    %c0_i32 = arith.constant 0 : i32
    %c0_i32_0 = arith.constant 0 : i32
    %c0_i32_1 = arith.constant 0 : i32
    return %arg0, %c0_i32, %c0_i32_0 : i32, i32, i32
  }
  func.func @transform_1(%arg0: i32) -> (i32, i32) {
    %c0_i32 = arith.constant 0 : i32
    %c0_i32_0 = arith.constant 0 : i32
    %c0_i32_1 = arith.constant 0 : i32
    return %c0_i32, %c0_i32_0 : i32, i32
  }
  func.func @transform_2(%arg0: i32) -> (i32, i32) {
    %c0_i32 = arith.constant 0 : i32
    %c0_i32_0 = arith.constant 0 : i32
    %c0_i32_1 = arith.constant 0 : i32
    return %c0_i32, %c0_i32_0 : i32, i32
  }
  func.func @transform_3(%arg0: i32) -> (i32, i32) {
    %c0_i32 = arith.constant 0 : i32
    %c0_i32_0 = arith.constant 0 : i32
    %c0_i32_1 = arith.constant 0 : i32
    return %c0_i32, %c0_i32_0 : i32, i32
  }
  func.func @transform_4(%arg0: i32) -> (i32, i32) {
    %c0_i32 = arith.constant 0 : i32
    %c0_i32_0 = arith.constant 0 : i32
    %c0_i32_1 = arith.constant 0 : i32
    return %c0_i32, %c0_i32_0 : i32, i32
  }
  func.func @transform_5(%arg0: i32) -> (i32, i32, i32) {
    %c0_i32 = arith.constant 0 : i32
    %c0_i32_0 = arith.constant 0 : i32
    %c0_i32_1 = arith.constant 0 : i32
    return %arg0, %c0_i32, %c0_i32_0 : i32, i32, i32
  }
}

</mosaic_0001>

<bundles_post_ra>
// kernel: forward.1
= control target key start
LH: loop header
LB: loop body
LE: loop exit
PB: predicated region body
PF: predicated region fallthrough
CT: control target
= control target key end

     0   :  { %s5938_s18 = smov 0   ;;  %s7035_s0 = inlined_call_operand.vmem [shape: f32[2,24,72], index: 0, kind: input, shape index: {}]   ;;  %s7036_s1 = inlined_call_operand.vmem [shape: f32[72,32], index: 1, kind: input, shape index: {}]   ;;  %s7037_s2 = inlined_call_operand.vmem [shape: f32[544,128], index: 2, kind: input, shape index: {}]   ;;  %s7038_s3 = inlined_call_operand.vmem [shape: f32[25,128], index: 3, kind: input, shape index: {}]   ;;  %s7039_s4 = inlined_call_operand.vmem [shape: f32[32,128], index: 4, kind: input, shape index: {}]   ;;  %s7040_s5 = inlined_call_operand.vmem [shape: f32[2,8,128], index: 5, kind: output, shape index: {}]  }
   0x1 LB: > { %s4496_s19 = sadd.s32 4294967295, %s5891_s18   ;;  %p4500_p0 = scmp.ge.s32.totalorder %s5891_s18, 1  ;;  %s5891_s18 = sphi %s5938_s18, %s15_s18  }
   0x2   : > { %p187_p1 = scmp.lt.s32.totalorder %s5891_s18, 3 }
   0x4   : > { %p188_p2 = pnand %p4500_p0, %p187_p1 }
   0x5   : > { %v226_v0 = vld [vmem:[%s7036_s1] sm:$0xff] (!%p188_p2)  ;;  %v227_v1 = vld [vmem:[%s7036_s1 + $0x8] sm:$0xff] (!%p188_p2)  ;;  %v228_v2 = vld [vmem:[%s7036_s1 + $0x10] sm:$0xff] (!%p188_p2)  ;;  %v5893_v3 = vmov (!%p188_p2), 0.0|0.0   ;;  %vm5894_vm0 = vmmov (!%p188_p2), 0   ;;  %v5895_v6 = vmov (!%p188_p2), 0.0  }
   0x6   : > { %191 = sbr.rel (%p188_p2) target bundleno = 9412 (0x24c4), region = 40  ;;  %5465 = vmatprep.subr.bf16.mxu0 (!%p188_p2), %v5893_v3  ;;  %v5466_v4 = vpack.c.bf16 (!%p188_p2), %v227_v1, %v226_v0  ;;  %v229_v5 = vld [vmem:[%s7036_s1 + $0x18] sm:$0xff] (!%p188_p2)  ;;  %4907 = vmatprep.mubr.msk.f32.mxu0 (!%p188_p2), %vm5894_vm0, %v5895_v6  ;;  %p214_p3 = scmp.lt.s32.totalorder (!%p188_p2), %s4496_s19, 1  ;;  %v230_v8 = vld [vmem:[%s7036_s1 + $0x20] sm:$0xff] (!%p188_p2)  ;;  %v231_v9 = vld [vmem:[%s7036_s1 + $0x28] sm:$0xff] (!%p188_p2)  ;;  %vm235_vm1 = vcmask (!%p188_p2), 588800  }
   0x7   : > { %5477 = vmatprep.subr.bf16.mxu1 (!%p188_p2), %v5893_v3  ;;  %4924 = vmatprep.mubr.msk.f32.mxu1 (!%p188_p2), %vm5894_vm0, %v5895_v6  ;;  %v5469_v7 = vpack.c.bf16 (!%p188_p2), %v229_v5, %v228_v2  ;;  %v5472_v10 = vpack.c.bf16 (!%p188_p2), %v231_v9, %v230_v8  ;;  %v232_v11 = vld [vmem:[%s7036_s1 + $0x30] sm:$0xff] (!%p188_p2)  ;;  %v233_v12 = vld [vmem:[%s7036_s1 + $0x38] sm:$0xff] (!%p188_p2)  ;;  %v234_v14 = vld [vmem:[%s7036_s1 + $0x40] sm:$0xff] (!%p188_p2)  ;;  %vm331_vm2 = vcmask (!%p188_p2), 261120   ;;  %s5896_s8 = smov (!%p188_p2), 96   ;;  %s5897_s9 = smov (!%p188_p2), 120  }
   0x8   : > { %5467 = vmatpush3.bf16.msra.mxu0 (!%p188_p2), %v5466_v4  ;;  %v5475_v13 = vpack.c.bf16 (!%p188_p2), %v233_v12, %v232_v11  ;;  %v386_v42 = vld [vmem:[%s7037_s2] sm:$0xff] (!%p188_p2)  ;;  %v387_v43 = vld [vmem:[%s7037_s2 + $0x8] sm:$0xff] (!%p188_p2)  ;;  %v388_v45 = vld [vmem:[%s7037_s2 + $0x10] sm:$0xff] (!%p188_p2)  ;;  %s5898_s10 = smov (!%p188_p2), 88   ;;  %vm493_vm3 = vcmask (!%p188_p2), 64512   ;;  %vm586_vm6 = vcmask (!%p188_p2), 195584  }
   0x9   : > { %5468 = vmatprep.subr.bf16.mxu0 (!%p188_p2), %v5893_v3  ;;  %v5478_v44 = vpack.c.bf16 (!%p188_p2), %v387_v43, %v386_v42  ;;  %v389_v46 = vld [vmem:[%s7037_s2 + $0x18] sm:$0xff] (!%p188_p2)  ;;  %v4506_v58 = vld [vmem:[%s7038_s3] ss:$0 sm:$0xff] (!%p188_p2)  ;;  %v4507_v60 = vld [vmem:[%s7038_s3 + $0x1] ss:$0 sm:$0xff] (!%p188_p2)  ;;  %s5901_s12 = smov (!%p188_p2), 56  }
   0xa   : > { %v5481_v47 = vpack.c.bf16 (!%p188_p2), %v389_v46, %v388_v45  ;;  %v4508_v11 = vld [vmem:[%s7038_s3 + $0x2] ss:$0 sm:$0xff] (!%p188_p2)  ;;  %vm6072_vm4 = vmpackc.low (!%p188_p2), %vm493_vm3, %vm493_vm3  ;;  %s5902_s13 = smov (!%p188_p2), 80   ;;  %s5904_s21 = smov (!%p188_p2), 48   ;;  %vm2216_vm7 = vcmask (!%p188_p2), 130048  }
   0xb   : > { %5479 = vmatpush3.bf16.msra.mxu1 (!%p188_p2), %v5478_v44  ;;  %s5905_s22 = smov (!%p188_p2), 72   ;;  %s5906_s23 = smov (!%p188_p2), 104  }
   0xc   : > { %5470 = vmatpush3.bf16.msra.mxu0 (!%p188_p2), %v5469_v7  ;;  %5480 = vmatprep.subr.bf16.mxu1 (!%p188_p2), %v5893_v3  ;;  %s5907_s26 = smov (!%p188_p2), 40  }
   0xd   : > { %s7044_s19 = smov (!%p214_p3, %s4496_s19), 1  ;;  %5471 = vmatprep.subr.bf16.mxu0 %v5893_v3 }
   0xe   : > { %s5629_s11 = smul.u32 24, %s7044_s19  ;;  %s4502_s17 = sshll.u32 %s7044_s19, 3 }
   0xf   : > { %5482 = vmatpush3.bf16.msra.mxu1 %v5481_v47  ;;  %s222_s28 = scalar_lea.vmem %s7040_s5, %s4502_s17 }
  0x10   : > { %5473 = vmatpush3.bf16.msra.mxu0 %v5472_v10  ;;  %s218_s14 = scalar_lea.vmem %s7035_s0, %s5629_s11  ;;  %5483 = vmatprep.subr.bf16.mxu1 %v5893_v3  ;;  %s5900_s11 = smov 64  }
  0x11   : > { %5474 = vmatprep.subr.bf16.mxu0 %v5893_v3  ;;  %v223_v15 = vld [vmem:[%s218_s14] sm:$0xff]  ;;  %v224_v16 = vld [vmem:[%s218_s14 + $0x8] sm:$0xff]  ;;  %v225_v17 = vld [vmem:[%s218_s14 + $0x10] sm:$0xff]  ;;  %s5903_s14 = smov 112  }
  0x14   : > { %5476 = vmatpush3.bf16.msra.mxu0 %v5475_v13 }
  0x15   : > { %4905 = vmatprep.subr.mxu0 %v5895_v6 }
  0x18   : > { %4906 = vmatpush3.msra.mxu0 %v234_v14 }
  0x19   : > { %4908 = vmatmul.mubr.msk.f32.vlgmr.msra.gmra.mrb[0].mxu0 %vm235_vm1, %v223_v15  ;;  %5487 = vmatprep.subr.bf16.mxu0 %v5893_v3 }
  0x1a   : > { %4910 = vmatprep.mubr.msk.f32.mxu0 %vm5894_vm0, %v5895_v6 }
  0x1d   : > { %4911 = vmatmul.mubr.msk.f32.gmra.mrb[2].mxu0 %vm235_vm1, %v224_v16 }
  0x1e   : > { %4913 = vmatprep.mubr.msk.f32.mxu0 %vm5894_vm0, %v5895_v6 }
  0x21   : > { %4914 = vmatmul.mubr.msk.f32.gmra.mrb[4].mxu0 %vm235_vm1, %v225_v17 }
  0x22   : > { %4954 = vmatprep.mubr.msk.f32.mxu0 %vm5894_vm0, %v5895_v6 }
  0xec   : > { %v5996_v18 = vpop.f32.mrb[0].mxu0 }
  0xed   : > { %v4909_v19 = vpop.f32.mrb[1].mxu0  ;;  %v332_v20 = vsel %vm331_vm2, %v5996_v18, 0.0 }
  0xee   : > { %333 = vadd.xlane.f32.xlu0 %v332_v20 }
  0xf0   : > { %v6000_v21 = vpop.f32.mrb[2].mxu0 }
  0xf1   : > { %v4912_v22 = vpop.f32.mrb[3].mxu0  ;;  %v335_v23 = vsel %vm331_vm2, %v6000_v21, 0.0 }
  0xf2   : > { %336 = vadd.xlane.f32.xlu0 %v335_v23 }
  0xf4   : > { %v6004_v24 = vpop.f32.mrb[4].mxu0 }
  0xf5   : > { %v338_v25 = vsel %vm331_vm2, %v6004_v24, 0.0  ;;  %v4915_v26 = vpop.f32.mrb[5].mxu0 }
  0xf6   : > { %339 = vadd.xlane.f32.xlu1 %v338_v25 }
 0x17b   : > { %v334_v27 = vpop.xlane.xlu0 %333 }
 0x17c   : > { %v342_v28 = vmul.f32 0.03125, %v334_v27 }
 0x17e   : > { %v345_v29 = vsub.f32 %v5996_v18, %v342_v28 }
 0x17f   : > { %v337_v30 = vpop.xlane.xlu0 %336 }
 0x180   : > { %v343_v31 = vmul.f32 0.03125, %v337_v30  ;;  %v348_v32 = vmul.f32 %v345_v29, %v345_v29 }
 0x182   : > { %v346_v33 = vsub.f32 %v6000_v21, %v343_v31  ;;  %v351_v34 = vsel %vm331_vm2, %v348_v32, 0.0 }
 0x183   : > { %352 = vadd.xlane.f32.xlu1 %v351_v34  ;;  %v340_v35 = vpop.xlane.xlu1 %339 }
 0x184   : > { %v344_v36 = vmul.f32 0.03125, %v340_v35  ;;  %v349_v37 = vmul.f32 %v346_v33, %v346_v33 }
 0x186   : > { %v347_v38 = vsub.f32 %v6004_v24, %v344_v36  ;;  %v354_v39 = vsel %vm331_vm2, %v349_v37, 0.0  ;;  %v325_v37 = vlaneseq }
 0x187   : > { %355 = vadd.xlane.f32.xlu0 %v354_v39  ;;  %v5899_v39 = vmov -1e+30  }
 0x188   : > { %v350_v40 = vmul.f32 %v347_v38, %v347_v38 }
 0x18a   : > { %v357_v41 = vsel %vm331_vm2, %v350_v40, 0.0 }
 0x18b   : > { %358 = vadd.xlane.f32.xlu1 %v357_v41 }
 0x210   : > { %v353_v48 = vpop.xlane.xlu1 %352 }
 0x211   : > { %v360_v49 = vmul.f32 0.03125, %v353_v48 }
 0x213   : > { %v363_v50 = vadd.f32 1e-06, %v360_v49 }
 0x214   : > { %v356_v51 = vpop.xlane.xlu0 %355 }
 0x215   : > { %5733 = vrsqrt.f32 %v363_v50  ;;  %v361_v52 = vmul.f32 0.03125, %v356_v51 }
 0x217   : > { %v364_v53 = vadd.f32 1e-06, %v361_v52 }
 0x218   : > { %v359_v54 = vpop.xlane.xlu1 %358 }
 0x219   : > { %5735 = vrsqrt.f32 %v364_v53  ;;  %v362_v55 = vmul.f32 0.03125, %v359_v54 }
 0x21b   : > { %v365_v56 = vadd.f32 1e-06, %v362_v55 }
 0x21d   : > { %5737 = vrsqrt.f32 %v365_v56 }
 0x21f   : > { %v5734_v57 = vpop.eup %5733 }
 0x220   : > { %v369_v59 = vmul.f32 %v5734_v57, %v345_v29 }
 0x222   : > { %v376_v61 = vmul.f32 %v4506_v58, %v369_v59 }
 0x223   : > { %v5736_v62 = vpop.eup %5735 }
 0x224   : > { %v383_v63 = vadd.f32 %v4507_v60, %v376_v61  ;;  %v370_v0 = vmul.f32 %v5736_v62, %v346_v33 }
 0x226   : > { %4925 = vmatmul.mubr.msk.f32.vlgmr.msra.gmra.mrb[0].mxu1 %vm331_vm2, %v383_v63  ;;  %v377_v1 = vmul.f32 %v4506_v58, %v370_v0 }
 0x227   : > { %v5738_v2 = vpop.eup %5737  ;;  %4927 = vmatprep.mubr.msk.f32.mxu1 %vm5894_vm0, %v5895_v6 }
 0x228   : > { %v384_v4 = vadd.f32 %v4507_v60, %v377_v1  ;;  %v371_v5 = vmul.f32 %v5738_v2, %v347_v38  ;;  %v326_v38 = vand.u32 127, %v325_v37 }
 0x22a   : > { %4928 = vmatmul.mubr.msk.f32.gmra.mrb[2].mxu1 %vm331_vm2, %v384_v4  ;;  %v378_v7 = vmul.f32 %v4506_v58, %v371_v5  ;;  %vm327_vm5 = vcmp.lt.s32.totalorder %v326_v38, 17 }
 0x22b   : > { %4930 = vmatprep.mubr.msk.f32.mxu1 %vm5894_vm0, %v5895_v6  ;;  %v6107_v40 = vsel %vm327_vm5, 0.0, %v5899_v39 }
 0x22c   : > { %v385_v8 = vadd.f32 %v4507_v60, %v378_v7 }
 0x22e   : > { %4931 = vmatmul.mubr.msk.f32.gmra.mrb[4].mxu1 %vm331_vm2, %v385_v8 }
 0x22f   : > { %4939 = vmatprep.mubr.msk.f32.mxu1 %vm5894_vm0, %v5895_v6 }
 0x2f9   : > { %v470_v9 = vpop.f32.mrb[0].mxu1 }
 0x2fa   : > { %v4926_v10 = vpop.f32.mrb[1].mxu1  ;;  %v6046_v13 = vadd.f32 %v4508_v11, %v470_v9 }
 0x2fd   : > { %v475_v12 = vpop.f32.mrb[2].mxu1 }
 0x2fe   : > { %v6048_v14 = vadd.f32 %v4508_v11, %v475_v12  ;;  %v4929_v15 = vpop.f32.mrb[3].mxu1 }
 0x300   : > { %v6052_v16 = vpack.i.bf16 %v6048_v14, %v6046_v13 }
 0x301   : > { %v480_v17 = vpop.f32.mrb[4].mxu1 }
 0x302   : > { %v6054_v19 = vadd.f32 %v4508_v11, %v480_v17  ;;  %5654 = vrot.lane.b32.xlu0 %v6052_v16, %s5896_s8  ;;  %v4932_v20 = vpop.f32.mrb[5].mxu1 }
 0x304   : > { %491 = vrot.lane.b32.xlu1 %v6054_v19, %s5896_s8 }
 0x306   : > { %719 = vrot.lane.b32.xlu0 %v6046_v13, %s5897_s9 }
 0x308   : > { %5659 = vrot.lane.b32.xlu1 %v6052_v16, %s5898_s10 }
 0x30a   : > { %723 = vrot.lane.b32.xlu0 %v6054_v19, %s5897_s9 }
 0x30c   : > { %729 = vrot.lane.b32.xlu1 %v6054_v19, %s5898_s10 }
 0x310   : > { %721 = vrot.lane.b32.xlu1 %v6048_v14, %s5897_s9 }
 0x374   : > { %v5655_v22 = vpop.permute.xlu0 %5654 }
 0x375   : > { %v5657_v23 = vunpack.i.h.bf16 %v5655_v22  ;;  %v5656_v25 = vunpack.i.l.bf16 %v5655_v22 }
 0x376   : > { %v492_v26 = vpop.permute.xlu1 %491 }
 0x377   : > { %v5484_v28 = vpack.c.bf16 %v5657_v23, %v5656_v25 }
 0x378   : > { %v720_v34 = vpop.permute.xlu0 %719 }
 0x379   : > { %5486 = vmatpush3.bf16.xpose.msk.msra.mxu1 %vm6072_vm4, %v5484_v28 }
 0x37a   : > { %4937 = vmatprep.subr.mxu1 %v5895_v6  ;;  %v5660_v29 = vpop.permute.xlu1 %5659 }
 0x37b   : > { %v5662_v30 = vunpack.i.h.bf16 %v5660_v29  ;;  %v5661_v31 = vunpack.i.l.bf16 %v5660_v29 }
 0x37c   : > { %v724_v36 = vpop.permute.xlu0 %723 }
 0x37d   : > { %v5491_v32 = vpack.c.bf16 %v5662_v30, %v5661_v31 }
 0x37e   : > { %v730_v33 = vpop.permute.xlu1 %729 }
 0x381   : > { %4938 = vmatpush3.xpose.msk.msra.mxu1 %vm493_vm3, %v492_v26 }
 0x382   : > { %5490 = vmatprep.subr.bf16.mxu1 %v5893_v3  ;;  %v722_v35 = vpop.permute.xlu1 %721 }
 0x384   : > { %4940 = vmatmul.mubr.msk.f32.vlgmr.msra.gmra.mrb[6].mxu1 %vm493_vm3, %v6046_v13 }
 0x385   : > { %5493 = vmatpush3.bf16.xpose.msk.msra.mxu1 %vm6072_vm4, %v5491_v32  ;;  %4942 = vmatprep.mubr.msk.f32.mxu1 %vm5894_vm0, %v5895_v6 }
 0x386   : > { %4967 = vmatprep.subr.mxu1 %v5895_v6 }
 0x388   : > { %4943 = vmatmul.mubr.msk.f32.gmra.mrb[8].mxu1 %vm493_vm3, %v6048_v14 }
 0x389   : > { %4945 = vmatprep.mubr.msk.f32.mxu1 %vm5894_vm0, %v5895_v6 }
 0x38c   : > { %4946 = vmatmul.mubr.msk.f32.gmra.mrb[10].mxu1 %vm493_vm3, %v6054_v19 }
 0x38d   : > { %4968 = vmatpush3.xpose.msk.msra.mxu1 %vm493_vm3, %v730_v33  ;;  %4969 = vmatprep.mubr.msk.f32.mxu1 %vm5894_vm0, %v5895_v6 }
 0x38e   : > { %4993 = vmatprep.subr.mxu1 %v5895_v6 }
 0x390   : > { %4970 = vmatmul.mubr.msk.f32.vlgmr.msra.gmra.mrb[12].mxu1 %vm493_vm3, %v720_v34 }
 0x391   : > { %4972 = vmatprep.mubr.msk.f32.mxu1 %vm5894_vm0, %v5895_v6 }
 0x394   : > { %4973 = vmatmul.mubr.msk.f32.gmra.mrb[14].mxu1 %vm493_vm3, %v722_v35 }
 0x395   : > { %4975 = vmatprep.mubr.msk.f32.mxu1 %vm5894_vm0, %v5895_v6 }
 0x398   : > { %4976 = vmatmul.mubr.msk.f32.gmra.mrb[16].mxu1 %vm493_vm3, %v724_v36 }
 0x399   : > { %4995 = vmatprep.mubr.msk.f32.mxu1 %vm5894_vm0, %v5895_v6 }
 0x457   : > { %v572_v41 = vpop.f32.mrb[6].mxu1 }
 0x458   : > { %v573_v42 = vadd.f32 %v572_v41, %v6107_v40  ;;  %v4941_v43 = vpop.f32.mrb[7].mxu1 }
 0x45a   : > { %v587_v44 = vsel %vm586_vm6, %v573_v42, -inf }
 0x45b   : > { %588 = vmax.xlane.f32.xlu1 %v587_v44  ;;  %v577_v45 = vpop.f32.mrb[8].mxu1 }
 0x45c   : > { %v578_v46 = vadd.f32 %v577_v45, %v6107_v40  ;;  %v4944_v47 = vpop.f32.mrb[9].mxu1 }
 0x45e   : > { %v590_v48 = vsel %vm586_vm6, %v578_v46, -inf }
 0x45f   : > { %591 = vmax.xlane.f32.xlu0 %v590_v48  ;;  %v582_v49 = vpop.f32.mrb[10].mxu1 }
 0x460   : > { %v583_v50 = vadd.f32 %v582_v49, %v6107_v40  ;;  %v4947_v51 = vpop.f32.mrb[11].mxu1 }
 0x462   : > { %v593_v52 = vsel %vm586_vm6, %v583_v50, -inf }
 0x463   : > { %594 = vmax.xlane.f32.xlu0 %v593_v52  ;;  %v809_v53 = vpop.f32.mrb[12].mxu1 }
 0x464   : > { %v810_v54 = vadd.f32 %v809_v53, %v6107_v40  ;;  %v4971_v55 = vpop.f32.mrb[13].mxu1 }
 0x466   : > { %v823_v56 = vsel %vm586_vm6, %v810_v54, -inf }
 0x467   : > { %824 = vmax.xlane.f32.xlu0 %v823_v56  ;;  %v814_v57 = vpop.f32.mrb[14].mxu1 }
 0x468   : > { %v815_v58 = vadd.f32 %v814_v57, %v6107_v40  ;;  %v4974_v59 = vpop.f32.mrb[15].mxu1 }
 0x46a   : > { %v826_v60 = vsel %vm586_vm6, %v815_v58, -inf }
 0x46b   : > { %827 = vmax.xlane.f32.xlu1 %v826_v60  ;;  %v819_v61 = vpop.f32.mrb[16].mxu1 }
 0x46c   : > { %v820_v62 = vadd.f32 %v819_v61, %v6107_v40  ;;  %v4977_v63 = vpop.f32.mrb[17].mxu1 }
 0x46e   : > { %v829_v0 = vsel %vm586_vm6, %v820_v62, -inf }
 0x46f   : > { %830 = vmax.xlane.f32.xlu0 %v829_v0 }
 0x47c   : > { %624 = vrot.lane.b32.xlu1 %v6054_v19, %s5900_s11 }
 0x485   : > { %5664 = vrot.lane.b32.xlu0 %v6052_v16, %s5900_s11 }
 0x4e8   : > { %v589_v1 = vpop.xlane.xlu1 %588 }
 0x4e9   : > { %v596_v2 = vsub.f32 %v573_v42, %v589_v1 }
 0x4eb   : > { %v599_v4 = vmul.f32 1.442695, %v596_v2 }
 0x4ec   : > { %v592_v5 = vpop.xlane.xlu0 %591 }
 0x4ed   : > { %5739 = vpow2.f32 %v599_v4  ;;  %v597_v7 = vsub.f32 %v578_v46, %v592_v5 }
 0x4ef   : > { %v601_v8 = vmul.f32 1.442695, %v597_v7 }
 0x4f0   : > { %v595_v9 = vpop.xlane.xlu0 %594 }
 0x4f1   : > { %5741 = vpow2.f32 %v601_v8  ;;  %v598_v10 = vsub.f32 %v583_v50, %v595_v9  ;;  %v718_v8 = vld [vmem:[%s7037_s2 + $0x20] sm:$0xff]  ;;  %v954_v9 = vld [vmem:[%s7037_s2 + $0x28] sm:$0xff] }
 0x4f2   : > { %4994 = vmatpush3.msra.mxu1 %v954_v9 }
 0x4f3   : > { %v603_v11 = vmul.f32 1.442695, %v598_v10  ;;  %5497 = vmatprep.subr.bf16.mxu1 %v5893_v3 }
 0x4f4   : > { %v825_v12 = vpop.xlane.xlu0 %824 }
 0x4f5   : > { %5743 = vpow2.f32 %v603_v11  ;;  %v832_v15 = vsub.f32 %v810_v54, %v825_v12 }
 0x4f7   : > { %v5740_v17 = vpop.eup %5739  ;;  %v835_v20 = vmul.f32 1.442695, %v832_v15 }
 0x4f8   : > { %v828_v22 = vpop.xlane.xlu1 %827  ;;  %v605_v23 = vsel %vm586_vm6, %v5740_v17, 0.0 }
 0x4f9   : > { %5745 = vpow2.f32 %v835_v20  ;;  %v833_v25 = vsub.f32 %v815_v58, %v828_v22  ;;  %606 = vadd.xlane.f32.xlu1 %v605_v23 }
 0x4fb   : > { %v5742_v26 = vpop.eup %5741  ;;  %v837_v28 = vmul.f32 1.442695, %v833_v25 }
 0x4fc   : > { %v831_v29 = vpop.xlane.xlu0 %830  ;;  %v608_v30 = vsel %vm586_vm6, %v5742_v26, 0.0  ;;  %v625_v43 = vpop.permute.xlu1 %624 }
 0x4fd   : > { %5747 = vpow2.f32 %v837_v28  ;;  %v834_v31 = vsub.f32 %v820_v62, %v831_v29  ;;  %609 = vadd.xlane.f32.xlu0 %v608_v30 }
 0x4ff   : > { %v5744_v32 = vpop.eup %5743  ;;  %v839_v33 = vmul.f32 1.442695, %v834_v31 }
 0x500   : > { %v5665_v34 = vpop.permute.xlu0 %5664  ;;  %v611_v35 = vsel %vm586_vm6, %v5744_v32, 0.0 }
 0x501   : > { %5749 = vpow2.f32 %v839_v33  ;;  %v5667_v36 = vunpack.i.h.bf16 %v5665_v34  ;;  %v5666_v37 = vunpack.i.l.bf16 %v5665_v34  ;;  %612 = vadd.xlane.f32.xlu1 %v611_v35 }
 0x503   : > { %v5746_v38 = vpop.eup %5745  ;;  %v5488_v39 = vpack.c.bf16 %v5667_v36, %v5666_v37 }
 0x504   : > { %v841_v41 = vsel %vm586_vm6, %v5746_v38, 0.0 }
 0x505   : > { %842 = vadd.xlane.f32.xlu0 %v841_v41  ;;  %5489 = vmatpush3.bf16.msra.mxu0 %v5488_v39 }
 0x506   : > { %4952 = vmatprep.subr.mxu0 %v5895_v6 }
 0x507   : > { %v5748_v42 = vpop.eup %5747 }
 0x508   : > { %v844_v44 = vsel %vm586_vm6, %v5748_v42, 0.0 }
 0x509   : > { %845 = vadd.xlane.f32.xlu1 %v844_v44  ;;  %4953 = vmatpush3.msra.mxu0 %v625_v43 }
 0x50a   : > { %5494 = vmatprep.subr.bf16.mxu0 %v5893_v3 }
 0x50b   : > { %v5750_v45 = vpop.eup %5749 }
 0x50c   : > { %v847_v46 = vsel %vm586_vm6, %v5750_v45, 0.0 }
 0x50d   : > { %848 = vadd.xlane.f32.xlu1 %v847_v46 }
 0x51b   : > { %860 = vrot.lane.b32.xlu0 %v6054_v19, %s5901_s12 }
 0x51e   : > { %5669 = vrot.lane.b32.xlu1 %v6052_v16, %s5901_s12 }
 0x51f   : > { %1143 = vrot.lane.b32.xlu0 %v6054_v19, %s5902_s13 }
 0x522   : > { %5674 = vrot.lane.b32.xlu1 %v6052_v16, %s5902_s13 }
 0x523   : > { %1135 = vrot.lane.b32.xlu0 %v6048_v14, %s5903_s14 }
 0x526   : > { %1133 = vrot.lane.b32.xlu1 %v6046_v13, %s5903_s14 }
 0x52a   : > { %1137 = vrot.lane.b32.xlu1 %v6054_v19, %s5903_s14 }
 0x586   : > { %v607_v47 = vpop.xlane.xlu1 %606 }
 0x587   : > { %5751 = vrcp.f32 %v607_v47 }
 0x58a   : > { %v610_v48 = vpop.xlane.xlu0 %609 }
 0x58b   : > { %5753 = vrcp.f32 %v610_v48 }
 0x58e   : > { %v613_v49 = vpop.xlane.xlu1 %612 }
 0x58f   : > { %5755 = vrcp.f32 %v613_v49 }
 0x591   : > { %v5752_v50 = vpop.eup %5751 }
 0x592   : > { %v617_v51 = vmul.f32 %v5752_v50, %v5740_v17  ;;  %v843_v53 = vpop.xlane.xlu0 %842 }
 0x593   : > { %5757 = vrcp.f32 %v843_v53 }
 0x594   : > { %4955 = vmatmul.mubr.msk.f32.vlgmr.msra.gmra.mrb[6].mxu0 %vm586_vm6, %v617_v51 }
 0x595   : > { %v5754_v52 = vpop.eup %5753  ;;  %4957 = vmatprep.mubr.msk.f32.mxu0 %vm5894_vm0, %v5895_v6 }
 0x596   : > { %v846_v54 = vpop.xlane.xlu1 %845  ;;  %v618_v55 = vmul.f32 %v5754_v52, %v5742_v26  ;;  %v861_v1 = vpop.permute.xlu0 %860 }
 0x597   : > { %5759 = vrcp.f32 %v846_v54 }
 0x598   : > { %4958 = vmatmul.mubr.msk.f32.gmra.mrb[8].mxu0 %vm586_vm6, %v618_v55 }
 0x599   : > { %v5756_v56 = vpop.eup %5755  ;;  %4960 = vmatprep.mubr.msk.f32.mxu0 %vm5894_vm0, %v5895_v6 }
 0x59a   : > { %v849_v57 = vpop.xlane.xlu1 %848  ;;  %v619_v58 = vmul.f32 %v5756_v56, %v5744_v32  ;;  %v1144_v33 = vpop.permute.xlu0 %1143 }
 0x59b   : > { %5761 = vrcp.f32 %v849_v57 }
 0x59c   : > { %4961 = vmatmul.mubr.msk.f32.gmra.mrb[10].mxu0 %vm586_vm6, %v619_v58 }
 0x59d   : > { %4984 = vmatprep.mubr.msk.f32.mxu0 %vm5894_vm0, %v5895_v6  ;;  %v5758_v63 = vpop.eup %5757 }
 0x59e   : > { %v5670_v59 = vpop.permute.xlu1 %5669  ;;  %v853_v0 = vmul.f32 %v5758_v63, %v5746_v38  ;;  %v1136_v36 = vpop.permute.xlu0 %1135 }
 0x59f   : > { %v5672_v60 = vunpack.i.h.bf16 %v5670_v59  ;;  %v5671_v61 = vunpack.i.l.bf16 %v5670_v59 }
 0x5a1   : > { %v5495_v62 = vpack.c.bf16 %v5672_v60, %v5671_v61  ;;  %v5760_v2 = vpop.eup %5759 }
 0x5a2   : > { %v854_v4 = vmul.f32 %v5760_v2, %v5748_v42  ;;  %v5675_v22 = vpop.permute.xlu1 %5674 }
 0x5a3   : > { %5496 = vmatpush3.bf16.msra.mxu0 %v5495_v62  ;;  %v5677_v23 = vunpack.i.h.bf16 %v5675_v22  ;;  %v5676_v25 = vunpack.i.l.bf16 %v5675_v22 }
 0x5a4   : > { %4982 = vmatprep.subr.mxu0 %v5895_v6 }
 0x5a5   : > { %v5762_v5 = vpop.eup %5761  ;;  %v5498_v26 = vpack.c.bf16 %v5677_v23, %v5676_v25 }
 0x5a6   : > { %v855_v7 = vmul.f32 %v5762_v5, %v5750_v45  ;;  %v1134_v35 = vpop.permute.xlu1 %1133 }
 0x5a7   : > { %4983 = vmatpush3.msra.mxu0 %v861_v1 }
 0x5a8   : > { %4985 = vmatmul.mubr.msk.f32.vlgmr.msra.gmra.mrb[12].mxu0 %vm586_vm6, %v853_v0  ;;  %5004 = vmatprep.subr.mxu0 %v5895_v6 }
 0x5a9   : > { %4987 = vmatprep.mubr.msk.f32.mxu0 %vm5894_vm0, %v5895_v6  ;;  %5005 = vmatpush3.msra.mxu0 %v718_v8 }
 0x5aa   : > { %5501 = vmatprep.subr.bf16.mxu0 %v5893_v3  ;;  %v1138_v37 = vpop.permute.xlu1 %1137 }
 0x5ac   : > { %4988 = vmatmul.mubr.msk.f32.gmra.mrb[14].mxu0 %vm586_vm6, %v854_v4 }
 0x5ad   : > { %4990 = vmatprep.mubr.msk.f32.mxu0 %vm5894_vm0, %v5895_v6 }
 0x5b0   : > { %4991 = vmatmul.mubr.msk.f32.gmra.mrb[16].mxu0 %vm586_vm6, %v855_v7 }
 0x5b1   : > { %5006 = vmatprep.mubr.msk.f32.mxu0 %vm5894_vm0, %v5895_v6 }
 0x667   : > { %v704_v10 = vpop.f32.mrb[6].mxu0 }
 0x668   : > { %v4956_v11 = vpop.f32.mrb[7].mxu0  ;;  %5007 = vmatmul.mubr.msk.f32.vlgmr.msra.gmra.mrb[18].mxu0 %vm493_vm3, %v704_v10 }
 0x669   : > { %5009 = vmatprep.mubr.msk.f32.mxu0 %vm5894_vm0, %v5895_v6 }
 0x66b   : > { %v709_v12 = vpop.f32.mrb[8].mxu0 }
 0x66c   : > { %v4959_v15 = vpop.f32.mrb[9].mxu0  ;;  %5010 = vmatmul.mubr.msk.f32.gmra.mrb[20].mxu0 %vm493_vm3, %v709_v12 }
 0x66d   : > { %5012 = vmatprep.mubr.msk.f32.mxu0 %vm5894_vm0, %v5895_v6 }
 0x66f   : > { %v714_v17 = vpop.f32.mrb[10].mxu0 }
 0x670   : > { %v4962_v20 = vpop.f32.mrb[11].mxu0  ;;  %5013 = vmatmul.mubr.msk.f32.gmra.mrb[22].mxu0 %vm493_vm3, %v714_v17 }
 0x671   : > { %5036 = vmatprep.mubr.msk.f32.mxu0 %vm5894_vm0, %v5895_v6 }
 0x67b   : > { %v940_v28 = vpop.f32.mrb[12].mxu0 }
 0x67c   : > { %v4986_v29 = vpop.f32.mrb[13].mxu0  ;;  %4996 = vmatmul.mubr.msk.f32.vlgmr.msra.gmra.mrb[18].mxu1 %vm493_vm3, %v940_v28 }
 0x67d   : > { %5500 = vmatpush3.bf16.xpose.msk.msra.mxu1 %vm6072_vm4, %v5498_v26  ;;  %4998 = vmatprep.mubr.msk.f32.mxu1 %vm5894_vm0, %v5895_v6 }
 0x67e   : > { %5019 = vmatprep.subr.mxu1 %v5895_v6 }
 0x67f   : > { %v945_v30 = vpop.f32.mrb[14].mxu0 }
 0x680   : > { %v4989_v31 = vpop.f32.mrb[15].mxu0  ;;  %4999 = vmatmul.mubr.msk.f32.gmra.mrb[20].mxu1 %vm493_vm3, %v945_v30 }
 0x681   : > { %5001 = vmatprep.mubr.msk.f32.mxu1 %vm5894_vm0, %v5895_v6 }
 0x683   : > { %v950_v32 = vpop.f32.mrb[16].mxu0 }
 0x684   : > { %v4992_v34 = vpop.f32.mrb[17].mxu0  ;;  %5002 = vmatmul.mubr.msk.f32.gmra.mrb[22].mxu1 %vm493_vm3, %v950_v32 }
 0x685   : > { %5020 = vmatpush3.xpose.msk.msra.mxu1 %vm493_vm3, %v1144_v33  ;;  %5021 = vmatprep.mubr.msk.f32.mxu1 %vm5894_vm0, %v5895_v6 }
 0x686   : > { %5045 = vmatprep.subr.mxu1 %v5895_v6 }
 0x688   : > { %5022 = vmatmul.mubr.msk.f32.vlgmr.msra.gmra.mrb[24].mxu1 %vm493_vm3, %v1134_v35 }
 0x689   : > { %5024 = vmatprep.mubr.msk.f32.mxu1 %vm5894_vm0, %v5895_v6 }
 0x68c   : > { %5025 = vmatmul.mubr.msk.f32.gmra.mrb[26].mxu1 %vm493_vm3, %v1136_v36 }
 0x68d   : > { %5027 = vmatprep.mubr.msk.f32.mxu1 %vm5894_vm0, %v5895_v6 }
 0x690   : > { %5028 = vmatmul.mubr.msk.f32.gmra.mrb[28].mxu1 %vm493_vm3, %v1138_v37 }
 0x691   : > { %5047 = vmatprep.mubr.msk.f32.mxu1 %vm5894_vm0, %v5895_v6 }
 0x73b   : > { %v1119_v38 = vpop.f32.mrb[18].mxu0 }
 0x73c   : > { %v5008_v39 = vpop.f32.mrb[19].mxu0 }
 0x73f   : > { %v1124_v41 = vpop.f32.mrb[20].mxu0 }
 0x740   : > { %v5011_v42 = vpop.f32.mrb[21].mxu0 }
 0x743   : > { %v1129_v43 = vpop.f32.mrb[22].mxu0 }
 0x744   : > { %v5014_v44 = vpop.f32.mrb[23].mxu0 }
 0x74f   : > { %v1030_v45 = vpop.f32.mrb[18].mxu1 }
 0x750   : > { %v6207_v46 = vadd.f32 %v1119_v38, %v1030_v45  ;;  %v4997_v47 = vpop.f32.mrb[19].mxu1 }
 0x753   : > { %v1035_v48 = vpop.f32.mrb[20].mxu1 }
 0x754   : > { %v6209_v49 = vadd.f32 %v1124_v41, %v1035_v48  ;;  %v5000_v50 = vpop.f32.mrb[21].mxu1 }
 0x755   : > { %v1368_v50 = vld [vmem:[%s7037_s2 + $0x30] sm:$0xff] }
 0x756   : > { %5046 = vmatpush3.msra.mxu1 %v1368_v50 }
 0x757   : > { %v1040_v51 = vpop.f32.mrb[22].mxu1  ;;  %5508 = vmatprep.subr.bf16.mxu1 %v5893_v3 }
 0x758   : > { %v6211_v52 = vadd.f32 %v1129_v43, %v1040_v51  ;;  %v5003_v53 = vpop.f32.mrb[23].mxu1 }
 0x75b   : > { %v1223_v54 = vpop.f32.mrb[24].mxu1 }
 0x75c   : > { %v1224_v55 = vadd.f32 %v1223_v54, %v6107_v40  ;;  %v5023_v56 = vpop.f32.mrb[25].mxu1 }
 0x75e   : > { %v1237_v57 = vsel %vm586_vm6, %v1224_v55, -inf }
 0x75f   : > { %1238 = vmax.xlane.f32.xlu0 %v1237_v57  ;;  %v1228_v58 = vpop.f32.mrb[26].mxu1 }
 0x760   : > { %v1229_v59 = vadd.f32 %v1228_v58, %v6107_v40  ;;  %v5026_v60 = vpop.f32.mrb[27].mxu1 }
 0x762   : > { %v1240_v61 = vsel %vm586_vm6, %v1229_v59, -inf }
 0x763   : > { %1241 = vmax.xlane.f32.xlu1 %v1240_v61  ;;  %v1233_v62 = vpop.f32.mrb[28].mxu1 }
 0x764   : > { %v1234_v63 = vadd.f32 %v1233_v62, %v6107_v40  ;;  %v5029_v0 = vpop.f32.mrb[29].mxu1 }
 0x766   : > { %v1243_v1 = vsel %vm586_vm6, %v1234_v63, -inf }
 0x767   : > { %1244 = vmax.xlane.f32.xlu0 %v1243_v1 }
 0x774   : > { %1274 = vrot.lane.b32.xlu1 %v6054_v19, %s5904_s21 }
 0x778   : > { %5684 = vrot.lane.b32.xlu1 %v6052_v16, %s5905_s22 }
 0x77c   : > { %1471 = vrot.lane.b32.xlu1 %v6054_v19, %s5905_s22 }
 0x7ec   : > { %v1239_v2 = vpop.xlane.xlu0 %1238 }
 0x7ed   : > { %v1246_v4 = vsub.f32 %v1224_v55, %v1239_v2 }
 0x7ef   : > { %v1249_v5 = vmul.f32 1.442695, %v1246_v4 }
 0x7f0   : > { %v1242_v7 = vpop.xlane.xlu1 %1241 }
 0x7f1   : > { %5763 = vpow2.f32 %v1249_v5  ;;  %v1247_v8 = vsub.f32 %v1229_v59, %v1242_v7 }
 0x7f3   : > { %v1251_v9 = vmul.f32 1.442695, %v1247_v8 }
 0x7f4   : > { %v1245_v10 = vpop.xlane.xlu0 %1244  ;;  %v1275_v26 = vpop.permute.xlu1 %1274 }
 0x7f5   : > { %5765 = vpow2.f32 %v1251_v9  ;;  %v1248_v11 = vsub.f32 %v1234_v63, %v1245_v10 }
 0x7f7   : > { %v1253_v12 = vmul.f32 1.442695, %v1248_v11 }
 0x7f8   : > { %v5685_v28 = vpop.permute.xlu1 %5684 }
 0x7f9   : > { %5767 = vpow2.f32 %v1253_v12  ;;  %v5687_v38 = vunpack.i.h.bf16 %v5685_v28  ;;  %v5686_v39 = vunpack.i.l.bf16 %v5685_v28 }
 0x7fb   : > { %v5764_v15 = vpop.eup %5763  ;;  %v5505_v43 = vpack.c.bf16 %v5687_v38, %v5686_v39 }
 0x7fc   : > { %v1255_v17 = vsel %vm586_vm6, %v5764_v15, 0.0  ;;  %v1472_v30 = vpop.permute.xlu1 %1471 }
 0x7fd   : > { %1256 = vadd.xlane.f32.xlu0 %v1255_v17 }
 0x7ff   : > { %v5766_v20 = vpop.eup %5765 }
 0x800   : > { %v1258_v22 = vsel %vm586_vm6, %v5766_v20, 0.0 }
 0x801   : > { %1259 = vadd.xlane.f32.xlu0 %v1258_v22 }
 0x803   : > { %v5768_v23 = vpop.eup %5767 }
 0x804   : > { %v1261_v25 = vsel %vm586_vm6, %v5768_v23, 0.0 }
 0x805   : > { %1262 = vadd.xlane.f32.xlu1 %v1261_v25 }
 0x816   : > { %1463 = vrot.lane.b32.xlu1 %v6048_v14, %s5906_s23 }
 0x817   : > { %5679 = vrot.lane.b32.xlu0 %v6052_v16, %s5904_s21 }
 0x81b   : > { %1461 = vrot.lane.b32.xlu0 %v6046_v13, %s5906_s23 }
 0x81f   : > { %1465 = vrot.lane.b32.xlu0 %v6054_v19, %s5906_s23 }
 0x88a   : > { %v1257_v29 = vpop.xlane.xlu0 %1256 }
 0x88b   : > { %5769 = vrcp.f32 %v1257_v29 }
 0x88e   : > { %v1260_v31 = vpop.xlane.xlu0 %1259 }
 0x88f   : > { %5771 = vrcp.f32 %v1260_v31 }
 0x892   : > { %v1263_v32 = vpop.xlane.xlu1 %1262  ;;  %v5680_v33 = vpop.permute.xlu0 %5679 }
 0x893   : > { %v5682_v34 = vunpack.i.h.bf16 %v5680_v33  ;;  %v5681_v14 = vunpack.i.l.bf16 %v5680_v33  ;;  %5773 = vrcp.f32 %v1263_v32 }
 0x895   : > { %v5502_v35 = vpack.c.bf16 %v5682_v34, %v5681_v14  ;;  %v5770_v36 = vpop.eup %5769 }
 0x896   : > { %v1267_v13 = vmul.f32 %v5770_v36, %v5764_v15  ;;  %v1462_v45 = vpop.permute.xlu0 %1461  ;;  %v1464_v47 = vpop.permute.xlu1 %1463  ;;  %v1696_v36 = vld [vmem:[%s7037_s2 + $0x38] sm:$0xff] }
 0x897   : > { %5503 = vmatpush3.bf16.msra.mxu0 %v5502_v35 }
 0x898   : > { %5034 = vmatprep.subr.mxu0 %v5895_v6 }
 0x899   : > { %v5772_v37 = vpop.eup %5771 }
 0x89a   : > { %v1268_v41 = vmul.f32 %v5772_v37, %v5766_v20  ;;  %v1466_v48 = vpop.permute.xlu0 %1465 }
 0x89b   : > { %5035 = vmatpush3.msra.mxu0 %v1275_v26 }
 0x89c   : > { %5037 = vmatmul.mubr.msk.f32.vlgmr.msra.gmra.mrb[24].mxu0 %vm586_vm6, %v1267_v13  ;;  %5504 = vmatprep.subr.bf16.mxu0 %v5893_v3 }
 0x89d   : > { %5039 = vmatprep.mubr.msk.f32.mxu0 %vm5894_vm0, %v5895_v6  ;;  %v5774_v42 = vpop.eup %5773 }
 0x89e   : > { %v1269_v44 = vmul.f32 %v5774_v42, %v5768_v23 }
 0x8a0   : > { %5040 = vmatmul.mubr.msk.f32.gmra.mrb[26].mxu0 %vm586_vm6, %v1268_v41 }
 0x8a1   : > { %5042 = vmatprep.mubr.msk.f32.mxu0 %vm5894_vm0, %v5895_v6 }
 0x8a2   : > { %5507 = vmatpush3.bf16.xpose.msk.msra.mxu0 %vm6072_vm4, %v5505_v43 }
 0x8a3   : > { %5060 = vmatprep.subr.mxu0 %v5895_v6 }
 0x8a4   : > { %5043 = vmatmul.mubr.msk.f32.gmra.mrb[28].mxu0 %vm586_vm6, %v1269_v44 }
 0x8a5   : > { %5062 = vmatprep.mubr.msk.f32.mxu0 %vm5894_vm0, %v5895_v6 }
 0x8aa   : > { %5061 = vmatpush3.xpose.msk.msra.mxu0 %vm493_vm3, %v1472_v30 }
 0x8ab   : > { %5086 = vmatprep.subr.mxu0 %v5895_v6 }
 0x8ad   : > { %5063 = vmatmul.mubr.msk.f32.vlgmr.msra.gmra.mrb[30].mxu0 %vm493_vm3, %v1462_v45 }
 0x8ae   : > { %5065 = vmatprep.mubr.msk.f32.mxu0 %vm5894_vm0, %v5895_v6  ;;  %5087 = vmatpush3.msra.mxu0 %v1696_v36 }
 0x8af   : > { %5517 = vmatprep.subr.bf16.mxu0 %v5893_v3 }
 0x8b1   : > { %5066 = vmatmul.mubr.msk.f32.gmra.mrb[32].mxu0 %vm493_vm3, %v1464_v47 }
 0x8b2   : > { %5068 = vmatprep.mubr.msk.f32.mxu0 %vm5894_vm0, %v5895_v6 }
 0x8b5   : > { %5069 = vmatmul.mubr.msk.f32.gmra.mrb[34].mxu0 %vm493_vm3, %v1466_v48 }
 0x8b6   : > { %5088 = vmatprep.mubr.msk.f32.mxu0 %vm5894_vm0, %v5895_v6 }
 0x96f   : > { %v1354_v51 = vpop.f32.mrb[24].mxu0 }
 0x970   : > { %v5038_v53 = vpop.f32.mrb[25].mxu0  ;;  %5048 = vmatmul.mubr.msk.f32.vlgmr.msra.gmra.mrb[30].mxu1 %vm493_vm3, %v1354_v51 }
 0x971   : > { %5050 = vmatprep.mubr.msk.f32.mxu1 %vm5894_vm0, %v5895_v6 }
 0x973   : > { %v1359_v54 = vpop.f32.mrb[26].mxu0 }
 0x974   : > { %v5041_v55 = vpop.f32.mrb[27].mxu0  ;;  %5051 = vmatmul.mubr.msk.f32.gmra.mrb[32].mxu1 %vm493_vm3, %v1359_v54 }
 0x975   : > { %5053 = vmatprep.mubr.msk.f32.mxu1 %vm5894_vm0, %v5895_v6 }
 0x977   : > { %v1364_v56 = vpop.f32.mrb[28].mxu0 }
 0x978   : > { %v5044_v57 = vpop.f32.mrb[29].mxu0  ;;  %5054 = vmatmul.mubr.msk.f32.gmra.mrb[34].mxu1 %vm493_vm3, %v1364_v56 }
 0x979   : > { %5077 = vmatprep.mubr.msk.f32.mxu1 %vm5894_vm0, %v5895_v6 }
 0x980   : > { %v1551_v58 = vpop.f32.mrb[30].mxu0 }
 0x981   : > { %v1552_v59 = vadd.f32 %v1551_v58, %v6107_v40  ;;  %v5064_v60 = vpop.f32.mrb[31].mxu0 }
 0x983   : > { %v1565_v61 = vsel %vm586_vm6, %v1552_v59, -inf }
 0x984   : > { %1566 = vmax.xlane.f32.xlu1 %v1565_v61  ;;  %v1556_v62 = vpop.f32.mrb[32].mxu0  ;;  %v4560_v61 = vld [vmem:[%s7038_s3 + $0x3] ss:$0 sm:$0xff] }
 0x985   : > { %v1557_v63 = vadd.f32 %v1556_v62, %v6107_v40  ;;  %v5067_v0 = vpop.f32.mrb[33].mxu0 }
 0x987   : > { %v1568_v1 = vsel %vm586_vm6, %v1557_v63, -inf }
 0x988   : > { %1569 = vmax.xlane.f32.xlu0 %v1568_v1  ;;  %v1561_v2 = vpop.f32.mrb[34].mxu0 }
 0x989   : > { %v1562_v4 = vadd.f32 %v1561_v2, %v6107_v40  ;;  %v5070_v5 = vpop.f32.mrb[35].mxu0 }
 0x98b   : > { %v1571_v7 = vsel %vm586_vm6, %v1562_v4, -inf }
 0x98c   : > { %1572 = vmax.xlane.f32.xlu0 %v1571_v7 }
 0xa11   : > { %v1567_v8 = vpop.xlane.xlu1 %1566 }
 0xa12   : > { %v1574_v9 = vsub.f32 %v1552_v59, %v1567_v8 }
 0xa14   : > { %v1577_v10 = vmul.f32 1.442695, %v1574_v9 }
 0xa15   : > { %v1570_v11 = vpop.xlane.xlu0 %1569 }
 0xa16   : > { %5775 = vpow2.f32 %v1577_v10  ;;  %v1575_v12 = vsub.f32 %v1557_v63, %v1570_v11 }
 0xa18   : > { %v1579_v15 = vmul.f32 1.442695, %v1575_v12 }
 0xa19   : > { %v1573_v17 = vpop.xlane.xlu0 %1572 }
 0xa1a   : > { %5777 = vpow2.f32 %v1579_v15  ;;  %v1576_v20 = vsub.f32 %v1562_v4, %v1573_v17 }
 0xa1c   : > { %v1581_v22 = vmul.f32 1.442695, %v1576_v20 }
 0xa1e   : > { %5779 = vpow2.f32 %v1581_v22 }
 0xa20   : > { %v5776_v23 = vpop.eup %5775 }
 0xa21   : > { %v1583_v25 = vsel %vm586_vm6, %v5776_v23, 0.0 }
 0xa22   : > { %1584 = vadd.xlane.f32.xlu0 %v1583_v25 }
 0xa24   : > { %v5778_v26 = vpop.eup %5777 }
 0xa25   : > { %v1586_v28 = vsel %vm586_vm6, %v5778_v26, 0.0 }
 0xa26   : > { %1587 = vadd.xlane.f32.xlu1 %v1586_v28 }
 0xa28   : > { %v5780_v29 = vpop.eup %5779 }
 0xa29   : > { %v1589_v30 = vsel %vm586_vm6, %v5780_v29, 0.0 }
 0xa2a   : > { %1590 = vadd.xlane.f32.xlu0 %v1589_v30 }
 0xa37   : > { %5689 = vrot.lane.b32.xlu1 %v6052_v16, %s5907_s26 }
 0xa40   : > { %1602 = vrot.lane.b32.xlu0 %v6054_v19, %s5907_s26 }
 0xa43   : > { %v1444_v31 = vpop.f32.mrb[30].mxu1 }
 0xa44   : > { %v1458_v32 = vadd.f32 %v1444_v31, %v6207_v46  ;;  %v5049_v33 = vpop.f32.mrb[31].mxu1 }
 0xa47   : > { %v1449_v34 = vpop.f32.mrb[32].mxu1 }
 0xa48   : > { %v1459_v14 = vadd.f32 %v1449_v34, %v6209_v49  ;;  %v5052_v35 = vpop.f32.mrb[33].mxu1 }
 0xa49   : > { %v1856_v35 = vld [vmem:[%s7037_s2 + $0x48] sm:$0xff] }
 0xa4b   : > { %v1454_v13 = vpop.f32.mrb[34].mxu1 }
 0xa4c   : > { %v1460_v16 = vadd.f32 %v1454_v13, %v6211_v52  ;;  %v5055_v37 = vpop.f32.mrb[35].mxu1  ;;  %v1857_v13 = vld [vmem:[%s7037_s2 + $0x50] sm:$0xff] }
 0xaaf   : > { %v1585_v19 = vpop.xlane.xlu0 %1584 }
 0xab0   : > { %5781 = vrcp.f32 %v1585_v19  ;;  %v1980_v19 = vld [vmem:[%s7037_s2 + $0x60] sm:$0xff] }
 0xab3   : > { %v1588_v38 = vpop.xlane.xlu1 %1587 }
 0xab4   : > { %5783 = vrcp.f32 %v1588_v38  ;;  %v1981_v38 = vld [vmem:[%s7037_s2 + $0x68] sm:$0xff] }
 0xab7   : > { %v5690_v46 = vpop.permute.xlu1 %5689  ;;  %v1591_v39 = vpop.xlane.xlu0 %1590 }
 0xab8   : > { %v5692_v41 = vunpack.i.h.bf16 %v5690_v46  ;;  %v5691_v49 = vunpack.i.l.bf16 %v5690_v46  ;;  %5785 = vrcp.f32 %v1591_v39  ;;  %v5518_v46 = vpack.c.bf16 %v1981_v38, %v1980_v19 }
 0xaba   : > { %v5509_v42 = vpack.c.bf16 %v5692_v41, %v5691_v49  ;;  %v5782_v43 = vpop.eup %5781 }
 0xabb   : > { %v1595_v44 = vmul.f32 %v5782_v43, %v5776_v23  ;;  %v1603_v45 = vpop.permute.xlu0 %1602 }
 0xabc   : > { %5510 = vmatpush3.bf16.msra.mxu1 %v5509_v42 }
 0xabd   : > { %5075 = vmatprep.subr.mxu1 %v5895_v6 }
 0xabe   : > { %v5784_v47 = vpop.eup %5783 }
 0xabf   : > { %v1596_v52 = vmul.f32 %v5784_v47, %v5778_v26 }
 0xac0   : > { %5076 = vmatpush3.msra.mxu1 %v1603_v45 }
 0xac1   : > { %5078 = vmatmul.mubr.msk.f32.vlgmr.msra.gmra.mrb[36].mxu1 %vm586_vm6, %v1595_v44  ;;  %5511 = vmatprep.subr.bf16.mxu1 %v5893_v3 }
 0xac2   : > { %5080 = vmatprep.mubr.msk.f32.mxu1 %vm5894_vm0, %v5895_v6  ;;  %v5786_v48 = vpop.eup %5785 }
 0xac3   : > { %v1597_v50 = vmul.f32 %v5786_v48, %v5780_v29 }
 0xac5   : > { %5081 = vmatmul.mubr.msk.f32.gmra.mrb[38].mxu1 %vm586_vm6, %v1596_v52 }
 0xac6   : > { %5083 = vmatprep.mubr.msk.f32.mxu1 %vm5894_vm0, %v5895_v6 }
 0xac9   : > { %5084 = vmatmul.mubr.msk.f32.gmra.mrb[40].mxu1 %vm586_vm6, %v1597_v50  ;;  %v4561_v50 = vld [vmem:[%s7038_s3 + $0x4] ss:$0 sm:$0xff] }
 0xaca   : > { %5105 = vmatprep.mubr.msk.f32.mxu1 %vm5894_vm0, %v5895_v6 }
 0xb94   : > { %v1682_v51 = vpop.f32.mrb[36].mxu1 }
 0xb95   : > { %v5079_v53 = vpop.f32.mrb[37].mxu1  ;;  %5089 = vmatmul.mubr.msk.f32.vlgmr.msra.gmra.mrb[36].mxu0 %vm493_vm3, %v1682_v51 }
 0xb96   : > { %5091 = vmatprep.mubr.msk.f32.mxu0 %vm5894_vm0, %v5895_v6  ;;  %5519 = vmatpush3.bf16.msra.mxu0 %v5518_v46  ;;  %v4562_v53 = vld [vmem:[%s7038_s3 + $0x5] ss:$0 sm:$0xff] }
 0xb97   : > { %5520 = vmatprep.subr.bf16.mxu0 %v5893_v3 }
 0xb98   : > { %v1687_v54 = vpop.f32.mrb[38].mxu1 }
 0xb99   : > { %v5082_v55 = vpop.f32.mrb[39].mxu1  ;;  %5092 = vmatmul.mubr.msk.f32.gmra.mrb[38].mxu0 %vm493_vm3, %v1687_v54 }
 0xb9a   : > { %5094 = vmatprep.mubr.msk.f32.mxu0 %vm5894_vm0, %v5895_v6 }
 0xb9c   : > { %v1692_v56 = vpop.f32.mrb[40].mxu1 }
 0xb9d   : > { %v5085_v57 = vpop.f32.mrb[41].mxu1  ;;  %5095 = vmatmul.mubr.msk.f32.gmra.mrb[40].mxu0 %vm493_vm3, %v1692_v56 }
 0xb9e   : > { %5146 = vmatprep.mubr.msk.f32.mxu0 %vm5894_vm0, %v5895_v6 }
 0xc68   : > { %v1772_v58 = vpop.f32.mrb[36].mxu0 }
 0xc69   : > { %v1786_v59 = vadd.f32 %v1772_v58, %v1458_v32  ;;  %v5090_v60 = vpop.f32.mrb[37].mxu0 }
 0xc6b   : > { %v1789_v62 = vadd.f32 %v1786_v59, %v5996_v18 }
 0xc6c   : > { %v1777_v63 = vpop.f32.mrb[38].mxu0 }
 0xc6d   : > { %v6318_v0 = vadd.f32 %v4560_v61, %v1789_v62  ;;  %v1787_v1 = vadd.f32 %v1777_v63, %v1459_v14  ;;  %v5093_v2 = vpop.f32.mrb[39].mxu0  ;;  %v1855_v14 = vld [vmem:[%s7037_s2 + $0x40] sm:$0xff] }
 0xc6e   : > { %v5512_v36 = vpack.c.bf16 %v1856_v35, %v1855_v14  ;;  %v1983_v2 = vld [vmem:[%s7037_s2 + $0x78] sm:$0xff] }
 0xc6f   : > { %v1790_v4 = vadd.f32 %v1787_v1, %v6000_v21  ;;  %v1802_v5 = vsel %vm331_vm2, %v6318_v0, 0.0  ;;  %v1982_v1 = vld [vmem:[%s7037_s2 + $0x70] sm:$0xff] }
 0xc70   : > { %1803 = vadd.xlane.f32.xlu1 %v1802_v5  ;;  %v1782_v7 = vpop.f32.mrb[40].mxu0  ;;  %5513 = vmatpush3.bf16.msra.mxu1 %v5512_v36  ;;  %v1984_v5 = vld [vmem:[%s7037_s2 + $0x80] sm:$0xff] }
 0xc71   : > { %v6323_v8 = vadd.f32 %v4560_v61, %v1790_v4  ;;  %v1788_v9 = vadd.f32 %v1782_v7, %v1460_v16  ;;  %v5096_v10 = vpop.f32.mrb[41].mxu0  ;;  %5514 = vmatprep.subr.bf16.mxu1 %v5893_v3  ;;  %v1858_v16 = vld [vmem:[%s7037_s2 + $0x58] sm:$0xff]  ;;  %v5521_v4 = vpack.c.bf16 %v1983_v2, %v1982_v1  ;;  %v1985_v7 = vld [vmem:[%s7037_s2 + $0x88] sm:$0xff] }
 0xc72   : > { %v5515_v37 = vpack.c.bf16 %v1858_v16, %v1857_v13  ;;  %v1986_v10 = vld [vmem:[%s7037_s2 + $0x90] sm:$0xff] }
 0xc73   : > { %v1791_v11 = vadd.f32 %v1788_v9, %v6004_v24  ;;  %v1805_v18 = vsel %vm331_vm2, %v6323_v8, 0.0  ;;  %5522 = vmatpush3.bf16.msra.mxu0 %v5521_v4  ;;  %v5524_v9 = vpack.c.bf16 %v1985_v7, %v1984_v5  ;;  %v2086_v7 = vld [vmem:[%s7037_s2 + $0xf0] sm:$0xff] }
 0xc74   : > { %1806 = vadd.xlane.f32.xlu0 %v1805_v18  ;;  %5516 = vmatpush3.bf16.msra.mxu1 %v5515_v37 }
 0xc75   : > { %v6328_v12 = vadd.f32 %v4560_v61, %v1791_v11  ;;  %5541 = vmatprep.subr.bf16.mxu1 %v5893_v3  ;;  %5523 = vmatprep.subr.bf16.mxu0 %v5893_v3  ;;  %v1987_v11 = vld [vmem:[%s7037_s2 + $0x98] sm:$0xff] }
 0xc76   : > { %v5527_v18 = vpack.c.bf16 %v1987_v11, %v1986_v10  ;;  %v4567_v11 = vld [vmem:[%s7038_s3 + $0x7] ss:$0 sm:$0xff] }
 0xc77   : > { %v1808_v21 = vsel %vm331_vm2, %v6328_v12, 0.0  ;;  %5525 = vmatpush3.bf16.msra.mxu0 %v5524_v9  ;;  %v2087_v9 = vld [vmem:[%s7037_s2 + $0xf8] sm:$0xff] }
 0xc78   : > { %1809 = vadd.xlane.f32.xlu1 %v1808_v21  ;;  %5526 = vmatprep.subr.bf16.mxu0 %v5893_v3  ;;  %v1988_v21 = vld [vmem:[%s7037_s2 + $0xa0] sm:$0xff]  ;;  %v5545_v10 = vpack.c.bf16 %v2087_v9, %v2086_v7 }
 0xc7b   : > { %5528 = vmatpush3.bf16.msra.mxu0 %v5527_v18 }
 0xc7c   : > { %5529 = vmatprep.subr.bf16.mxu0 %v5893_v3 }
 0xcfd   : > { %v1804_v15 = vpop.xlane.xlu1 %1803 }
 0xcfe   : > { %v1811_v17 = vmul.f32 0.03125, %v1804_v15  ;;  %v1989_v15 = vld [vmem:[%s7037_s2 + $0xa8] sm:$0xff] }
 0xd00   : > { %v1814_v20 = vsub.f32 %v6318_v0, %v1811_v17  ;;  %v5530_v17 = vpack.c.bf16 %v1989_v15, %v1988_v21 }
 0xd01   : > { %v1807_v22 = vpop.xlane.xlu0 %1806 }
 0xd02   : > { %v1812_v23 = vmul.f32 0.03125, %v1807_v22  ;;  %v1817_v25 = vmul.f32 %v1814_v20, %v1814_v20  ;;  %v1991_v22 = vld [vmem:[%s7037_s2 + $0xb8] sm:$0xff]  ;;  %5531 = vmatpush3.bf16.msra.mxu0 %v5530_v17 }
 0xd03   : > { %5532 = vmatprep.subr.bf16.mxu0 %v5893_v3 }
 0xd04   : > { %v1815_v26 = vsub.f32 %v6323_v8, %v1812_v23  ;;  %v1820_v24 = vsel %vm331_vm2, %v1817_v25, 0.0  ;;  %v1992_v25 = vld [vmem:[%s7037_s2 + $0xc0] sm:$0xff] }
 0xd05   : > { %1821 = vadd.xlane.f32.xlu0 %v1820_v24  ;;  %v1810_v28 = vpop.xlane.xlu1 %1809 }
 0xd06   : > { %v1813_v29 = vmul.f32 0.03125, %v1810_v28  ;;  %v1818_v30 = vmul.f32 %v1815_v26, %v1815_v26  ;;  %v1994_v28 = vld [vmem:[%s7037_s2 + $0xd0] sm:$0xff] }
 0xd08   : > { %v1816_v31 = vsub.f32 %v6328_v12, %v1813_v29  ;;  %v1823_v32 = vsel %vm331_vm2, %v1818_v30, 0.0  ;;  %v1995_v29 = vld [vmem:[%s7037_s2 + $0xd8] sm:$0xff] }
 0xd09   : > { %1824 = vadd.xlane.f32.xlu1 %v1823_v32  ;;  %v5539_v30 = vpack.c.bf16 %v1995_v29, %v1994_v28  ;;  %v2085_v32 = vld [vmem:[%s7037_s2 + $0xe8] sm:$0xff] }
 0xd0a   : > { %v1819_v33 = vmul.f32 %v1816_v31, %v1816_v31  ;;  %v2210_v29 = vld [vmem:[%s7037_s2 + $0x108] sm:$0xff] }
 0xd0c   : > { %v1826_v34 = vsel %vm331_vm2, %v1819_v33, 0.0 }
 0xd0d   : > { %1827 = vadd.xlane.f32.xlu0 %v1826_v34  ;;  %v4563_v34 = vld [vmem:[%s7038_s3 + $0x6] ss:$0 sm:$0xff] }
 0xd92   : > { %v1822_v39 = vpop.xlane.xlu0 %1821 }
 0xd93   : > { %v1829_v41 = vmul.f32 0.03125, %v1822_v39 }
 0xd95   : > { %v1832_v49 = vadd.f32 1e-06, %v1829_v41 }
 0xd96   : > { %v1825_v42 = vpop.xlane.xlu1 %1824 }
 0xd97   : > { %5787 = vrsqrt.f32 %v1832_v49  ;;  %v1830_v43 = vmul.f32 0.03125, %v1825_v42 }
 0xd99   : > { %v1833_v44 = vadd.f32 1e-06, %v1830_v43 }
 0xd9a   : > { %v1828_v45 = vpop.xlane.xlu0 %1827 }
 0xd9b   : > { %5789 = vrsqrt.f32 %v1833_v44  ;;  %v1831_v47 = vmul.f32 0.03125, %v1828_v45 }
 0xd9d   : > { %v1834_v52 = vadd.f32 1e-06, %v1831_v47 }
 0xd9f   : > { %5791 = vrsqrt.f32 %v1834_v52 }
 0xda1   : > { %v5788_v48 = vpop.eup %5787 }
 0xda2   : > { %v1838_v51 = vmul.f32 %v5788_v48, %v1814_v20  ;;  %v1990_v20 = vld [vmem:[%s7037_s2 + $0xb0] sm:$0xff] }
 0xda3   : > { %v5533_v23 = vpack.c.bf16 %v1991_v22, %v1990_v20 }
 0xda4   : > { %v1845_v54 = vmul.f32 %v4561_v50, %v1838_v51 }
 0xda5   : > { %v5790_v55 = vpop.eup %5789  ;;  %5534 = vmatpush3.bf16.msra.mxu0 %v5533_v23 }
 0xda6   : > { %v1852_v56 = vadd.f32 %v4562_v53, %v1845_v54  ;;  %v1839_v57 = vmul.f32 %v5790_v55, %v1815_v26  ;;  %v1993_v26 = vld [vmem:[%s7037_s2 + $0xc8] sm:$0xff]  ;;  %5535 = vmatprep.subr.bf16.mxu0 %v5893_v3 }
 0xda7   : > { %v5536_v24 = vpack.c.bf16 %v1993_v26, %v1992_v25 }
 0xda8   : > { %5106 = vmatmul.mubr.msk.f32.vlgmr.msra.gmra.mrb[42].mxu1 %vm331_vm2, %v1852_v56  ;;  %v1846_v58 = vmul.f32 %v4561_v50, %v1839_v57 }
 0xda9   : > { %v5792_v59 = vpop.eup %5791  ;;  %5108 = vmatprep.mubr.msk.f32.mxu1 %vm5894_vm0, %v5895_v6  ;;  %5537 = vmatpush3.bf16.msra.mxu0 %v5536_v24 }
 0xdaa   : > { %v1853_v60 = vadd.f32 %v4562_v53, %v1846_v58  ;;  %v1840_v61 = vmul.f32 %v5792_v59, %v1816_v31  ;;  %5538 = vmatprep.subr.bf16.mxu0 %v5893_v3  ;;  %v2084_v31 = vld [vmem:[%s7037_s2 + $0xe0] sm:$0xff] }
 0xdab   : > { %v5542_v33 = vpack.c.bf16 %v2085_v32, %v2084_v31 }
 0xdac   : > { %5109 = vmatmul.mubr.msk.f32.gmra.mrb[44].mxu1 %vm331_vm2, %v1853_v60  ;;  %v1847_v62 = vmul.f32 %v4561_v50, %v1840_v61 }
 0xdad   : > { %5111 = vmatprep.mubr.msk.f32.mxu1 %vm5894_vm0, %v5895_v6  ;;  %5540 = vmatpush3.bf16.msra.mxu0 %v5539_v30 }
 0xdae   : > { %v1854_v63 = vadd.f32 %v4562_v53, %v1847_v62  ;;  %5556 = vmatprep.subr.bf16.mxu0 %v5893_v3  ;;  %5543 = vmatpush3.bf16.msra.mxu1 %v5542_v33 }
 0xdaf   : > { %5544 = vmatprep.subr.bf16.mxu1 %v5893_v3 }
 0xdb0   : > { %5112 = vmatmul.mubr.msk.f32.gmra.mrb[46].mxu1 %vm331_vm2, %v1854_v63 }
 0xdb1   : > { %5163 = vmatprep.mubr.msk.f32.mxu1 %vm5894_vm0, %v5895_v6 }
 0xdb2   : > { %5546 = vmatpush3.bf16.msra.mxu1 %v5545_v10 }
 0xdb3   : > { %5547 = vmatprep.subr.bf16.mxu1 %v5893_v3 }
 0xe7b   : > { %v1939_v14 = vpop.f32.mrb[42].mxu1 }
 0xe7c   : > { %v1940_v35 = vadd.f32 %v4563_v34, %v1939_v14  ;;  %v5107_v36 = vpop.f32.mrb[43].mxu1 }
 0xe7e   : > { %v1956_v13 = vmul.f32 0.044715, %v1940_v35  ;;  %v1953_v57 = vmul.f32 0.5, %v1940_v35 }
 0xe7f   : > { %v1944_v16 = vpop.f32.mrb[44].mxu1 }
 0xe80   : > { %v1959_v37 = vmul.f32 %v1956_v13, %v1940_v35  ;;  %v1945_v19 = vadd.f32 %v4563_v34, %v1944_v16  ;;  %v5110_v38 = vpop.f32.mrb[45].mxu1 }
 0xe82   : > { %v1962_v46 = vmul.f32 %v1959_v37, %v1940_v35  ;;  %v1957_v39 = vmul.f32 0.044715, %v1945_v19  ;;  %v1954_v61 = vmul.f32 0.5, %v1945_v19 }
 0xe83   : > { %v1949_v41 = vpop.f32.mrb[46].mxu1 }
 0xe84   : > { %v1965_v49 = vadd.f32 %v1962_v46, %v1940_v35  ;;  %v1960_v42 = vmul.f32 %v1957_v39, %v1945_v19  ;;  %v1950_v43 = vadd.f32 %v4563_v34, %v1949_v41  ;;  %v5113_v44 = vpop.f32.mrb[47].mxu1 }
 0xe86   : > { %v1968_v45 = vmul.f32 0.7978846, %v1965_v49  ;;  %v1958_v47 = vmul.f32 0.044715, %v1950_v43  ;;  %v1963_v52 = vmul.f32 %v1960_v42, %v1945_v19  ;;  %v1955_v2 = vmul.f32 0.5, %v1950_v43 }
 0xe88   : > { %5793 = vtanh.f32 %v1968_v45  ;;  %v1961_v48 = vmul.f32 %v1958_v47, %v1950_v43  ;;  %v1966_v50 = vadd.f32 %v1963_v52, %v1945_v19 }
 0xe8a   : > { %v1969_v51 = vmul.f32 0.7978846, %v1966_v50  ;;  %v1964_v53 = vmul.f32 %v1961_v48, %v1950_v43 }
 0xe8c   : > { %5795 = vtanh.f32 %v1969_v51  ;;  %v1967_v54 = vadd.f32 %v1964_v53, %v1950_v43 }
 0xe8e   : > { %v1970_v55 = vmul.f32 0.7978846, %v1967_v54 }
 0xe90   : > { %5797 = vtanh.f32 %v1970_v55 }
 0xe92   : > { %v5794_v56 = vpop.eup %5793 }
 0xe93   : > { %v1974_v58 = vadd.f32 1.0, %v5794_v56 }
 0xe95   : > { %v1977_v59 = vmul.f32 %v1974_v58, %v1953_v57 }
 0xe96   : > { %v5796_v60 = vpop.eup %5795 }
 0xe97   : > { %5147 = vmatmul.mubr.f32.vlgmr.msra.gmra.mrb[42].mxu0 %v1977_v59  ;;  %v1975_v62 = vadd.f32 1.0, %v5796_v60 }
 0xe98   : > { %5149 = vmatprep.mubr.msk.f32.mxu0 %vm5894_vm0, %v5895_v6 }
 0xe99   : > { %v1978_v63 = vmul.f32 %v1975_v62, %v1954_v61 }
 0xe9a   : > { %v5798_v1 = vpop.eup %5797 }
 0xe9b   : > { %5150 = vmatmul.mubr.f32.gmra.mrb[44].mxu0 %v1978_v63  ;;  %v1976_v4 = vadd.f32 1.0, %v5798_v1  ;;  %v4572_v1 = vld [vmem:[%s7038_s3 + $0x9] ss:$0 sm:$0xff] }
 0xe9c   : > { %5152 = vmatprep.mubr.msk.f32.mxu0 %vm5894_vm0, %v5895_v6 }
 0xe9d   : > { %v1979_v5 = vmul.f32 %v1976_v4, %v1955_v2 }
 0xe9f   : > { %5153 = vmatmul.mubr.f32.gmra.mrb[46].mxu0 %v1979_v5 }
 0xea0   : > { %5208 = vmatprep.mubr.msk.f32.mxu0 %vm5894_vm0, %v5895_v6 }
 0xf6a   : > { %v2067_v18 = vpop.f32.mrb[42].mxu0 }
 0xf6b   : > { %v2068_v21 = vadd.f32 %v4567_v11, %v2067_v18  ;;  %v5148_v15 = vpop.f32.mrb[43].mxu0 }
 0xf6d   : > { %v6450_v17 = vadd.f32 %v2068_v21, %v6318_v0 }
 0xf6e   : > { %v2072_v20 = vpop.f32.mrb[44].mxu0 }
 0xf6f   : > { %v2073_v22 = vadd.f32 %v4567_v11, %v2072_v20  ;;  %v5151_v23 = vpop.f32.mrb[45].mxu0  ;;  %5164 = vmatmul.mubr.msk.f32.vlgmr.msra.gmra.mrb[48].mxu1 %vm331_vm2, %v6450_v17 }
 0xf70   : > { %5166 = vmatprep.mubr.msk.f32.mxu1 %vm5894_vm0, %v5895_v6 }
 0xf71   : > { %v6457_v25 = vadd.f32 %v2073_v22, %v6323_v8  ;;  %v2209_v8 = vld [vmem:[%s7037_s2 + $0x100] sm:$0xff] }
 0xf72   : > { %v2077_v26 = vpop.f32.mrb[46].mxu0  ;;  %v5548_v30 = vpack.c.bf16 %v2210_v29, %v2209_v8 }
 0xf73   : > { %v2078_v24 = vadd.f32 %v4567_v11, %v2077_v26  ;;  %v5154_v28 = vpop.f32.mrb[47].mxu0  ;;  %5167 = vmatmul.mubr.msk.f32.gmra.mrb[50].mxu1 %vm331_vm2, %v6457_v25 }
 0xf74   : > { %5169 = vmatprep.mubr.msk.f32.mxu1 %vm5894_vm0, %v5895_v6  ;;  %5549 = vmatpush3.bf16.msra.mxu1 %v5548_v30 }
 0xf75   : > { %v6464_v0 = vadd.f32 %v2078_v24, %v6328_v12  ;;  %5550 = vmatprep.subr.bf16.mxu1 %v5893_v3  ;;  %v4568_v12 = vld [vmem:[%s7038_s3 + $0x8] ss:$0 sm:$0xff] }
 0xf77   : > { %5170 = vmatmul.mubr.msk.f32.gmra.mrb[52].mxu1 %vm331_vm2, %v6464_v0 }
 0xf78   : > { %5176 = vmatprep.mubr.msk.f32.mxu1 %vm5894_vm0, %v5895_v6 }
0x1042   : > { %v2168_v31 = vpop.f32.mrb[48].mxu1 }
0x1043   : > { %v2169_v32 = vadd.f32 %v4568_v12, %v2168_v31  ;;  %v5165_v33 = vpop.f32.mrb[49].mxu1 }
0x1045   : > { %v2185_v34 = vmul.f32 0.044715, %v2169_v32  ;;  %v2182_v53 = vmul.f32 0.5, %v2169_v32 }
0x1046   : > { %v2173_v14 = vpop.f32.mrb[50].mxu1 }
0x1047   : > { %v2188_v35 = vmul.f32 %v2185_v34, %v2169_v32  ;;  %v2174_v36 = vadd.f32 %v4568_v12, %v2173_v14  ;;  %v5168_v13 = vpop.f32.mrb[51].mxu1 }
0x1049   : > { %v2191_v16 = vmul.f32 %v2188_v35, %v2169_v32  ;;  %v2186_v37 = vmul.f32 0.044715, %v2174_v36  ;;  %v2183_v57 = vmul.f32 0.5, %v2174_v36 }
0x104a   : > { %v2178_v19 = vpop.f32.mrb[52].mxu1 }
0x104b   : > { %v2194_v38 = vadd.f32 %v2191_v16, %v2169_v32  ;;  %v2189_v46 = vmul.f32 %v2186_v37, %v2174_v36  ;;  %v2179_v39 = vadd.f32 %v4568_v12, %v2178_v19  ;;  %v5171_v41 = vpop.f32.mrb[53].mxu1 }
0x104d   : > { %v2197_v49 = vmul.f32 0.7978846, %v2194_v38  ;;  %v2192_v42 = vmul.f32 %v2189_v46, %v2174_v36  ;;  %v2187_v43 = vmul.f32 0.044715, %v2179_v39  ;;  %v2184_v61 = vmul.f32 0.5, %v2179_v39 }
0x104f   : > { %5799 = vtanh.f32 %v2197_v49  ;;  %v2195_v44 = vadd.f32 %v2192_v42, %v2174_v36  ;;  %v2190_v45 = vmul.f32 %v2187_v43, %v2179_v39  ;;  %v4576_v43 = vld [vmem:[%s7038_s3 + $0xa] ss:$0 sm:$0xff] }
0x1051   : > { %v2193_v47 = vmul.f32 %v2190_v45, %v2179_v39  ;;  %v2198_v52 = vmul.f32 0.7978846, %v2195_v44  ;;  %v4577_v45 = vld [vmem:[%s7038_s3 + $0xb] ss:$0 sm:$0xff] }
0x1053   : > { %v2196_v48 = vadd.f32 %v2193_v47, %v2179_v39  ;;  %5801 = vtanh.f32 %v2198_v52 }
0x1055   : > { %v2199_v50 = vmul.f32 0.7978846, %v2196_v48 }
0x1057   : > { %5803 = vtanh.f32 %v2199_v50 }
0x1059   : > { %v5800_v51 = vpop.eup %5799 }
0x105a   : > { %v2203_v54 = vadd.f32 1.0, %v5800_v51 }
0x105c   : > { %v2206_v55 = vmul.f32 %v2203_v54, %v2182_v53 }
0x105d   : > { %v5802_v56 = vpop.eup %5801 }
0x105e   : > { %5177 = vmatmul.mubr.msk.f32.vlgmr.msra.gmra.mrb[54].mxu1 %vm2216_vm7, %v2206_v55  ;;  %v2204_v58 = vadd.f32 1.0, %v5802_v56 }
0x105f   : > { %5179 = vmatprep.mubr.msk.f32.mxu1 %vm5894_vm0, %v5895_v6 }
0x1060   : > { %v2207_v59 = vmul.f32 %v2204_v58, %v2183_v57 }
0x1061   : > { %v5804_v60 = vpop.eup %5803 }
0x1062   : > { %5180 = vmatmul.mubr.msk.f32.gmra.mrb[56].mxu1 %vm2216_vm7, %v2207_v59  ;;  %v2205_v62 = vadd.f32 1.0, %v5804_v60 }
0x1063   : > { %5182 = vmatprep.mubr.msk.f32.mxu1 %vm5894_vm0, %v5895_v6 }
0x1064   : > { %v2208_v63 = vmul.f32 %v2205_v62, %v2184_v61 }
0x1066   : > { %5183 = vmatmul.mubr.msk.f32.gmra.mrb[58].mxu1 %vm2216_vm7, %v2208_v63 }
0x1067   : > { %5193 = vmatprep.mubr.msk.f32.mxu1 %vm5894_vm0, %v5895_v6 }
0x1131   : > { %v2292_v2 = vpop.f32.mrb[54].mxu1 }
0x1132   : > { %v2293_v4 = vadd.f32 %v4572_v1, %v2292_v2  ;;  %v5178_v5 = vpop.f32.mrb[55].mxu1 }
0x1134   : > { %v2306_v7 = vadd.f32 %v2293_v4, %v6450_v17 }
0x1135   : > { %v2297_v9 = vpop.f32.mrb[56].mxu1 }
0x1136   : > { %v2298_v10 = vadd.f32 %v4572_v1, %v2297_v9  ;;  %v5181_v11 = vpop.f32.mrb[57].mxu1  ;;  %v2311_v18 = vsel %vm331_vm2, %v2306_v7, 0.0 }
0x1137   : > { %2312 = vadd.xlane.f32.xlu1 %v2311_v18 }
0x1138   : > { %v2307_v21 = vadd.f32 %v2298_v10, %v6457_v25 }
0x1139   : > { %v2302_v15 = vpop.f32.mrb[58].mxu1 }
0x113a   : > { %v2303_v20 = vadd.f32 %v4572_v1, %v2302_v15  ;;  %v5184_v22 = vpop.f32.mrb[59].mxu1  ;;  %v2314_v23 = vsel %vm331_vm2, %v2307_v21, 0.0 }
0x113b   : > { %2315 = vadd.xlane.f32.xlu0 %v2314_v23  ;;  %v2419_v22 = vld [vmem:[%s7037_s2 + $0x110] sm:$0xff]  ;;  %v2420_v23 = vld [vmem:[%s7037_s2 + $0x118] sm:$0xff] }
0x113c   : > { %v2308_v26 = vadd.f32 %v2303_v20, %v6464_v0 }
0x113e   : > { %v2317_v24 = vsel %vm331_vm2, %v2308_v26, 0.0 }
0x113f   : > { %2318 = vadd.xlane.f32.xlu1 %v2317_v24  ;;  %v2421_v24 = vld [vmem:[%s7037_s2 + $0x120] sm:$0xff] }
0x11c4   : > { %v2313_v17 = vpop.xlane.xlu1 %2312 }
0x11c5   : > { %v2320_v28 = vmul.f32 0.03125, %v2313_v17  ;;  %v2422_v17 = vld [vmem:[%s7037_s2 + $0x128] sm:$0xff] }
0x11c7   : > { %v2323_v8 = vsub.f32 %v2306_v7, %v2320_v28  ;;  %v5554_v28 = vpack.c.bf16 %v2422_v17, %v2421_v24 }
0x11c8   : > { %v2316_v29 = vpop.xlane.xlu0 %2315 }
0x11c9   : > { %v2321_v30 = vmul.f32 0.03125, %v2316_v29  ;;  %v2326_v12 = vmul.f32 %v2323_v8, %v2323_v8 }
0x11cb   : > { %v2324_v31 = vsub.f32 %v2307_v21, %v2321_v30  ;;  %v2329_v25 = vsel %vm331_vm2, %v2326_v12, 0.0 }
0x11cc   : > { %2330 = vadd.xlane.f32.xlu0 %v2329_v25  ;;  %v2319_v32 = vpop.xlane.xlu1 %2318 }
0x11cd   : > { %v2322_v33 = vmul.f32 0.03125, %v2319_v32  ;;  %v2327_v34 = vmul.f32 %v2324_v31, %v2324_v31 }
0x11cf   : > { %v2325_v14 = vsub.f32 %v2308_v26, %v2322_v33  ;;  %v2332_v35 = vsel %vm331_vm2, %v2327_v34, 0.0  ;;  %v5551_v26 = vpack.c.bf16 %v2420_v23, %v2419_v22 }
0x11d0   : > { %2333 = vadd.xlane.f32.xlu1 %v2332_v35  ;;  %v4578_v35 = vld [vmem:[%s7038_s3 + $0xc] ss:$0 sm:$0xff] }
0x11d1   : > { %v2328_v0 = vmul.f32 %v2325_v14, %v2325_v14  ;;  %5552 = vmatpush3.bf16.msra.mxu1 %v5551_v26 }
0x11d2   : > { %5553 = vmatprep.subr.bf16.mxu1 %v5893_v3 }
0x11d3   : > { %v2335_v36 = vsel %vm331_vm2, %v2328_v0, 0.0 }
0x11d4   : > { %2336 = vadd.xlane.f32.xlu0 %v2335_v36  ;;  %v4579_v36 = vld [vmem:[%s7038_s3 + $0xd] ss:$0 sm:$0xff] }
0x11d5   : > { %5555 = vmatpush3.bf16.msra.mxu1 %v5554_v28 }
0x11d6   : > { %5560 = vmatprep.subr.bf16.mxu1 %v5893_v3 }
0x1259   : > { %v2331_v13 = vpop.xlane.xlu0 %2330 }
0x125a   : > { %v2338_v16 = vmul.f32 0.03125, %v2331_v13 }
0x125c   : > { %v2341_v37 = vadd.f32 1e-05, %v2338_v16 }
0x125d   : > { %v2334_v19 = vpop.xlane.xlu1 %2333 }
0x125e   : > { %5805 = vrsqrt.f32 %v2341_v37  ;;  %v2339_v38 = vmul.f32 0.03125, %v2334_v19 }
0x1260   : > { %v2342_v46 = vadd.f32 1e-05, %v2339_v38 }
0x1261   : > { %v2337_v39 = vpop.xlane.xlu0 %2336 }
0x1262   : > { %5807 = vrsqrt.f32 %v2342_v46  ;;  %v2340_v41 = vmul.f32 0.03125, %v2337_v39 }
0x1264   : > { %v2343_v49 = vadd.f32 1e-05, %v2340_v41 }
0x1266   : > { %5809 = vrsqrt.f32 %v2343_v49 }
0x1268   : > { %v5806_v42 = vpop.eup %5805 }
0x1269   : > { %v2347_v44 = vmul.f32 %v5806_v42, %v2323_v8 }
0x126b   : > { %v2354_v47 = vmul.f32 %v4576_v43, %v2347_v44 }
0x126c   : > { %v5808_v52 = vpop.eup %5807 }
0x126d   : > { %v6507_v48 = vadd.f32 %v4577_v45, %v2354_v47  ;;  %v2348_v50 = vmul.f32 %v5808_v52, %v2324_v31 }
0x126f   : > { %v2366_v51 = vsel %vm331_vm2, %v6507_v48, 0.0  ;;  %v2355_v53 = vmul.f32 %v4576_v43, %v2348_v50 }
0x1270   : > { %v5810_v54 = vpop.eup %5809  ;;  %2367 = vadd.xlane.f32.xlu1 %v2366_v51 }
0x1271   : > { %v6511_v55 = vadd.f32 %v4577_v45, %v2355_v53  ;;  %v2349_v56 = vmul.f32 %v5810_v54, %v2325_v14 }
0x1273   : > { %v2369_v57 = vsel %vm331_vm2, %v6511_v55, 0.0  ;;  %v2356_v58 = vmul.f32 %v4576_v43, %v2349_v56 }
0x1274   : > { %2370 = vadd.xlane.f32.xlu0 %v2369_v57 }
0x1275   : > { %v6515_v59 = vadd.f32 %v4577_v45, %v2356_v58  ;;  %v4580_v45 = vld [vmem:[%s7038_s3 + $0xe] ss:$0 sm:$0xff] }
0x1277   : > { %v2372_v60 = vsel %vm331_vm2, %v6515_v59, 0.0 }
0x1278   : > { %2373 = vadd.xlane.f32.xlu1 %v2372_v60 }
0x12fd   : > { %v2368_v61 = vpop.xlane.xlu1 %2367 }
0x12fe   : > { %v2375_v62 = vmul.f32 0.03125, %v2368_v61 }
0x1300   : > { %v2378_v63 = vsub.f32 %v6507_v48, %v2375_v62 }
0x1301   : > { %v2371_v1 = vpop.xlane.xlu0 %2370 }
0x1302   : > { %v2376_v2 = vmul.f32 0.03125, %v2371_v1  ;;  %v2381_v4 = vmul.f32 %v2378_v63, %v2378_v63 }
0x1304   : > { %v2379_v5 = vsub.f32 %v6511_v55, %v2376_v2  ;;  %v2384_v7 = vsel %vm331_vm2, %v2381_v4, 0.0 }
0x1305   : > { %2385 = vadd.xlane.f32.xlu0 %v2384_v7  ;;  %v2374_v9 = vpop.xlane.xlu1 %2373 }
0x1306   : > { %v2377_v10 = vmul.f32 0.03125, %v2374_v9  ;;  %v2382_v11 = vmul.f32 %v2379_v5, %v2379_v5 }
0x1308   : > { %v2380_v18 = vsub.f32 %v6515_v59, %v2377_v10  ;;  %v2387_v21 = vsel %vm331_vm2, %v2382_v11, 0.0 }
0x1309   : > { %2388 = vadd.xlane.f32.xlu1 %v2387_v21 }
0x130a   : > { %v2383_v15 = vmul.f32 %v2380_v18, %v2380_v18 }
0x130c   : > { %v2390_v20 = vsel %vm331_vm2, %v2383_v15, 0.0 }
0x130d   : > { %2391 = vadd.xlane.f32.xlu0 %v2390_v20 }
0x1392   : > { %v2386_v8 = vpop.xlane.xlu0 %2385 }
0x1393   : > { %v2393_v29 = vmul.f32 0.03125, %v2386_v8 }
0x1395   : > { %v2396_v30 = vadd.f32 1e-06, %v2393_v29 }
0x1396   : > { %v2389_v12 = vpop.xlane.xlu1 %2388 }
0x1397   : > { %5811 = vrsqrt.f32 %v2396_v30  ;;  %v2394_v31 = vmul.f32 0.03125, %v2389_v12 }
0x1399   : > { %v2397_v25 = vadd.f32 1e-06, %v2394_v31 }
0x139a   : > { %v2392_v32 = vpop.xlane.xlu0 %2391 }
0x139b   : > { %5813 = vrsqrt.f32 %v2397_v25  ;;  %v2395_v33 = vmul.f32 0.03125, %v2392_v32 }
0x139d   : > { %v2398_v34 = vadd.f32 1e-06, %v2395_v33 }
0x139f   : > { %5815 = vrsqrt.f32 %v2398_v34 }
0x13a1   : > { %v5812_v14 = vpop.eup %5811 }
0x13a2   : > { %v2402_v0 = vmul.f32 %v5812_v14, %v2378_v63 }
0x13a4   : > { %v2409_v13 = vmul.f32 %v4578_v35, %v2402_v0 }
0x13a5   : > { %v5814_v16 = vpop.eup %5813 }
0x13a6   : > { %v2416_v37 = vadd.f32 %v4579_v36, %v2409_v13  ;;  %v2403_v19 = vmul.f32 %v5814_v16, %v2379_v5 }
0x13a8   : > { %5194 = vmatmul.mubr.msk.f32.vlgmr.msra.gmra.mrb[60].mxu1 %vm331_vm2, %v2416_v37  ;;  %v2410_v38 = vmul.f32 %v4578_v35, %v2403_v19 }
0x13a9   : > { %v5816_v46 = vpop.eup %5815  ;;  %5196 = vmatprep.mubr.msk.f32.mxu1 %vm5894_vm0, %v5895_v6 }
0x13aa   : > { %v2417_v39 = vadd.f32 %v4579_v36, %v2410_v38  ;;  %v2404_v41 = vmul.f32 %v5816_v46, %v2380_v18 }
0x13ac   : > { %5197 = vmatmul.mubr.msk.f32.gmra.mrb[62].mxu1 %vm331_vm2, %v2417_v39  ;;  %v2411_v49 = vmul.f32 %v4578_v35, %v2404_v41 }
0x13ad   : > { %5199 = vmatprep.mubr.msk.f32.mxu1 %vm5894_vm0, %v5895_v6 }
0x13ae   : > { %v2418_v42 = vadd.f32 %v4579_v36, %v2411_v49 }
0x13b0   : > { %5200 = vmatmul.mubr.msk.f32.gmra.mrb[64].mxu1 %vm331_vm2, %v2418_v42 }
0x13b1   : > { %5223 = vmatprep.mubr.msk.f32.mxu1 %vm5894_vm0, %v5895_v6 }
0x147b   : > { %v2503_v43 = vpop.f32.mrb[60].mxu1 }
0x147c   : > { %v5195_v44 = vpop.f32.mrb[61].mxu1  ;;  %v6557_v52 = vadd.f32 %v4580_v45, %v2503_v43 }
0x147f   : > { %v2508_v47 = vpop.f32.mrb[62].mxu1 }
0x1480   : > { %v6559_v50 = vadd.f32 %v4580_v45, %v2508_v47  ;;  %v5198_v51 = vpop.f32.mrb[63].mxu1 }
0x1482   : > { %v6563_v53 = vpack.i.bf16 %v6559_v50, %v6557_v52 }
0x1483   : > { %v2513_v54 = vpop.f32.mrb[64].mxu1 }
0x1484   : > { %v6565_v56 = vadd.f32 %v4580_v45, %v2513_v54  ;;  %5694 = vrot.lane.b32.xlu1 %v6563_v53, %s5896_s8  ;;  %v5201_v57 = vpop.f32.mrb[65].mxu1 }
0x1486   : > { %2524 = vrot.lane.b32.xlu0 %v6565_v56, %s5896_s8 }
0x1488   : > { %5699 = vrot.lane.b32.xlu1 %v6563_v53, %s5898_s10 }
0x148a   : > { %2752 = vrot.lane.b32.xlu0 %v6559_v50, %s5897_s9 }
0x148c   : > { %2760 = vrot.lane.b32.xlu1 %v6565_v56, %s5898_s10 }
0x1490   : > { %2750 = vrot.lane.b32.xlu1 %v6557_v52, %s5897_s9 }
0x1494   : > { %2754 = vrot.lane.b32.xlu1 %v6565_v56, %s5897_s9 }
0x14f6   : > { %v5695_v58 = vpop.permute.xlu1 %5694 }
0x14f7   : > { %v5697_v60 = vunpack.i.h.bf16 %v5695_v58  ;;  %v5696_v61 = vunpack.i.l.bf16 %v5695_v58 }
0x14f8   : > { %v2525_v4 = vpop.permute.xlu0 %2524 }
0x14f9   : > { %v5557_v62 = vpack.c.bf16 %v5697_v60, %v5696_v61 }
0x14fa   : > { %v5700_v63 = vpop.permute.xlu1 %5699 }
0x14fb   : > { %5559 = vmatpush3.bf16.xpose.msk.msra.mxu0 %vm6072_vm4, %v5557_v62  ;;  %v5702_v1 = vunpack.i.h.bf16 %v5700_v63  ;;  %v5701_v2 = vunpack.i.l.bf16 %v5700_v63 }
0x14fc   : > { %5206 = vmatprep.subr.mxu0 %v5895_v6  ;;  %v2753_v10 = vpop.permute.xlu0 %2752 }
0x14fd   : > { %v5564_v5 = vpack.c.bf16 %v5702_v1, %v5701_v2 }
0x14fe   : > { %v2761_v7 = vpop.permute.xlu1 %2760 }
0x1502   : > { %v2751_v9 = vpop.permute.xlu1 %2750 }
0x1503   : > { %5207 = vmatpush3.xpose.msk.msra.mxu0 %vm493_vm3, %v2525_v4 }
0x1504   : > { %5563 = vmatprep.subr.bf16.mxu0 %v5893_v3 }
0x1506   : > { %5209 = vmatmul.mubr.msk.f32.vlgmr.msra.gmra.mrb[48].mxu0 %vm493_vm3, %v6557_v52  ;;  %v2755_v11 = vpop.permute.xlu1 %2754 }
0x1507   : > { %5566 = vmatpush3.bf16.xpose.msk.msra.mxu0 %vm6072_vm4, %v5564_v5  ;;  %5211 = vmatprep.mubr.msk.f32.mxu0 %vm5894_vm0, %v5895_v6 }
0x1508   : > { %5236 = vmatprep.subr.mxu0 %v5895_v6 }
0x150a   : > { %5212 = vmatmul.mubr.msk.f32.gmra.mrb[50].mxu0 %vm493_vm3, %v6559_v50 }
0x150b   : > { %5214 = vmatprep.mubr.msk.f32.mxu0 %vm5894_vm0, %v5895_v6 }
0x150e   : > { %5215 = vmatmul.mubr.msk.f32.gmra.mrb[52].mxu0 %vm493_vm3, %v6565_v56 }
0x150f   : > { %5237 = vmatpush3.xpose.msk.msra.mxu0 %vm493_vm3, %v2761_v7  ;;  %5238 = vmatprep.mubr.msk.f32.mxu0 %vm5894_vm0, %v5895_v6 }
0x1510   : > { %5262 = vmatprep.subr.mxu0 %v5895_v6 }
0x1512   : > { %5239 = vmatmul.mubr.msk.f32.vlgmr.msra.gmra.mrb[54].mxu0 %vm493_vm3, %v2751_v9 }
0x1513   : > { %5241 = vmatprep.mubr.msk.f32.mxu0 %vm5894_vm0, %v5895_v6 }
0x1516   : > { %5242 = vmatmul.mubr.msk.f32.gmra.mrb[56].mxu0 %vm493_vm3, %v2753_v10 }
0x1517   : > { %5244 = vmatprep.mubr.msk.f32.mxu0 %vm5894_vm0, %v5895_v6 }
0x151a   : > { %5245 = vmatmul.mubr.msk.f32.gmra.mrb[58].mxu0 %vm493_vm3, %v2755_v11 }
0x151b   : > { %5264 = vmatprep.mubr.msk.f32.mxu0 %vm5894_vm0, %v5895_v6 }
0x15d9   : > { %v2604_v18 = vpop.f32.mrb[48].mxu0 }
0x15da   : > { %v2605_v21 = vadd.f32 %v2604_v18, %v6107_v40  ;;  %v5210_v15 = vpop.f32.mrb[49].mxu0 }
0x15dc   : > { %v2618_v20 = vsel %vm586_vm6, %v2605_v21, -inf }
0x15dd   : > { %2619 = vmax.xlane.f32.xlu0 %v2618_v20  ;;  %v2609_v22 = vpop.f32.mrb[50].mxu0 }
0x15de   : > { %v2610_v23 = vadd.f32 %v2609_v22, %v6107_v40  ;;  %v5213_v26 = vpop.f32.mrb[51].mxu0 }
0x15e0   : > { %v2621_v24 = vsel %vm586_vm6, %v2610_v23, -inf }
0x15e1   : > { %2622 = vmax.xlane.f32.xlu1 %v2621_v24  ;;  %v2614_v17 = vpop.f32.mrb[52].mxu0 }
0x15e2   : > { %v2615_v28 = vadd.f32 %v2614_v17, %v6107_v40  ;;  %v5216_v8 = vpop.f32.mrb[53].mxu0 }
0x15e4   : > { %v2624_v29 = vsel %vm586_vm6, %v2615_v28, -inf }
0x15e5   : > { %2625 = vmax.xlane.f32.xlu0 %v2624_v29  ;;  %v2840_v30 = vpop.f32.mrb[54].mxu0 }
0x15e6   : > { %v2841_v12 = vadd.f32 %v2840_v30, %v6107_v40  ;;  %v5240_v31 = vpop.f32.mrb[55].mxu0 }
0x15e8   : > { %v2854_v25 = vsel %vm586_vm6, %v2841_v12, -inf }
0x15e9   : > { %2855 = vmax.xlane.f32.xlu0 %v2854_v25  ;;  %v2845_v32 = vpop.f32.mrb[56].mxu0 }
0x15ea   : > { %v2846_v33 = vadd.f32 %v2845_v32, %v6107_v40  ;;  %v5243_v34 = vpop.f32.mrb[57].mxu0 }
0x15ec   : > { %v2857_v14 = vsel %vm586_vm6, %v2846_v33, -inf }
0x15ed   : > { %2858 = vmax.xlane.f32.xlu0 %v2857_v14  ;;  %v2850_v35 = vpop.f32.mrb[58].mxu0 }
0x15ee   : > { %v2851_v0 = vadd.f32 %v2850_v35, %v6107_v40  ;;  %v5246_v36 = vpop.f32.mrb[59].mxu0 }
0x15f0   : > { %v2860_v13 = vsel %vm586_vm6, %v2851_v0, -inf }
0x15f1   : > { %2861 = vmax.xlane.f32.xlu1 %v2860_v13 }
0x1602   : > { %5704 = vrot.lane.b32.xlu1 %v6563_v53, %s5900_s11 }
0x166a   : > { %v2620_v16 = vpop.xlane.xlu0 %2619 }
0x166b   : > { %v2627_v37 = vsub.f32 %v2605_v21, %v2620_v16 }
0x166d   : > { %v2630_v19 = vmul.f32 1.442695, %v2627_v37 }
0x166e   : > { %v2623_v38 = vpop.xlane.xlu1 %2622 }
0x166f   : > { %5817 = vpow2.f32 %v2630_v19  ;;  %v2628_v46 = vsub.f32 %v2610_v23, %v2623_v38 }
0x1671   : > { %v2632_v39 = vmul.f32 1.442695, %v2628_v46 }
0x1672   : > { %v2626_v41 = vpop.xlane.xlu0 %2625 }
0x1673   : > { %5819 = vpow2.f32 %v2632_v39  ;;  %v2629_v49 = vsub.f32 %v2615_v28, %v2626_v41  ;;  %v2749_v39 = vld [vmem:[%s7037_s2 + $0x130] sm:$0xff]  ;;  %v2985_v41 = vld [vmem:[%s7037_s2 + $0x138] sm:$0xff] }
0x1674   : > { %5263 = vmatpush3.msra.mxu0 %v2985_v41 }
0x1675   : > { %v2634_v42 = vmul.f32 1.442695, %v2629_v49  ;;  %5570 = vmatprep.subr.bf16.mxu0 %v5893_v3 }
0x1676   : > { %v2856_v43 = vpop.xlane.xlu0 %2855 }
0x1677   : > { %5821 = vpow2.f32 %v2634_v42  ;;  %v2863_v44 = vsub.f32 %v2841_v12, %v2856_v43 }
0x1679   : > { %v5818_v45 = vpop.eup %5817  ;;  %v2866_v47 = vmul.f32 1.442695, %v2863_v44 }
0x167a   : > { %v2859_v51 = vpop.xlane.xlu0 %2858  ;;  %v2636_v54 = vsel %vm586_vm6, %v5818_v45, 0.0 }
0x167b   : > { %5823 = vpow2.f32 %v2866_v47  ;;  %v2864_v57 = vsub.f32 %v2846_v33, %v2859_v51  ;;  %2637 = vadd.xlane.f32.xlu0 %v2636_v54 }
0x167d   : > { %v5820_v58 = vpop.eup %5819  ;;  %v2868_v60 = vmul.f32 1.442695, %v2864_v57 }
0x167e   : > { %v2862_v61 = vpop.xlane.xlu1 %2861  ;;  %v2639_v62 = vsel %vm586_vm6, %v5820_v58, 0.0 }
0x167f   : > { %5825 = vpow2.f32 %v2868_v60  ;;  %v2865_v63 = vsub.f32 %v2851_v0, %v2862_v61  ;;  %2640 = vadd.xlane.f32.xlu1 %v2639_v62 }
0x1681   : > { %v5822_v1 = vpop.eup %5821  ;;  %v2870_v2 = vmul.f32 1.442695, %v2865_v63 }
0x1682   : > { %v5705_v4 = vpop.permute.xlu1 %5704  ;;  %v2642_v5 = vsel %vm586_vm6, %v5822_v1, 0.0 }
0x1683   : > { %5827 = vpow2.f32 %v2870_v2  ;;  %v5707_v7 = vunpack.i.h.bf16 %v5705_v4  ;;  %v5706_v9 = vunpack.i.l.bf16 %v5705_v4  ;;  %2643 = vadd.xlane.f32.xlu0 %v2642_v5 }
0x1685   : > { %v5824_v10 = vpop.eup %5823  ;;  %v5561_v11 = vpack.c.bf16 %v5707_v7, %v5706_v9 }
0x1686   : > { %v2872_v18 = vsel %vm586_vm6, %v5824_v10, 0.0 }
0x1687   : > { %2873 = vadd.xlane.f32.xlu1 %v2872_v18  ;;  %5562 = vmatpush3.bf16.msra.mxu1 %v5561_v11 }
0x1688   : > { %5221 = vmatprep.subr.mxu1 %v5895_v6 }
0x1689   : > { %v5826_v21 = vpop.eup %5825 }
0x168a   : > { %v2875_v15 = vsel %vm586_vm6, %v5826_v21, 0.0 }
0x168b   : > { %2876 = vadd.xlane.f32.xlu0 %v2875_v15 }
0x168d   : > { %v5828_v20 = vpop.eup %5827 }
0x168e   : > { %v2878_v22 = vsel %vm586_vm6, %v5828_v20, 0.0 }
0x168f   : > { %2879 = vadd.xlane.f32.xlu0 %v2878_v22 }
0x1698   : > { %5709 = vrot.lane.b32.xlu1 %v6563_v53, %s5901_s12 }
0x169c   : > { %2891 = vrot.lane.b32.xlu1 %v6565_v56, %s5901_s12 }
0x16a0   : > { %5714 = vrot.lane.b32.xlu1 %v6563_v53, %s5902_s13 }
0x16a4   : > { %3174 = vrot.lane.b32.xlu1 %v6565_v56, %s5902_s13 }
0x16a5   : > { %2655 = vrot.lane.b32.xlu0 %v6565_v56, %s5900_s11 }
0x16a8   : > { %3166 = vrot.lane.b32.xlu1 %v6559_v50, %s5903_s14 }
0x16a9   : > { %3164 = vrot.lane.b32.xlu0 %v6557_v52, %s5903_s14 }
0x16ad   : > { %3168 = vrot.lane.b32.xlu0 %v6565_v56, %s5903_s14 }
0x1708   : > { %v2638_v23 = vpop.xlane.xlu0 %2637 }
0x1709   : > { %5829 = vrcp.f32 %v2638_v23 }
0x170c   : > { %v2641_v26 = vpop.xlane.xlu1 %2640 }
0x170d   : > { %5831 = vrcp.f32 %v2641_v26 }
0x1710   : > { %v2644_v24 = vpop.xlane.xlu0 %2643 }
0x1711   : > { %5833 = vrcp.f32 %v2644_v24 }
0x1713   : > { %v5830_v30 = vpop.eup %5829 }
0x1714   : > { %v2874_v17 = vpop.xlane.xlu1 %2873  ;;  %v2648_v25 = vmul.f32 %v5830_v30, %v5818_v45 }
0x1715   : > { %5835 = vrcp.f32 %v2874_v17 }
0x1717   : > { %v5832_v33 = vpop.eup %5831 }
0x1718   : > { %v2877_v28 = vpop.xlane.xlu0 %2876  ;;  %v5710_v8 = vpop.permute.xlu1 %5709  ;;  %v2649_v14 = vmul.f32 %v5832_v33, %v5820_v58 }
0x1719   : > { %v5712_v12 = vunpack.i.h.bf16 %v5710_v8  ;;  %v5711_v31 = vunpack.i.l.bf16 %v5710_v8  ;;  %5837 = vrcp.f32 %v2877_v28 }
0x171b   : > { %v5568_v34 = vpack.c.bf16 %v5712_v12, %v5711_v31  ;;  %v5834_v35 = vpop.eup %5833 }
0x171c   : > { %v2880_v29 = vpop.xlane.xlu0 %2879  ;;  %v2892_v0 = vpop.permute.xlu1 %2891  ;;  %v2650_v36 = vmul.f32 %v5834_v35, %v5822_v1 }
0x171d   : > { %5839 = vrcp.f32 %v2880_v29 }
0x171f   : > { %v5836_v13 = vpop.eup %5835 }
0x1720   : > { %v2656_v32 = vpop.permute.xlu0 %2655  ;;  %v2884_v16 = vmul.f32 %v5836_v13, %v5824_v10  ;;  %v5715_v44 = vpop.permute.xlu1 %5714 }
0x1721   : > { %5222 = vmatpush3.msra.mxu1 %v2656_v32  ;;  %v5717_v47 = vunpack.i.h.bf16 %v5715_v44  ;;  %v5716_v51 = vunpack.i.l.bf16 %v5715_v44 }
0x1722   : > { %5224 = vmatmul.mubr.msk.f32.vlgmr.msra.gmra.mrb[66].mxu1 %vm586_vm6, %v2648_v25  ;;  %5567 = vmatprep.subr.bf16.mxu1 %v5893_v3 }
0x1723   : > { %5569 = vmatpush3.bf16.msra.mxu1 %v5568_v34  ;;  %5226 = vmatprep.mubr.msk.f32.mxu1 %vm5894_vm0, %v5895_v6  ;;  %v5838_v37 = vpop.eup %5837  ;;  %v5571_v58 = vpack.c.bf16 %v5717_v47, %v5716_v51 }
0x1724   : > { %5251 = vmatprep.subr.mxu1 %v5895_v6  ;;  %v2885_v19 = vmul.f32 %v5838_v37, %v5826_v21  ;;  %v3175_v2 = vpop.permute.xlu1 %3174  ;;  %v3165_v5 = vpop.permute.xlu0 %3164 }
0x1726   : > { %5227 = vmatmul.mubr.msk.f32.gmra.mrb[68].mxu1 %vm586_vm6, %v2649_v14 }
0x1727   : > { %5252 = vmatpush3.msra.mxu1 %v2892_v0  ;;  %5229 = vmatprep.mubr.msk.f32.mxu1 %vm5894_vm0, %v5895_v6  ;;  %v5840_v38 = vpop.eup %5839 }
0x1728   : > { %5273 = vmatprep.subr.mxu1 %v5895_v6  ;;  %v2886_v46 = vmul.f32 %v5840_v38, %v5828_v20  ;;  %v3167_v7 = vpop.permute.xlu1 %3166  ;;  %v3169_v9 = vpop.permute.xlu0 %3168 }
0x172a   : > { %5230 = vmatmul.mubr.msk.f32.gmra.mrb[70].mxu1 %vm586_vm6, %v2650_v36 }
0x172b   : > { %5253 = vmatprep.mubr.msk.f32.mxu1 %vm5894_vm0, %v5895_v6 }
0x172e   : > { %5254 = vmatmul.mubr.msk.f32.vlgmr.msra.gmra.mrb[72].mxu1 %vm586_vm6, %v2884_v16 }
0x172f   : > { %5256 = vmatprep.mubr.msk.f32.mxu1 %vm5894_vm0, %v5895_v6  ;;  %5274 = vmatpush3.msra.mxu1 %v2749_v39 }
0x1730   : > { %5574 = vmatprep.subr.bf16.mxu1 %v5893_v3 }
0x1732   : > { %5257 = vmatmul.mubr.msk.f32.gmra.mrb[74].mxu1 %vm586_vm6, %v2885_v19 }
0x1733   : > { %5259 = vmatprep.mubr.msk.f32.mxu1 %vm5894_vm0, %v5895_v6 }
0x1736   : > { %5260 = vmatmul.mubr.msk.f32.gmra.mrb[76].mxu1 %vm586_vm6, %v2886_v46 }
0x1737   : > { %5275 = vmatprep.mubr.msk.f32.mxu1 %vm5894_vm0, %v5895_v6 }
0x17f5   : > { %v2735_v49 = vpop.f32.mrb[66].mxu1 }
0x17f6   : > { %v5225_v42 = vpop.f32.mrb[67].mxu1  ;;  %5276 = vmatmul.mubr.msk.f32.vlgmr.msra.gmra.mrb[78].mxu1 %vm493_vm3, %v2735_v49 }
0x17f7   : > { %5278 = vmatprep.mubr.msk.f32.mxu1 %vm5894_vm0, %v5895_v6 }
0x17f9   : > { %v2740_v43 = vpop.f32.mrb[68].mxu1 }
0x17fa   : > { %v5228_v45 = vpop.f32.mrb[69].mxu1  ;;  %5279 = vmatmul.mubr.msk.f32.gmra.mrb[80].mxu1 %vm493_vm3, %v2740_v43 }
0x17fb   : > { %5281 = vmatprep.mubr.msk.f32.mxu1 %vm5894_vm0, %v5895_v6 }
0x17fd   : > { %v2745_v54 = vpop.f32.mrb[70].mxu1 }
0x17fe   : > { %v5231_v57 = vpop.f32.mrb[71].mxu1  ;;  %5282 = vmatmul.mubr.msk.f32.gmra.mrb[82].mxu1 %vm493_vm3, %v2745_v54 }
0x17ff   : > { %5305 = vmatprep.mubr.msk.f32.mxu1 %vm5894_vm0, %v5895_v6 }
0x1801   : > { %v2971_v60 = vpop.f32.mrb[72].mxu1 }
0x1802   : > { %v5255_v61 = vpop.f32.mrb[73].mxu1  ;;  %5265 = vmatmul.mubr.msk.f32.vlgmr.msra.gmra.mrb[60].mxu0 %vm493_vm3, %v2971_v60 }
0x1803   : > { %5573 = vmatpush3.bf16.xpose.msk.msra.mxu0 %vm6072_vm4, %v5571_v58  ;;  %5267 = vmatprep.mubr.msk.f32.mxu0 %vm5894_vm0, %v5895_v6 }
0x1804   : > { %5288 = vmatprep.subr.mxu0 %v5895_v6 }
0x1805   : > { %v2976_v62 = vpop.f32.mrb[74].mxu1 }
0x1806   : > { %v5258_v63 = vpop.f32.mrb[75].mxu1  ;;  %5268 = vmatmul.mubr.msk.f32.gmra.mrb[62].mxu0 %vm493_vm3, %v2976_v62 }
0x1807   : > { %5270 = vmatprep.mubr.msk.f32.mxu0 %vm5894_vm0, %v5895_v6 }
0x1809   : > { %v2981_v1 = vpop.f32.mrb[76].mxu1 }
0x180a   : > { %v5261_v4 = vpop.f32.mrb[77].mxu1  ;;  %5271 = vmatmul.mubr.msk.f32.gmra.mrb[64].mxu0 %vm493_vm3, %v2981_v1 }
0x180b   : > { %5289 = vmatpush3.xpose.msk.msra.mxu0 %vm493_vm3, %v3175_v2  ;;  %5290 = vmatprep.mubr.msk.f32.mxu0 %vm5894_vm0, %v5895_v6 }
0x180c   : > { %5314 = vmatprep.subr.mxu0 %v5895_v6 }
0x180e   : > { %5291 = vmatmul.mubr.msk.f32.vlgmr.msra.gmra.mrb[66].mxu0 %vm493_vm3, %v3165_v5 }
0x180f   : > { %5293 = vmatprep.mubr.msk.f32.mxu0 %vm5894_vm0, %v5895_v6 }
0x1812   : > { %5294 = vmatmul.mubr.msk.f32.gmra.mrb[68].mxu0 %vm493_vm3, %v3167_v7 }
0x1813   : > { %5296 = vmatprep.mubr.msk.f32.mxu0 %vm5894_vm0, %v5895_v6 }
0x1816   : > { %5297 = vmatmul.mubr.msk.f32.gmra.mrb[70].mxu0 %vm493_vm3, %v3169_v9 }
0x1817   : > { %5316 = vmatprep.mubr.msk.f32.mxu0 %vm5894_vm0, %v5895_v6 }
0x18c9   : > { %v3150_v10 = vpop.f32.mrb[78].mxu1 }
0x18ca   : > { %v5277_v11 = vpop.f32.mrb[79].mxu1 }
0x18cd   : > { %v3155_v18 = vpop.f32.mrb[80].mxu1 }
0x18ce   : > { %v5280_v21 = vpop.f32.mrb[81].mxu1 }
0x18d1   : > { %v3160_v15 = vpop.f32.mrb[82].mxu1 }
0x18d2   : > { %v5283_v20 = vpop.f32.mrb[83].mxu1 }
0x18d5   : > { %v3061_v22 = vpop.f32.mrb[60].mxu0 }
0x18d6   : > { %v6710_v23 = vadd.f32 %v3150_v10, %v3061_v22  ;;  %v5266_v26 = vpop.f32.mrb[61].mxu0 }
0x18d9   : > { %v3066_v24 = vpop.f32.mrb[62].mxu0 }
0x18da   : > { %v6712_v17 = vadd.f32 %v3155_v18, %v3066_v24  ;;  %v5269_v28 = vpop.f32.mrb[63].mxu0  ;;  %v3399_v24 = vld [vmem:[%s7037_s2 + $0x140] sm:$0xff] }
0x18db   : > { %5315 = vmatpush3.msra.mxu0 %v3399_v24 }
0x18dc   : > { %5581 = vmatprep.subr.bf16.mxu0 %v5893_v3 }
0x18dd   : > { %v3071_v8 = vpop.f32.mrb[64].mxu0 }
0x18de   : > { %v6714_v29 = vadd.f32 %v3160_v15, %v3071_v8  ;;  %v5272_v30 = vpop.f32.mrb[65].mxu0 }
0x18e1   : > { %v3254_v12 = vpop.f32.mrb[66].mxu0 }
0x18e2   : > { %v3255_v31 = vadd.f32 %v3254_v12, %v6107_v40  ;;  %v5292_v25 = vpop.f32.mrb[67].mxu0 }
0x18e4   : > { %v3268_v32 = vsel %vm586_vm6, %v3255_v31, -inf }
0x18e5   : > { %3269 = vmax.xlane.f32.xlu1 %v3268_v32  ;;  %v3259_v33 = vpop.f32.mrb[68].mxu0 }
0x18e6   : > { %v3260_v34 = vadd.f32 %v3259_v33, %v6107_v40  ;;  %v5295_v14 = vpop.f32.mrb[69].mxu0 }
0x18e8   : > { %v3271_v35 = vsel %vm586_vm6, %v3260_v34, -inf }
0x18e9   : > { %3272 = vmax.xlane.f32.xlu0 %v3271_v35  ;;  %v3264_v0 = vpop.f32.mrb[70].mxu0 }
0x18ea   : > { %v3265_v36 = vadd.f32 %v3264_v0, %v6107_v40  ;;  %v5298_v13 = vpop.f32.mrb[71].mxu0 }
0x18ec   : > { %v3274_v16 = vsel %vm586_vm6, %v3265_v36, -inf }
0x18ed   : > { %3275 = vmax.xlane.f32.xlu0 %v3274_v16 }
0x18f6   : > { %5719 = vrot.lane.b32.xlu1 %v6563_v53, %s5904_s21 }
0x1972   : > { %v3270_v37 = vpop.xlane.xlu1 %3269 }
0x1973   : > { %v3277_v19 = vsub.f32 %v3255_v31, %v3270_v37 }
0x1975   : > { %v3280_v38 = vmul.f32 1.442695, %v3277_v19 }
0x1976   : > { %v5720_v46 = vpop.permute.xlu1 %5719  ;;  %v3273_v39 = vpop.xlane.xlu0 %3272 }
0x1977   : > { %5841 = vpow2.f32 %v3280_v38  ;;  %v5722_v41 = vunpack.i.h.bf16 %v5720_v46  ;;  %v5721_v49 = vunpack.i.l.bf16 %v5720_v46  ;;  %v3278_v42 = vsub.f32 %v3260_v34, %v3273_v39 }
0x1979   : > { %v5575_v43 = vpack.c.bf16 %v5722_v41, %v5721_v49  ;;  %v3282_v44 = vmul.f32 1.442695, %v3278_v42 }
0x197a   : > { %v3276_v45 = vpop.xlane.xlu0 %3275 }
0x197b   : > { %5843 = vpow2.f32 %v3282_v44  ;;  %v3279_v47 = vsub.f32 %v3265_v36, %v3276_v45  ;;  %5576 = vmatpush3.bf16.msra.mxu1 %v5575_v43 }
0x197c   : > { %5303 = vmatprep.subr.mxu1 %v5895_v6 }
0x197d   : > { %v3284_v51 = vmul.f32 1.442695, %v3279_v47 }
0x197f   : > { %5845 = vpow2.f32 %v3284_v51 }
0x1981   : > { %v5842_v54 = vpop.eup %5841 }
0x1982   : > { %v3286_v57 = vsel %vm586_vm6, %v5842_v54, 0.0 }
0x1983   : > { %3287 = vadd.xlane.f32.xlu0 %v3286_v57 }
0x1985   : > { %v5844_v58 = vpop.eup %5843 }
0x1986   : > { %v3289_v60 = vsel %vm586_vm6, %v5844_v58, 0.0 }
0x1987   : > { %3290 = vadd.xlane.f32.xlu1 %v3289_v60 }
0x1989   : > { %v5846_v61 = vpop.eup %5845 }
0x198a   : > { %v3292_v62 = vsel %vm586_vm6, %v5846_v61, 0.0 }
0x198b   : > { %3293 = vadd.xlane.f32.xlu0 %v3292_v62 }
0x1998   : > { %5724 = vrot.lane.b32.xlu1 %v6563_v53, %s5905_s22 }
0x199c   : > { %3502 = vrot.lane.b32.xlu1 %v6565_v56, %s5905_s22 }
0x19a0   : > { %3492 = vrot.lane.b32.xlu1 %v6557_v52, %s5906_s23 }
0x19a1   : > { %3305 = vrot.lane.b32.xlu0 %v6565_v56, %s5904_s21 }
0x19a4   : > { %3496 = vrot.lane.b32.xlu1 %v6565_v56, %s5906_s23 }
0x19a5   : > { %3494 = vrot.lane.b32.xlu0 %v6559_v50, %s5906_s23 }
0x1a10   : > { %v3288_v63 = vpop.xlane.xlu0 %3287 }
0x1a11   : > { %5847 = vrcp.f32 %v3288_v63 }
0x1a14   : > { %v3291_v1 = vpop.xlane.xlu1 %3290 }
0x1a15   : > { %5849 = vrcp.f32 %v3291_v1 }
0x1a18   : > { %v3294_v2 = vpop.xlane.xlu0 %3293  ;;  %v5725_v5 = vpop.permute.xlu1 %5724 }
0x1a19   : > { %5851 = vrcp.f32 %v3294_v2  ;;  %v5727_v52 = vunpack.i.h.bf16 %v5725_v5  ;;  %v5726_v10 = vunpack.i.l.bf16 %v5725_v5 }
0x1a1b   : > { %v5848_v4 = vpop.eup %5847  ;;  %v5578_v18 = vpack.c.bf16 %v5727_v52, %v5726_v10 }
0x1a1c   : > { %v3298_v7 = vmul.f32 %v5848_v4, %v5842_v54  ;;  %v3306_v9 = vpop.permute.xlu0 %3305  ;;  %v3503_v20 = vpop.permute.xlu1 %3502 }
0x1a1d   : > { %5304 = vmatpush3.msra.mxu1 %v3306_v9 }
0x1a1e   : > { %5306 = vmatmul.mubr.msk.f32.vlgmr.msra.gmra.mrb[84].mxu1 %vm586_vm6, %v3298_v7  ;;  %5577 = vmatprep.subr.bf16.mxu1 %v5893_v3 }
0x1a1f   : > { %v5850_v11 = vpop.eup %5849  ;;  %5308 = vmatprep.mubr.msk.f32.mxu1 %vm5894_vm0, %v5895_v6 }
0x1a20   : > { %v3299_v50 = vmul.f32 %v5850_v11, %v5844_v58  ;;  %v3493_v22 = vpop.permute.xlu1 %3492  ;;  %v3495_v27 = vpop.permute.xlu0 %3494 }
0x1a22   : > { %5309 = vmatmul.mubr.msk.f32.gmra.mrb[86].mxu1 %vm586_vm6, %v3299_v50 }
0x1a23   : > { %v5852_v21 = vpop.eup %5851  ;;  %5311 = vmatprep.mubr.msk.f32.mxu1 %vm5894_vm0, %v5895_v6 }
0x1a24   : > { %5580 = vmatpush3.bf16.xpose.msk.msra.mxu1 %vm6072_vm4, %v5578_v18  ;;  %v3300_v15 = vmul.f32 %v5852_v21, %v5846_v61  ;;  %v3497_v26 = vpop.permute.xlu1 %3496 }
0x1a25   : > { %5329 = vmatprep.subr.mxu1 %v5895_v6 }
0x1a26   : > { %5312 = vmatmul.mubr.msk.f32.gmra.mrb[88].mxu1 %vm586_vm6, %v3300_v15  ;;  %v3727_v15 = vld [vmem:[%s7037_s2 + $0x148] sm:$0xff] }
0x1a27   : > { %5331 = vmatprep.mubr.msk.f32.mxu1 %vm5894_vm0, %v5895_v6 }
0x1a2c   : > { %5330 = vmatpush3.xpose.msk.msra.mxu1 %vm493_vm3, %v3503_v20 }
0x1a2d   : > { %5355 = vmatprep.subr.mxu1 %v5895_v6 }
0x1a2f   : > { %5332 = vmatmul.mubr.msk.f32.vlgmr.msra.gmra.mrb[90].mxu1 %vm493_vm3, %v3493_v22 }
0x1a30   : > { %5334 = vmatprep.mubr.msk.f32.mxu1 %vm5894_vm0, %v5895_v6  ;;  %5356 = vmatpush3.msra.mxu1 %v3727_v15 }
0x1a31   : > { %5590 = vmatprep.subr.bf16.mxu1 %v5893_v3 }
0x1a33   : > { %5335 = vmatmul.mubr.msk.f32.gmra.mrb[92].mxu1 %vm493_vm3, %v3495_v27 }
0x1a34   : > { %5337 = vmatprep.mubr.msk.f32.mxu1 %vm5894_vm0, %v5895_v6 }
0x1a37   : > { %5338 = vmatmul.mubr.msk.f32.gmra.mrb[94].mxu1 %vm493_vm3, %v3497_v26 }
0x1a38   : > { %5357 = vmatprep.mubr.msk.f32.mxu1 %vm5894_vm0, %v5895_v6 }
0x1af1   : > { %v3385_v28 = vpop.f32.mrb[84].mxu1 }
0x1af2   : > { %v5307_v8 = vpop.f32.mrb[85].mxu1  ;;  %5317 = vmatmul.mubr.msk.f32.vlgmr.msra.gmra.mrb[72].mxu0 %vm493_vm3, %v3385_v28 }
0x1af3   : > { %5319 = vmatprep.mubr.msk.f32.mxu0 %vm5894_vm0, %v5895_v6 }
0x1af5   : > { %v3390_v30 = vpop.f32.mrb[86].mxu1 }
0x1af6   : > { %v5310_v12 = vpop.f32.mrb[87].mxu1  ;;  %5320 = vmatmul.mubr.msk.f32.gmra.mrb[74].mxu0 %vm493_vm3, %v3390_v30 }
0x1af7   : > { %5322 = vmatprep.mubr.msk.f32.mxu0 %vm5894_vm0, %v5895_v6 }
0x1af9   : > { %v3395_v31 = vpop.f32.mrb[88].mxu1 }
0x1afa   : > { %v5313_v25 = vpop.f32.mrb[89].mxu1  ;;  %5323 = vmatmul.mubr.msk.f32.gmra.mrb[76].mxu0 %vm493_vm3, %v3395_v31 }
0x1afb   : > { %5346 = vmatprep.mubr.msk.f32.mxu0 %vm5894_vm0, %v5895_v6 }
0x1b02   : > { %v3582_v32 = vpop.f32.mrb[90].mxu1 }
0x1b03   : > { %v3583_v33 = vadd.f32 %v3582_v32, %v6107_v40  ;;  %v5333_v34 = vpop.f32.mrb[91].mxu1 }
0x1b05   : > { %v3596_v14 = vsel %vm586_vm6, %v3583_v33, -inf }
0x1b06   : > { %3597 = vmax.xlane.f32.xlu0 %v3596_v14  ;;  %v3587_v35 = vpop.f32.mrb[92].mxu1 }
0x1b07   : > { %v5336_v0 = vpop.f32.mrb[93].mxu1  ;;  %v3588_v16 = vadd.f32 %v3587_v35, %v6107_v40 }
0x1b09   : > { %v3599_v37 = vsel %vm586_vm6, %v3588_v16, -inf }
0x1b0a   : > { %v3592_v36 = vpop.f32.mrb[94].mxu1 }
0x1b0b   : > { %v5339_v13 = vpop.f32.mrb[95].mxu1 }
0x1b1c   : > { %5729 = vrot.lane.b32.xlu0 %v6563_v53, %s5907_s26 }
0x1b3b   : > { %3600 = vmax.xlane.f32.xlu0 %v3599_v37 }
0x1b93   : > { %v3598_v19 = vpop.xlane.xlu0 %3597 }
0x1b94   : > { %v3605_v38 = vsub.f32 %v3583_v33, %v3598_v19  ;;  %v4632_v33 = vld [vmem:[%s7038_s3 + $0xf] ss:$0 sm:$0xff] }
0x1b96   : > { %v3608_v46 = vmul.f32 1.442695, %v3605_v38 }
0x1b97   : > { %v5730_v39 = vpop.permute.xlu0 %5729 }
0x1b98   : > { %5853 = vpow2.f32 %v3608_v46  ;;  %v5732_v41 = vunpack.i.h.bf16 %v5730_v39  ;;  %v5731_v49 = vunpack.i.l.bf16 %v5730_v39 }
0x1b9a   : > { %v5582_v42 = vpack.c.bf16 %v5732_v41, %v5731_v49  ;;  %v3886_v49 = vld [vmem:[%s7037_s2 + $0x150] sm:$0xff] }
0x1b9c   : > { %5583 = vmatpush3.bf16.msra.mxu0 %v5582_v42 }
0x1b9d   : > { %5344 = vmatprep.subr.mxu0 %v5895_v6 }
0x1ba2   : > { %v5854_v43 = vpop.eup %5853 }
0x1ba3   : > { %v3614_v44 = vsel %vm586_vm6, %v5854_v43, 0.0 }
0x1ba4   : > { %3615 = vadd.xlane.f32.xlu1 %v3614_v44  ;;  %v3889_v44 = vld [vmem:[%s7037_s2 + $0x168] sm:$0xff] }
0x1bb5   : > { %3633 = vrot.lane.b32.xlu1 %v6565_v56, %s5907_s26  ;;  %v3593_v56 = vadd.f32 %v3592_v36, %v6107_v40 }
0x1bc5   : > { %v3475_v53 = vpop.f32.mrb[72].mxu0 }
0x1bc6   : > { %v3489_v45 = vadd.f32 %v3475_v53, %v6710_v23  ;;  %v5318_v47 = vpop.f32.mrb[73].mxu0  ;;  %v3602_v23 = vsel %vm586_vm6, %v3593_v56, -inf }
0x1bc8   : > { %v3601_v51 = vpop.xlane.xlu0 %3600 }
0x1bc9   : > { %v3606_v54 = vsub.f32 %v3588_v16, %v3601_v51  ;;  %v3480_v57 = vpop.f32.mrb[74].mxu0 }
0x1bca   : > { %v6789_v58 = vadd.f32 %v3480_v57, %v6712_v17  ;;  %v5321_v60 = vpop.f32.mrb[75].mxu0 }
0x1bcb   : > { %v3610_v61 = vmul.f32 1.442695, %v3606_v54 }
0x1bcd   : > { %5855 = vpow2.f32 %v3610_v61  ;;  %v3485_v62 = vpop.f32.mrb[76].mxu0 }
0x1bce   : > { %v6792_v63 = vadd.f32 %v3485_v62, %v6714_v29  ;;  %v5324_v1 = vpop.f32.mrb[77].mxu0 }
0x1bd7   : > { %v5856_v2 = vpop.eup %5855 }
0x1bd8   : > { %v3617_v4 = vsel %vm586_vm6, %v5856_v2, 0.0 }
0x1bd9   : > { %3603 = vmax.xlane.f32.xlu1 %v3602_v23  ;;  %3618 = vadd.xlane.f32.xlu0 %v3617_v4 }
0x1c31   : > { %v3616_v5 = vpop.xlane.xlu1 %3615 }
0x1c32   : > { %5857 = vrcp.f32 %v3616_v5 }
0x1c35   : > { %v3634_v17 = vpop.permute.xlu1 %3633 }
0x1c36   : > { %5345 = vmatpush3.msra.mxu0 %v3634_v17  ;;  %v6862_v17 = vld [vmem:[%s7038_s3 + $0x10] ss:$0 sm:$0xff] }
0x1c37   : > { %5584 = vmatprep.subr.bf16.mxu0 %v5893_v3 }
0x1c3c   : > { %v5858_v7 = vpop.eup %5857 }
0x1c3d   : > { %v3626_v9 = vmul.f32 %v5858_v7, %v5854_v43  ;;  %v3888_v43 = vld [vmem:[%s7037_s2 + $0x160] sm:$0xff] }
0x1c3e   : > { %v5588_v53 = vpack.c.bf16 %v3889_v44, %v3888_v43 }
0x1c3f   : > { %5347 = vmatmul.mubr.msk.f32.vlgmr.msra.gmra.mrb[78].mxu0 %vm586_vm6, %v3626_v9 }
0x1c40   : > { %5349 = vmatprep.mubr.msk.f32.mxu0 %vm5894_vm0, %v5895_v6 }
0x1c66   : > { %v3604_v40 = vpop.xlane.xlu1 %3603  ;;  %v3619_v29 = vpop.xlane.xlu0 %3618 }
0x1c67   : > { %v3607_v52 = vsub.f32 %v3593_v56, %v3604_v40  ;;  %5859 = vrcp.f32 %v3619_v29 }
0x1c69   : > { %v3612_v10 = vmul.f32 1.442695, %v3607_v52 }
0x1c6b   : > { %5861 = vpow2.f32 %v3612_v10 }
0x1c71   : > { %v5860_v11 = vpop.eup %5859 }
0x1c72   : > { %v3627_v50 = vmul.f32 %v5860_v11, %v5856_v2 }
0x1c74   : > { %5350 = vmatmul.mubr.msk.f32.gmra.mrb[80].mxu0 %vm586_vm6, %v3627_v50 }
0x1c75   : > { %v5862_v18 = vpop.eup %5861  ;;  %5352 = vmatprep.mubr.msk.f32.mxu0 %vm5894_vm0, %v5895_v6 }
0x1c76   : > { %v3620_v21 = vsel %vm586_vm6, %v5862_v18, 0.0 }
0x1c77   : > { %3621 = vadd.xlane.f32.xlu0 %v3620_v21 }
0x1d04   : > { %v3622_v20 = vpop.xlane.xlu0 %3621 }
0x1d05   : > { %5863 = vrcp.f32 %v3622_v20 }
0x1d0f   : > { %v5864_v22 = vpop.eup %5863 }
0x1d10   : > { %v3628_v27 = vmul.f32 %v5864_v22, %v5862_v18 }
0x1d12   : > { %v3713_v26 = vpop.f32.mrb[78].mxu0  ;;  %5353 = vmatmul.mubr.msk.f32.gmra.mrb[82].mxu0 %vm586_vm6, %v3628_v27 }
0x1d13   : > { %v5348_v24 = vpop.f32.mrb[79].mxu0  ;;  %5358 = vmatmul.mubr.msk.f32.vlgmr.msra.gmra.mrb[96].mxu1 %vm493_vm3, %v3713_v26  ;;  %5374 = vmatprep.mubr.msk.f32.mxu0 %vm5894_vm0, %v5895_v6  ;;  %v4011_v26 = vld [vmem:[%s7037_s2 + $0x170] sm:$0xff] }
0x1d14   : > { %5360 = vmatprep.mubr.msk.f32.mxu1 %vm5894_vm0, %v5895_v6  ;;  %v4012_v24 = vld [vmem:[%s7037_s2 + $0x178] sm:$0xff] }
0x1d47   : > { %v3718_v28 = vpop.f32.mrb[80].mxu0 }
0x1d48   : > { %v5351_v8 = vpop.f32.mrb[81].mxu0  ;;  %5361 = vmatmul.mubr.msk.f32.gmra.mrb[98].mxu1 %vm493_vm3, %v3718_v28  ;;  %v5591_v28 = vpack.c.bf16 %v4012_v24, %v4011_v26  ;;  %v4117_v26 = vld [vmem:[%s7037_s2 + $0x200] sm:$0xff]  ;;  %v4118_v24 = vld [vmem:[%s7037_s2 + $0x208] sm:$0xff] }
0x1d49   : > { %5363 = vmatprep.mubr.msk.f32.mxu1 %vm5894_vm0, %v5895_v6  ;;  %v4013_v8 = vld [vmem:[%s7037_s2 + $0x180] sm:$0xff] }
0x1d4a   : > { %5592 = vmatpush3.bf16.msra.mxu1 %v5591_v28  ;;  %v5618_v28 = vpack.c.bf16 %v4118_v24, %v4117_v26 }
0x1d4b   : > { %5593 = vmatprep.subr.bf16.mxu1 %v5893_v3 }
0x1de5   : > { %v3723_v30 = vpop.f32.mrb[82].mxu0 }
0x1de6   : > { %v5354_v12 = vpop.f32.mrb[83].mxu0  ;;  %v3803_v31 = vpop.f32.mrb[96].mxu1  ;;  %5364 = vmatmul.mubr.msk.f32.gmra.mrb[100].mxu1 %vm493_vm3, %v3723_v30  ;;  %v4014_v30 = vld [vmem:[%s7037_s2 + $0x188] sm:$0xff] }
0x1de7   : > { %v3817_v25 = vadd.f32 %v3803_v31, %v3489_v45  ;;  %v5359_v32 = vpop.f32.mrb[97].mxu1  ;;  %5415 = vmatprep.mubr.msk.f32.mxu1 %vm5894_vm0, %v5895_v6  ;;  %v5594_v12 = vpack.c.bf16 %v4014_v30, %v4013_v8  ;;  %v4015_v31 = vld [vmem:[%s7037_s2 + $0x190] sm:$0xff] }
0x1de9   : > { %v3820_v34 = vadd.f32 %v3817_v25, %v6507_v48  ;;  %5595 = vmatpush3.bf16.msra.mxu1 %v5594_v12  ;;  %v4016_v25 = vld [vmem:[%s7037_s2 + $0x198] sm:$0xff] }
0x1dea   : > { %5596 = vmatprep.subr.bf16.mxu1 %v5893_v3  ;;  %v5597_v32 = vpack.c.bf16 %v4016_v25, %v4015_v31 }
0x1deb   : > { %v6825_v14 = vadd.f32 %v4632_v33, %v3820_v34  ;;  %v4018_v34 = vld [vmem:[%s7037_s2 + $0x1a8] sm:$0xff] }
0x1ded   : > { %v3833_v35 = vsel %vm331_vm2, %v6825_v14, 0.0  ;;  %5598 = vmatpush3.bf16.msra.mxu1 %v5597_v32 }
0x1dee   : > { %3834 = vadd.xlane.f32.xlu0 %v3833_v35  ;;  %5599 = vmatprep.subr.bf16.mxu1 %v5893_v3 }
0x1e1b   : > { %v3808_v0 = vpop.f32.mrb[98].mxu1 }
0x1e1c   : > { %v3818_v36 = vadd.f32 %v3808_v0, %v6789_v58  ;;  %v5362_v13 = vpop.f32.mrb[99].mxu1  ;;  %v4019_v0 = vld [vmem:[%s7037_s2 + $0x1b0] sm:$0xff] }
0x1e1e   : > { %v3821_v16 = vadd.f32 %v3818_v36, %v6511_v55  ;;  %v3887_v55 = vld [vmem:[%s7037_s2 + $0x158] sm:$0xff] }
0x1e1f   : > { %v5585_v42 = vpack.c.bf16 %v3887_v55, %v3886_v49  ;;  %v4020_v36 = vld [vmem:[%s7037_s2 + $0x1b8] sm:$0xff]  ;;  %v4026_v49 = vld [vmem:[%s7037_s2 + $0x1e8] sm:$0xff] }
0x1e20   : > { %v6831_v37 = vadd.f32 %v4632_v33, %v3821_v16  ;;  %v5603_v13 = vpack.c.bf16 %v4020_v36, %v4019_v0  ;;  %v4021_v16 = vld [vmem:[%s7037_s2 + $0x1c0] sm:$0xff] }
0x1e21   : > { %5586 = vmatpush3.bf16.msra.mxu0 %v5585_v42 }
0x1e22   : > { %v3836_v19 = vsel %vm331_vm2, %v6831_v37, 0.0  ;;  %5587 = vmatprep.subr.bf16.mxu0 %v5893_v3 }
0x1e23   : > { %3837 = vadd.xlane.f32.xlu0 %v3836_v19  ;;  %v4022_v19 = vld [vmem:[%s7037_s2 + $0x1c8] sm:$0xff] }
0x1e25   : > { %5589 = vmatpush3.bf16.msra.mxu0 %v5588_v53 }
0x1e26   : > { %5614 = vmatprep.subr.bf16.mxu0 %v5893_v3 }
0x1e7b   : > { %v3835_v38 = vpop.xlane.xlu0 %3834 }
0x1e7c   : > { %v3842_v48 = vmul.f32 0.03125, %v3835_v38  ;;  %v5606_v38 = vpack.c.bf16 %v4022_v19, %v4021_v16 }
0x1e7e   : > { %v3845_v46 = vsub.f32 %v6825_v14, %v3842_v48  ;;  %v4023_v48 = vld [vmem:[%s7037_s2 + $0x1d0] sm:$0xff] }
0x1e80   : > { %v3848_v39 = vmul.f32 %v3845_v46, %v3845_v46 }
0x1e82   : > { %v3851_v41 = vsel %vm331_vm2, %v3848_v39, 0.0 }
0x1e83   : > { %3852 = vadd.xlane.f32.xlu1 %v3851_v41  ;;  %v4025_v41 = vld [vmem:[%s7037_s2 + $0x1e0] sm:$0xff] }
0x1e84   : > { %v5612_v55 = vpack.c.bf16 %v4026_v49, %v4025_v41 }
0x1eb0   : > { %v3838_v45 = vpop.xlane.xlu0 %3837 }
0x1eb1   : > { %v3843_v47 = vmul.f32 0.03125, %v3838_v45 }
0x1eb3   : > { %v3846_v51 = vsub.f32 %v6831_v37, %v3843_v47 }
0x1eb5   : > { %v3849_v54 = vmul.f32 %v3846_v51, %v3846_v51 }
0x1eb7   : > { %v3854_v57 = vsel %vm331_vm2, %v3849_v54, 0.0 }
0x1eb8   : > { %3855 = vadd.xlane.f32.xlu0 %v3854_v57 }
0x1eb9   : > { %v3813_v58 = vpop.f32.mrb[100].mxu1 }
0x1eba   : > { %v3819_v60 = vadd.f32 %v3813_v58, %v6792_v63  ;;  %v5365_v61 = vpop.f32.mrb[101].mxu1 }
0x1ebc   : > { %v3822_v62 = vadd.f32 %v3819_v60, %v6515_v59  ;;  %v6867_v59 = vld [vmem:[%s7038_s3 + $0x11] ss:$0 sm:$0xff] }
0x1ebe   : > { %v6855_v1 = vadd.f32 %v4632_v33, %v3822_v62  ;;  %v4017_v33 = vld [vmem:[%s7037_s2 + $0x1a0] sm:$0xff] }
0x1ebf   : > { %v5600_v35 = vpack.c.bf16 %v4018_v34, %v4017_v33 }
0x1ec0   : > { %v3839_v56 = vsel %vm331_vm2, %v6855_v1, 0.0 }
0x1ec1   : > { %3840 = vadd.xlane.f32.xlu1 %v3839_v56  ;;  %5601 = vmatpush3.bf16.msra.mxu1 %v5600_v35 }
0x1ec2   : > { %5602 = vmatprep.subr.bf16.mxu1 %v5893_v3 }
0x1ec5   : > { %5604 = vmatpush3.bf16.msra.mxu1 %v5603_v13  ;;  %v4639_v13 = vld [vmem:[%s7038_s3 + $0x13] ss:$0 sm:$0xff] }
0x1ec6   : > { %5605 = vmatprep.subr.bf16.mxu1 %v5893_v3 }
0x1ec9   : > { %5607 = vmatpush3.bf16.msra.mxu1 %v5606_v38 }
0x1eca   : > { %5608 = vmatprep.subr.bf16.mxu1 %v5893_v3 }
0x1f10   : > { %v3853_v2 = vpop.xlane.xlu1 %3852 }
0x1f11   : > { %v3860_v23 = vmul.f32 0.03125, %v3853_v2 }
0x1f13   : > { %v3863_v4 = vadd.f32 1e-06, %v3860_v23 }
0x1f15   : > { %5865 = vrsqrt.f32 %v3863_v4 }
0x1f1f   : > { %v5866_v5 = vpop.eup %5865 }
0x1f20   : > { %v3869_v63 = vmul.f32 %v5866_v5, %v3845_v46  ;;  %v4024_v46 = vld [vmem:[%s7037_s2 + $0x1d8] sm:$0xff] }
0x1f21   : > { %v5609_v39 = vpack.c.bf16 %v4024_v46, %v4023_v48 }
0x1f22   : > { %v3876_v7 = vmul.f32 %v6862_v17, %v3869_v63 }
0x1f23   : > { %5610 = vmatpush3.bf16.msra.mxu1 %v5609_v39 }
0x1f24   : > { %v3883_v9 = vadd.f32 %v6867_v59, %v3876_v7  ;;  %5611 = vmatprep.subr.bf16.mxu1 %v5893_v3 }
0x1f26   : > { %5375 = vmatmul.mubr.msk.f32.vlgmr.msra.gmra.mrb[84].mxu0 %vm331_vm2, %v3883_v9 }
0x1f27   : > { %5377 = vmatprep.mubr.msk.f32.mxu0 %vm5894_vm0, %v5895_v6  ;;  %5613 = vmatpush3.bf16.msra.mxu1 %v5612_v55 }
0x1f45   : > { %v3856_v40 = vpop.xlane.xlu0 %3855 }
0x1f46   : > { %v3861_v29 = vmul.f32 0.03125, %v3856_v40 }
0x1f48   : > { %v3864_v52 = vadd.f32 1e-06, %v3861_v29 }
0x1f4a   : > { %5867 = vrsqrt.f32 %v3864_v52 }
0x1f4e   : > { %v3841_v10 = vpop.xlane.xlu1 %3840 }
0x1f4f   : > { %v3844_v11 = vmul.f32 0.03125, %v3841_v10 }
0x1f51   : > { %v3847_v50 = vsub.f32 %v6855_v1, %v3844_v11 }
0x1f53   : > { %v3850_v18 = vmul.f32 %v3847_v50, %v3847_v50 }
0x1f54   : > { %v5868_v21 = vpop.eup %5867 }
0x1f55   : > { %v3857_v15 = vsel %vm331_vm2, %v3850_v18, 0.0  ;;  %v3870_v20 = vmul.f32 %v5868_v21, %v3846_v51  ;;  %v4635_v51 = vld [vmem:[%s7038_s3 + $0x12] ss:$0 sm:$0xff] }
0x1f56   : > { %3858 = vadd.xlane.f32.xlu1 %v3857_v15 }
0x1f57   : > { %v3877_v22 = vmul.f32 %v6862_v17, %v3870_v20  ;;  %v4115_v20 = vld [vmem:[%s7037_s2 + $0x1f0] sm:$0xff] }
0x1f59   : > { %v3884_v27 = vadd.f32 %v6867_v59, %v3877_v22  ;;  %v4116_v22 = vld [vmem:[%s7037_s2 + $0x1f8] sm:$0xff] }
0x1f5b   : > { %5378 = vmatmul.mubr.msk.f32.gmra.mrb[86].mxu0 %vm331_vm2, %v3884_v27  ;;  %v5615_v27 = vpack.c.bf16 %v4116_v22, %v4115_v20 }
0x1f5c   : > { %5380 = vmatprep.mubr.msk.f32.mxu0 %vm5894_vm0, %v5895_v6 }
0x1f5d   : > { %5616 = vmatpush3.bf16.msra.mxu0 %v5615_v27 }
0x1f5e   : > { %5617 = vmatprep.subr.bf16.mxu0 %v5893_v3 }
0x1f61   : > { %5619 = vmatpush3.bf16.msra.mxu0 %v5618_v28 }
0x1f62   : > { %5620 = vmatprep.subr.bf16.mxu0 %v5893_v3 }
0x1fe3   : > { %v3859_v42 = vpop.xlane.xlu1 %3858 }
0x1fe4   : > { %v3862_v43 = vmul.f32 0.03125, %v3859_v42  ;;  %v4241_v42 = vld [vmem:[%s7037_s2 + $0x218] sm:$0xff] }
0x1fe6   : > { %v3865_v44 = vadd.f32 1e-06, %v3862_v43 }
0x1fe8   : > { %5869 = vrsqrt.f32 %v3865_v44 }
0x1ff2   : > { %v5870_v53 = vpop.eup %5869 }
0x1ff3   : > { %v3871_v45 = vmul.f32 %v5870_v53, %v3847_v50 }
0x1ff5   : > { %v3878_v47 = vmul.f32 %v6862_v17, %v3871_v45 }
0x1ff7   : > { %v3885_v54 = vadd.f32 %v6867_v59, %v3878_v47  ;;  %v4640_v47 = vld [vmem:[%s7038_s3 + $0x14] ss:$0 sm:$0xff] }
0x1ff9   : > { %v3970_v57 = vpop.f32.mrb[84].mxu0  ;;  %5381 = vmatmul.mubr.msk.f32.gmra.mrb[88].mxu0 %vm331_vm2, %v3885_v54 }
0x1ffa   : > { %v3971_v58 = vadd.f32 %v4635_v51, %v3970_v57  ;;  %v5376_v60 = vpop.f32.mrb[85].mxu0  ;;  %5432 = vmatprep.mubr.msk.f32.mxu0 %vm5894_vm0, %v5895_v6 }
0x1ffc   : > { %v3987_v61 = vmul.f32 0.044715, %v3971_v58  ;;  %v3984_v5 = vmul.f32 0.5, %v3971_v58 }
0x1ffe   : > { %v3990_v62 = vmul.f32 %v3987_v61, %v3971_v58 }
0x2000   : > { %v3993_v56 = vmul.f32 %v3990_v62, %v3971_v58 }
0x2002   : > { %v3996_v2 = vadd.f32 %v3993_v56, %v3971_v58 }
0x2004   : > { %v3999_v23 = vmul.f32 0.7978846, %v3996_v2 }
0x2006   : > { %5871 = vtanh.f32 %v3999_v23 }
0x2010   : > { %v5872_v4 = vpop.eup %5871 }
0x2011   : > { %v4005_v17 = vadd.f32 1.0, %v5872_v4 }
0x2013   : > { %v4008_v63 = vmul.f32 %v4005_v17, %v3984_v5 }
0x2015   : > { %5416 = vmatmul.mubr.f32.vlgmr.msra.gmra.mrb[102].mxu1 %v4008_v63 }
0x2016   : > { %5418 = vmatprep.mubr.msk.f32.mxu1 %vm5894_vm0, %v5895_v6 }
0x202e   : > { %v3975_v59 = vpop.f32.mrb[86].mxu0 }
0x202f   : > { %v3976_v7 = vadd.f32 %v4635_v51, %v3975_v59  ;;  %v5379_v9 = vpop.f32.mrb[87].mxu0 }
0x2031   : > { %v3988_v40 = vmul.f32 0.044715, %v3976_v7  ;;  %v3985_v18 = vmul.f32 0.5, %v3976_v7 }
0x2033   : > { %v3991_v29 = vmul.f32 %v3988_v40, %v3976_v7 }
0x2035   : > { %v3994_v52 = vmul.f32 %v3991_v29, %v3976_v7 }
0x2037   : > { %v3997_v10 = vadd.f32 %v3994_v52, %v3976_v7 }
0x2039   : > { %v4000_v11 = vmul.f32 0.7978846, %v3997_v10 }
0x203b   : > { %5873 = vtanh.f32 %v4000_v11 }
0x2045   : > { %v5874_v50 = vpop.eup %5873 }
0x2046   : > { %v4006_v21 = vadd.f32 1.0, %v5874_v50 }
0x2048   : > { %v4009_v15 = vmul.f32 %v4006_v21, %v3985_v18 }
0x204a   : > { %5419 = vmatmul.mubr.f32.gmra.mrb[104].mxu1 %v4009_v15 }
0x204b   : > { %5421 = vmatprep.mubr.msk.f32.mxu1 %vm5894_vm0, %v5895_v6 }
0x20cc   : > { %v3980_v8 = vpop.f32.mrb[88].mxu0 }
0x20cd   : > { %v3981_v30 = vadd.f32 %v4635_v51, %v3980_v8  ;;  %v5382_v12 = vpop.f32.mrb[89].mxu0 }
0x20ce   : > { %v4644_v12 = vld [vmem:[%s7038_s3 + $0x15] ss:$0 sm:$0xff] }
0x20cf   : > { %v3989_v31 = vmul.f32 0.044715, %v3981_v30  ;;  %v3986_v0 = vmul.f32 0.5, %v3981_v30 }
0x20d1   : > { %v3992_v25 = vmul.f32 %v3989_v31, %v3981_v30 }
0x20d3   : > { %v3995_v32 = vmul.f32 %v3992_v25, %v3981_v30 }
0x20d5   : > { %v3998_v33 = vadd.f32 %v3995_v32, %v3981_v30 }
0x20d7   : > { %v4001_v34 = vmul.f32 0.7978846, %v3998_v33 }
0x20d9   : > { %5875 = vtanh.f32 %v4001_v34 }
0x20e3   : > { %v5876_v35 = vpop.eup %5875 }
0x20e4   : > { %v4007_v36 = vadd.f32 1.0, %v5876_v35 }
0x20e6   : > { %v4010_v16 = vmul.f32 %v4007_v36, %v3986_v0 }
0x20e8   : > { %v4098_v19 = vpop.f32.mrb[102].mxu1  ;;  %5422 = vmatmul.mubr.f32.gmra.mrb[106].mxu1 %v4010_v16 }
0x20e9   : > { %v4099_v38 = vadd.f32 %v4639_v13, %v4098_v19  ;;  %v5417_v48 = vpop.f32.mrb[103].mxu1 }
0x20eb   : > { %v6966_v46 = vadd.f32 %v4099_v38, %v6825_v14  ;;  %v4240_v14 = vld [vmem:[%s7037_s2 + $0x210] sm:$0xff] }
0x20ec   : > { %v5621_v43 = vpack.c.bf16 %v4241_v42, %v4240_v14 }
0x20ed   : > { %5433 = vmatmul.mubr.msk.f32.vlgmr.msra.gmra.mrb[90].mxu0 %vm331_vm2, %v6966_v46 }
0x20ee   : > { %5435 = vmatprep.mubr.msk.f32.mxu0 %vm5894_vm0, %v5895_v6  ;;  %5622 = vmatpush3.bf16.msra.mxu0 %v5621_v43 }
0x20ef   : > { %5623 = vmatprep.subr.bf16.mxu0 %v5893_v3 }
0x211d   : > { %v4103_v39 = vpop.f32.mrb[104].mxu1 }
0x211e   : > { %v4104_v41 = vadd.f32 %v4639_v13, %v4103_v39  ;;  %v5420_v49 = vpop.f32.mrb[105].mxu1  ;;  %v4360_v39 = vld [vmem:[%s7039_s4] sm:$0xff] }
0x211f   : > { %v4363_v49 = vld [vmem:[%s7039_s4 + $0x18] sm:$0xff] }
0x2120   : > { %v4113_v55 = vadd.f32 %v4104_v41, %v6831_v37  ;;  %v4362_v41 = vld [vmem:[%s7039_s4 + $0x10] sm:$0xff] }
0x2122   : > { %5436 = vmatmul.mubr.msk.f32.gmra.mrb[92].mxu0 %vm331_vm2, %v4113_v55  ;;  %v5627_v55 = vpack.c.bf16 %v4363_v49, %v4362_v41 }
0x2123   : > { %5438 = vmatprep.mubr.msk.f32.mxu0 %vm5894_vm0, %v5895_v6 }
0x21bb   : > { %v4108_v44 = vpop.f32.mrb[106].mxu1 }
0x21bc   : > { %v4109_v53 = vadd.f32 %v4639_v13, %v4108_v44  ;;  %v5423_v37 = vpop.f32.mrb[107].mxu1 }
0x21be   : > { %v4114_v45 = vadd.f32 %v4109_v53, %v6855_v1 }
0x21c0   : > { %v4199_v51 = vpop.f32.mrb[90].mxu0  ;;  %5439 = vmatmul.mubr.msk.f32.gmra.mrb[94].mxu0 %vm331_vm2, %v4114_v45 }
0x21c1   : > { %v4200_v54 = vadd.f32 %v4640_v47, %v4199_v51  ;;  %v5434_v57 = vpop.f32.mrb[91].mxu0  ;;  %5445 = vmatprep.mubr.msk.f32.mxu0 %vm5894_vm0, %v5895_v6 }
0x21c2   : > { %v4650_v57 = vld [vmem:[%s7038_s3 + $0x18] ss:$0 sm:$0xff] }
0x21c3   : > { %v4216_v58 = vmul.f32 0.044715, %v4200_v54  ;;  %v4213_v1 = vmul.f32 0.5, %v4200_v54 }
0x21c5   : > { %v4219_v60 = vmul.f32 %v4216_v58, %v4200_v54 }
0x21c7   : > { %v4222_v61 = vmul.f32 %v4219_v60, %v4200_v54 }
0x21c9   : > { %v4225_v62 = vadd.f32 %v4222_v61, %v4200_v54 }
0x21cb   : > { %v4228_v56 = vmul.f32 0.7978846, %v4225_v62 }
0x21cd   : > { %5877 = vtanh.f32 %v4228_v56 }
0x21d7   : > { %v5878_v2 = vpop.eup %5877 }
0x21d8   : > { %v4234_v23 = vadd.f32 1.0, %v5878_v2 }
0x21da   : > { %v4237_v4 = vmul.f32 %v4234_v23, %v4213_v1 }
0x21dc   : > { %5446 = vmatmul.mubr.msk.f32.vlgmr.msra.gmra.mrb[96].mxu0 %vm2216_vm7, %v4237_v4 }
0x21dd   : > { %5448 = vmatprep.mubr.msk.f32.mxu0 %vm5894_vm0, %v5895_v6 }
0x21f5   : > { %v4204_v5 = vpop.f32.mrb[92].mxu0 }
0x21f6   : > { %v4205_v17 = vadd.f32 %v4640_v47, %v4204_v5  ;;  %v5437_v63 = vpop.f32.mrb[93].mxu0 }
0x21f8   : > { %v4217_v59 = vmul.f32 0.044715, %v4205_v17  ;;  %v4214_v10 = vmul.f32 0.5, %v4205_v17 }
0x21fa   : > { %v4220_v7 = vmul.f32 %v4217_v59, %v4205_v17 }
0x21fc   : > { %v4223_v9 = vmul.f32 %v4220_v7, %v4205_v17 }
0x21fe   : > { %v4226_v40 = vadd.f32 %v4223_v9, %v4205_v17 }
0x2200   : > { %v4229_v29 = vmul.f32 0.7978846, %v4226_v40 }
0x2202   : > { %5879 = vtanh.f32 %v4229_v29 }
0x220c   : > { %v5880_v52 = vpop.eup %5879 }
0x220d   : > { %v4235_v11 = vadd.f32 1.0, %v5880_v52 }
0x220f   : > { %v4238_v50 = vmul.f32 %v4235_v11, %v4214_v10 }
0x2211   : > { %5449 = vmatmul.mubr.msk.f32.gmra.mrb[98].mxu0 %vm2216_vm7, %v4238_v50 }
0x2212   : > { %5451 = vmatprep.mubr.msk.f32.mxu0 %vm5894_vm0, %v5895_v6 }
0x2293   : > { %v4209_v18 = vpop.f32.mrb[94].mxu0 }
0x2294   : > { %v4210_v21 = vadd.f32 %v4640_v47, %v4209_v18  ;;  %v5440_v15 = vpop.f32.mrb[95].mxu0  ;;  %v4649_v47 = vld [vmem:[%s7038_s3 + $0x17] ss:$0 sm:$0xff] }
0x2296   : > { %v4218_v20 = vmul.f32 0.044715, %v4210_v21  ;;  %v4215_v8 = vmul.f32 0.5, %v4210_v21 }
0x2298   : > { %v4221_v22 = vmul.f32 %v4218_v20, %v4210_v21 }
0x229a   : > { %v4224_v27 = vmul.f32 %v4221_v22, %v4210_v21 }
0x229c   : > { %v4227_v26 = vadd.f32 %v4224_v27, %v4210_v21 }
0x229e   : > { %v4230_v24 = vmul.f32 0.7978846, %v4227_v26 }
0x22a0   : > { %5881 = vtanh.f32 %v4230_v24 }
0x22aa   : > { %v5882_v28 = vpop.eup %5881 }
0x22ab   : > { %v4236_v30 = vadd.f32 1.0, %v5882_v28 }
0x22ad   : > { %v4239_v31 = vmul.f32 %v4236_v30, %v4215_v8 }
0x22af   : > { %v4322_v25 = vpop.f32.mrb[96].mxu0  ;;  %5452 = vmatmul.mubr.msk.f32.gmra.mrb[100].mxu0 %vm2216_vm7, %v4239_v31 }
0x22b0   : > { %v4323_v32 = vadd.f32 %v4644_v12, %v4322_v25  ;;  %v5447_v33 = vpop.f32.mrb[97].mxu0  ;;  %5462 = vmatprep.mubr.msk.f32.mxu0 %vm5894_vm0, %v5895_v6  ;;  %v4361_v6 = vld [vmem:[%s7039_s4 + $0x8] sm:$0xff] }
0x22b2   : > { %v4334_v34 = vadd.f32 %v4323_v32, %v6966_v46  ;;  %v5624_v46 = vpack.c.bf16 %v4361_v6, %v4360_v39 }
0x22b4   : > { %v4337_v35 = vsel %vm331_vm2, %v4334_v34, 0.0  ;;  %5625 = vmatpush3.bf16.msra.mxu0 %v5624_v46 }
0x22b5   : > { %4338 = vadd.xlane.f32.xlu0 %v4337_v35  ;;  %5626 = vmatprep.subr.bf16.mxu0 %v5893_v3  ;;  %v4648_v3 = vld [vmem:[%s7038_s3 + $0x16] ss:$0 sm:$0xff] }
0x22b8   : > { %5628 = vmatpush3.bf16.msra.mxu0 %v5627_v55 }
0x22e4   : > { %v4327_v0 = vpop.f32.mrb[98].mxu0 }
0x22e5   : > { %v5450_v36 = vpop.f32.mrb[99].mxu0 }
0x2342   : > { %v4339_v13 = vpop.xlane.xlu0 %4338 }
0x2343   : > { %v4340_v16 = vmul.f32 0.03125, %v4339_v13 }
0x2345   : > { %v4341_v19 = vsub.f32 %v4334_v34, %v4340_v16 }
0x2347   : > { %v4342_v38 = vmul.f32 %v4341_v19, %v4341_v19 }
0x2349   : > { %v4343_v48 = vsel %vm331_vm2, %v4342_v38, 0.0 }
0x234a   : > { %4344 = vadd.xlane.f32.xlu1 %v4343_v48 }
0x2382   : > { %v4331_v14 = vpop.f32.mrb[100].mxu0 }
0x2383   : > { %v5453_v42 = vpop.f32.mrb[101].mxu0 }
0x23d7   : > { %v4345_v43 = vpop.xlane.xlu1 %4344 }
0x23d8   : > { %v4346_v44 = vmul.f32 0.03125, %v4345_v43 }
0x23da   : > { %v4347_v53 = vadd.f32 1e-05, %v4346_v44 }
0x23dc   : > { %5883 = vrsqrt.f32 %v4347_v53 }
0x23e6   : > { %v5884_v37 = vpop.eup %5883 }
0x23e7   : > { %v4349_v45 = vmul.f32 %v5884_v37, %v4341_v19 }
0x23e9   : > { %v4354_v51 = vmul.f32 %v4648_v3, %v4349_v45 }
0x23eb   : > { %v4359_v54 = vadd.f32 %v4649_v47, %v4354_v51 }
0x23ed   : > { %5463 = vmatmul.mubr.msk.f32.vlgmr.msra.gmra.mrb[102].mxu0 %vm331_vm2, %v4359_v54 }
0x24c0   : > { %v4438_v58 = vpop.f32.mrb[102].mxu0 }
0x24c1   : > { %v4439_v60 = vadd.f32 %v4650_v57, %v4438_v58  ;;  %v5464_v61 = vpop.f32.mrb[103].mxu0 }
0x24c3   : > { %4442 = vst [vmem:[%s222_s28] sm:$0xff] %v4439_v60 }
0x24c4 PF: > { %s15_s18 = sadd.s32 1, %s5891_s18  }
0x24c5   : > { %p12_p4 = scmp.ge.s32.totalorder %s15_s18, 4  }
0x24c7   :  { %14 = sbr.rel (!%p12_p4) target bundleno = 1 (0x1), region = 70 }

</bundles_post_ra>
